<compile_context>
chip_gen: v7x
topology: tpu7x:2x2x1
jax: 0.10.0
libtpu: 0.0.40
codegen_flags: <defaults>
</compile_context>

<pallas_src>
import math

import jax
import jax.numpy as jnp
from jax.experimental import pallas as pl
from jax.experimental.pallas import tpu as pltpu

# ----------------------------- configuration (small shapes) -----------------------------
V, E, K = 32, 16, 8          # vocab size, embedding size, num_topics
W_H, D_H = 32, 32            # word-encoder / doc-encoder hidden sizes
B, L, L_AUG = 2, 8, 6        # batch size, doc length, augmented-doc length
LAMBDA_0 = LAMBDA_1 = LAMBDA_2 = LAMBDA_3 = 1.0
ENC_DROP = 0.2
VARIANCE = 0.995
KAPPA = 3.0
BN_EPS = 1e-5                # torch.nn.BatchNorm1d default eps

_VMEM = pl.BlockSpec(memory_space=pltpu.MemorySpace.VMEM)


# ----------------------------- in-kernel helpers (traced jnp math) -----------------------------
def _softplus(y):
    # PyTorch Softplus(beta=1, threshold=20): identity for y > 20
    return jnp.where(y > 20.0, y, jnp.log1p(jnp.exp(jnp.minimum(y, 20.0))))


def _batchnorm_rows(x):
    # training-mode BatchNorm1d over rows (axis=0), affine at default init (w=1, b=0)
    mean = jnp.mean(x, axis=0, keepdims=True)
    var = jnp.mean((x - mean) ** 2, axis=0, keepdims=True)
    return (x - mean) * jax.lax.rsqrt(var + BN_EPS)


def _softmax_rows(x):
    mx = jnp.max(x, axis=-1, keepdims=True)
    e = jnp.exp(x - mx)
    return e * pl.reciprocal(jnp.sum(e, axis=-1, keepdims=True), approx=True)


def _kl_terms(a, b):
    # a * log(a / b) with the conventional 0-contribution for a == 0
    return jnp.where(a > 0.0, a * jnp.log(a / b), 0.0)


# ----------------------------- Pallas kernels -----------------------------
def _log_softmax_kernel(x_ref, o_ref):
    x = x_ref[...]
    mx = jnp.max(x, axis=-1, keepdims=True)
    lse = mx + jnp.log(jnp.sum(jnp.exp(x - mx), axis=-1, keepdims=True))
    o_ref[...] = x - lse


def pallas_log_softmax(x):
    """Row log-softmax along last dim, single kernel. x: (K, V)."""
    return pl.pallas_call(
        _log_softmax_kernel,
        out_shape=jax.ShapeDtypeStruct(x.shape, jnp.float32),
        in_specs=[_VMEM],
        out_specs=_VMEM,
    )(x.astype(jnp.float32))


def _word_encoder_kernel(x_ref, w_in_ref, b_in_ref, w_hid_ref, b_hid_ref,
                         w_out_ref, b_out_ref, drop_ref, o_ref):
    # x_ref: (G, N, E)  -- G groups, batchnorm is computed within each group's N rows.
    w_in, b_in = w_in_ref[...], b_in_ref[...]
    w_hid, b_hid = w_hid_ref[...], b_hid_ref[...]
    w_out, b_out = w_out_ref[...], b_out_ref[...]
    num_groups = x_ref.shape[0]
    for g in range(num_groups):                      # unrolled at trace time (tiny G)
        x = x_ref[g]                                 # (N, E)
        h = _softplus(jnp.dot(x, w_in, preferred_element_type=jnp.float32) + b_in)
        h = _softplus(jnp.dot(h, w_hid, preferred_element_type=jnp.float32) + b_hid)
        h = _batchnorm_rows(h)
        h = h * drop_ref[g]                          # pre-scaled dropout mask
        ph = _softplus(jnp.dot(h, w_out, preferred_element_type=jnp.float32) + b_out)
        ph = _batchnorm_rows(ph)
        o_ref[g, :, :] = _softmax_rows(ph)


def pallas_word_encoder(x, params, drop_mask):
    """Fused encode_word. x: (G, N, E), drop_mask: (G, N, W_H) -> (G, N, K)."""
    g, n, _ = x.shape
    w_in, b_in = params["w_in"]
    w_hid, b_hid = params["w_hidden"]
    w_out, b_out = params["w_out"]
    return pl.pallas_call(
        _word_encoder_kernel,
        out_shape=jax.ShapeDtypeStruct((g, n, K), jnp.float32),
        in_specs=[_VMEM] * 8,
        out_specs=_VMEM,
    )(x, w_in, b_in, w_hid, b_hid, w_out, b_out, drop_mask)


def _doc_encoder_kernel(x_ref, w_in_ref, b_in_ref, w_hid_ref, b_hid_ref,
                        w_mu_ref, b_mu_ref, w_ls_ref, b_ls_ref,
                        drop_ref, eps_ref, theta_ref, mu_ref, ls_ref):
    x = x_ref[...]                                   # (B, E)
    h = _softplus(jnp.dot(x, w_in_ref[...], preferred_element_type=jnp.float32)
                  + b_in_ref[...])
    h = _softplus(jnp.dot(h, w_hid_ref[...], preferred_element_type=jnp.float32)
                  + b_hid_ref[...])
    q = h * drop_ref[...]                            # dropout
    mu = _batchnorm_rows(jnp.dot(q, w_mu_ref[...], preferred_element_type=jnp.float32)
                         + b_mu_ref[...])
    ls = _batchnorm_rows(jnp.dot(q, w_ls_ref[...], preferred_element_type=jnp.float32)
                         + b_ls_ref[...])
    z = eps_ref[...] * jnp.exp(0.5 * ls) + mu        # reparameterization
    theta_ref[...] = _softmax_rows(z)
    mu_ref[...] = mu
    ls_ref[...] = ls


def pallas_doc_encoder(e_d, params, drop_mask, eps):
    """Fused encode_doc + reparameterize + softmax. e_d: (B, E) -> (theta, mu, logsigma)."""
    bsz = e_d.shape[0]
    w_in, b_in = params["d_in"]
    w_hid, b_hid = params["d_hidden"]
    w_mu, b_mu = params["mu"]
    w_ls, b_ls = params["logsigma"]
    out_shapes = tuple(jax.ShapeDtypeStruct((bsz, K), jnp.float32) for _ in range(3))
    return pl.pallas_call(
        _doc_encoder_kernel,
        out_shape=out_shapes,
        in_specs=[_VMEM] * 11,
        out_specs=(_VMEM,) * 3,
    )(e_d, w_in, b_in, w_hid, b_hid, w_mu, b_mu, w_ls, b_ls, drop_mask, eps)


def _losses_kernel(phi_ref, lb_ref, ph_ref, theta_ref, theta_hat_ref,
                   mu_ref, logvar_ref, tt_ref, edphi_ref,
                   rec_ref, kl_ref, ld_ref, lw_ref, lc_ref):
    theta = theta_ref[...]          # (B, K)
    theta_hat = theta_hat_ref[...]
    mu = mu_ref[...]
    logvar = logvar_ref[...]
    theta_tick = tt_ref[...]
    edphi = edphi_ref[...]

    # L_d per doc: KL(theta || theta_hat)
    ld_ref[...] = LAMBDA_1 * jnp.sum(_kl_terms(theta, theta_hat), axis=-1, keepdims=True)

    # Gaussian KL to N(0, VARIANCE) prior, per doc
    post_var = jnp.exp(logvar)
    inv_pvar = 1.0 / VARIANCE
    var_div = post_var * inv_pvar
    diff_term = mu * mu * inv_pvar
    logvar_div = math.log(VARIANCE) - logvar
    kld = 0.5 * (jnp.sum(var_div + diff_term + logvar_div, axis=-1, keepdims=True)
                 - float(K))                                              # (B, 1)

    # L_c per doc: SKL(theta, theta_tick) + SKL(theta, e_d_phi)
    lc_ref[...] = LAMBDA_3 * jnp.sum(
        _kl_terms(theta, theta_tick) + _kl_terms(theta_tick, theta)
        + _kl_terms(theta, edphi) + _kl_terms(edphi, theta),
        axis=-1, keepdims=True)

    # Per-document word-level terms (unrolled over the tiny batch)
    num_docs = phi_ref.shape[0]
    for b in range(num_docs):
        phi_d = phi_ref[b]                         # (L, K)
        lb_d = lb_ref[b]                           # (L, K) gathered log_beta rows
        ph_d = ph_ref[b]                           # (L, K) gathered phi_hat rows
        theta_d = theta[b:b + 1, :]                # (1, K)

        varphi = phi_d * theta_d
        varphi = varphi * pl.reciprocal(
            jnp.sum(varphi, axis=-1, keepdims=True), approx=True)

        rec_d = -jnp.sum(jnp.sum(varphi * lb_d, axis=-1, keepdims=True),
                         axis=0, keepdims=True)                           # (1, 1)
        klv_d = jnp.sum(jnp.sum(_kl_terms(varphi, theta_d), axis=-1, keepdims=True),
                        axis=0, keepdims=True)                            # (1, 1)
        lw_d = jnp.sum(jnp.sum(_kl_terms(ph_d, phi_d), axis=-1, keepdims=True),
                       axis=0, keepdims=True)                             # (1, 1)
        kld_d = kld[b:b + 1, :]                                           # (1, 1)

        rec_ref[pl.ds(b, 1), :] = rec_d
        kl_ref[pl.ds(b, 1), :] = LAMBDA_0 * (klv_d + kld_d)
        lw_ref[pl.ds(b, 1), :] = LAMBDA_2 * lw_d


def pallas_losses(phi3, lb3, ph3, theta, theta_hat, mu, logvar, theta_tick, edphi):
    bsz = theta.shape[0]
    out_shapes = tuple(jax.ShapeDtypeStruct((bsz, 1), jnp.float32) for _ in range(5))
    return pl.pallas_call(
        _losses_kernel,
        out_shape=out_shapes,
        in_specs=[_VMEM] * 9,
        out_specs=(_VMEM,) * 5,
    )(phi3, lb3, ph3, theta, theta_hat, mu, logvar, theta_tick, edphi)
    # TODO(synk): if K/V grow to realistic NTM sizes, re-tile so the vocab axis is the
    #             lane-dense last dim and grid over documents with "parallel" semantics.


# ----------------------------- plain-JAX glue -----------------------------
def dropout_mask(key, shape, p=ENC_DROP):
    # training-mode nn.Dropout(p): pre-scaled keep mask (kept units scaled by 1/(1-p))
    keep = jax.random.bernoulli(key, 1.0 - p, shape)
    return jnp.where(keep, 1.0 / (1.0 - p), 0.0).astype(jnp.float32)


# ----------------------------- parameters -----------------------------
def init_params(key):
    keys = jax.random.split(key, 12)

    def lin(k, in_f, out_f):
        # PyTorch nn.Linear default init, stored pre-transposed (In, Out) / (1, Out)
        k1, k2 = jax.random.split(k)
        bound = 1.0 / math.sqrt(in_f)
        w = jax.random.uniform(k1, (out_f, in_f), jnp.float32, -bound, bound)
        b = jax.random.uniform(k2, (out_f,), jnp.float32, -bound, bound)
        return w.T, b.reshape(1, out_f)

    p = {}
    p["embeddings"] = jax.random.normal(keys[0], (V, E), jnp.float32)
    p["w_in"] = lin(keys[1], E, W_H)
    p["w_hidden"] = lin(keys[2], W_H, W_H)
    p["w_out"] = lin(keys[3], W_H, K)
    p["d_in"] = lin(keys[4], E, D_H)
    p["d_hidden"] = lin(keys[5], D_H, D_H)
    p["mu"] = lin(keys[6], D_H, K)
    p["logsigma"] = lin(keys[7], D_H, K)

    logeta_r = (jax.random.uniform(keys[8], (K, V), jnp.float32) - 0.5) * 10.0
    p["m"] = jnp.log(jax.nn.softmax(jax.random.normal(keys[9], (V,), jnp.float32)))

    # one seed word per topic (topic k <- vocab index k); precompute the mask ONCE
    seed_mask = jnp.zeros((K, V), bool)
    for k_ in range(K):
        seed_mask = seed_mask.at[k_, k_].set(True)
    p["logeta_r_masked"] = jnp.where(seed_mask, 0.0, logeta_r)   # get_beta() zeroing
    p["eta_s"] = jnp.where(seed_mask, KAPPA, 0.0).astype(jnp.float32)
    return p


# ----------------------------- forward -----------------------------
def forward(params, bows, batch_bow, word_augment_batch, theta_hat, phi_hat, rng):
    del bows  # only used via len() in the reference implementation
    bsz, doc_len = batch_bow.shape
    k_wdrop, k_wdrop2, k_ddrop, k_eps, k_ddrop2, k_eps2 = jax.random.split(rng, 6)

    # --- topic-word log-probabilities: one log-softmax kernel (no exp->log round trip)
    beta_logits = params["m"][None, :] + params["logeta_r_masked"] + params["eta_s"]
    log_beta = pallas_log_softmax(beta_logits)          # (K, V)
    log_beta_t = log_beta.T                             # (V, K)

    # --- embeddings & per-doc means (gathers stay in JAX)
    emb = params["embeddings"]
    docs_en = emb[batch_bow]                            # (B, L, E)
    docs_ed = docs_en.sum(axis=1) / doc_len             # (B, E)

    # --- fused word encoder over all documents (BN per document over its L words)
    wmask = dropout_mask(k_wdrop, (bsz, doc_len, W_H))
    docs_phi = pallas_word_encoder(docs_en, params, wmask)          # (B, L, K)

    # --- fused doc encoder + reparameterize + softmax
    dmask = dropout_mask(k_ddrop, (bsz, D_H))
    eps = jax.random.normal(k_eps, (bsz, K), jnp.float32)
    theta, post_mean, post_logvar = pallas_doc_encoder(docs_ed, params, dmask, eps)

    # --- L_c ingredients: encode_word on doc embeddings (BN over the batch of B docs)
    wmask2 = dropout_mask(k_wdrop2, (1, bsz, W_H))
    e_d_phi = pallas_word_encoder(docs_ed[None, :, :], params, wmask2)[0]   # (B, K)

    aug_en = emb[word_augment_batch]                                 # (B, L_aug, E)
    aug_ed = aug_en.sum(axis=1) / word_augment_batch.shape[1]        # (B, E)
    dmask2 = dropout_mask(k_ddrop2, (bsz, D_H))
    eps2 = jax.random.normal(k_eps2, (bsz, K), jnp.float32)
    theta_tick, _, _ = pallas_doc_encoder(aug_ed, params, dmask2, eps2)

    # --- gathers for the loss kernel (JAX), then one fused loss kernel
    lb_sel = log_beta_t[batch_bow]                       # (B, L, K)
    ph_sel = phi_hat[batch_bow]                          # (B, L, K)

    l_rec, l_kl, l_d, l_w, l_c = pallas_losses(
        docs_phi, lb_sel, ph_sel, theta, theta_hat, post_mean, post_logvar,
        theta_tick, e_d_phi)

    return (l_rec.sum(), l_kl.sum(), l_d.sum(), l_w.sum(), l_c.sum())


forward_jit = jax.jit(forward)


# ----------------------------- driver -----------------------------
if __name__ == "__main__":
    root = jax.random.PRNGKey(0)
    k_params, k_data, k_fwd = jax.random.split(root, 3)
    params = init_params(k_params)

    dk = jax.random.split(k_data, 4)
    batch_bow = jax.random.randint(dk[0], (B, L), 0, V)              # word indices per doc
    word_augment_batch = jax.random.randint(dk[1], (B, L_AUG), 0, V)
    bows = jnp.zeros((B, V), jnp.float32)
    for d in range(B):
        bows = bows.at[d].add(jnp.zeros((V,), jnp.float32).at[batch_bow[d]].add(1.0))
    theta_hat = jax.nn.softmax(jax.random.normal(dk[2], (B, K), jnp.float32), axis=-1)
    phi_hat = jax.nn.softmax(jax.random.normal(dk[3], (V, K), jnp.float32), axis=-1)

    # NOTE: dropout masks / reparameterization noise use JAX RNG (cannot bitwise-match
    # torch RNG, but the stochastic semantics are reproduced deterministically).
    outs = forward_jit(params, bows, batch_bow, word_augment_batch,
                       theta_hat, phi_hat, k_fwd)
    outs = jax.block_until_ready(outs)
    print("KERNEL_OK")
</pallas_src>

<mosaic_0001>
module attributes {stable_mosaic.version = 11 : i64} {
  func.func @_log_softmax_kernel(%arg0: memref<8x32xf32, #tpu.memory_space<vmem>>, %arg1: memref<8x32xf32, #tpu.memory_space<vmem>>) attributes {dimension_semantics = [], scalar_prefetch = 0 : i64, scratch_operands = 0 : i64, tpu.core_type = #tpu.core_type<tc>} {
    %c0 = arith.constant 0 : index
    %c0_0 = arith.constant 0 : index
    %0 = vector.load %arg0[%c0, %c0_0] : memref<8x32xf32, #tpu.memory_space<vmem>>, vector<8x32xf32>
    %cst = arith.constant dense<0xFF800000> : vector<8xf32>
    %1 = vector.multi_reduction <maximumf>, %0, %cst [1] : vector<8x32xf32> to vector<8xf32>
    %2 = vector.shape_cast %1 : vector<8xf32> to vector<8x1xf32>
    %3 = vector.broadcast %2 : vector<8x1xf32> to vector<8x32xf32>
    %4 = arith.subf %0, %3 : vector<8x32xf32>
    %5 = math.exp %4 : vector<8x32xf32>
    %cst_1 = arith.constant dense<0.000000e+00> : vector<8xf32>
    %6 = vector.multi_reduction <add>, %5, %cst_1 [1] : vector<8x32xf32> to vector<8xf32>
    %7 = vector.shape_cast %6 : vector<8xf32> to vector<8x1xf32>
    %8 = math.log %7 : vector<8x1xf32>
    %9 = arith.addf %2, %8 : vector<8x1xf32>
    %10 = vector.broadcast %9 : vector<8x1xf32> to vector<8x32xf32>
    %11 = arith.subf %0, %10 : vector<8x32xf32>
    %c0_2 = arith.constant 0 : index
    %c0_3 = arith.constant 0 : index
    %12 = vector.load %arg1[%c0_2, %c0_3] : memref<8x32xf32, #tpu.memory_space<vmem>>, vector<8x32xf32>
    tpu.vector_store %arg1[%c0_2, %c0_3], %11 {strides = array<i32>} : memref<8x32xf32, #tpu.memory_space<vmem>>, vector<8x32xf32>,
    return
  }
}

module attributes {stable_mosaic.version = 11 : i64} {
  func.func @_doc_encoder_kernel(%arg0: memref<2x16xf32, #tpu.memory_space<vmem>>, %arg1: memref<16x32xf32, #tpu.memory_space<vmem>>, %arg2: memref<1x32xf32, #tpu.memory_space<vmem>>, %arg3: memref<32x32xf32, #tpu.memory_space<vmem>>, %arg4: memref<1x32xf32, #tpu.memory_space<vmem>>, %arg5: memref<32x8xf32, #tpu.memory_space<vmem>>, %arg6: memref<1x8xf32, #tpu.memory_space<vmem>>, %arg7: memref<32x8xf32, #tpu.memory_space<vmem>>, %arg8: memref<1x8xf32, #tpu.memory_space<vmem>>, %arg9: memref<2x32xf32, #tpu.memory_space<vmem>>, %arg10: memref<2x8xf32, #tpu.memory_space<vmem>>, %arg11: memref<2x8xf32, #tpu.memory_space<vmem>>, %arg12: memref<2x8xf32, #tpu.memory_space<vmem>>, %arg13: memref<2x8xf32, #tpu.memory_space<vmem>>) attributes {dimension_semantics = [], scalar_prefetch = 0 : i64, scratch_operands = 0 : i64, tpu.core_type = #tpu.core_type<tc>} {
    %c0 = arith.constant 0 : index
    %c0_0 = arith.constant 0 : index
    %0 = vector.load %arg0[%c0, %c0_0] : memref<2x16xf32, #tpu.memory_space<vmem>>, vector<2x16xf32>
    %c0_1 = arith.constant 0 : index
    %c0_2 = arith.constant 0 : index
    %1 = vector.load %arg1[%c0_1, %c0_2] : memref<16x32xf32, #tpu.memory_space<vmem>>, vector<16x32xf32>
    %cst = arith.constant dense<0.000000e+00> : vector<2x32xf32>
    %2 = tpu.matmul %0, %1, %cst {dimension_numbers = #tpu.dot_dimension_numbers<[1], [0], [0], [1], [0, 0, 1, 1], [], []>} : vector<2x16xf32>, vector<16x32xf32>, vector<2x32xf32> -> vector<2x32xf32>
    %c0_3 = arith.constant 0 : index
    %c0_4 = arith.constant 0 : index
    %3 = vector.load %arg2[%c0_3, %c0_4] : memref<1x32xf32, #tpu.memory_space<vmem>>, vector<1x32xf32>
    %4 = vector.broadcast %3 : vector<1x32xf32> to vector<2x32xf32>
    %5 = arith.addf %2, %4 : vector<2x32xf32>
    %cst_5 = arith.constant 2.000000e+01 : f32
    %6 = vector.broadcast %cst_5 : f32 to vector<2x32xf32>
    %7 = arith.cmpf ogt, %5, %6 : vector<2x32xf32>
    %cst_6 = arith.constant 2.000000e+01 : f32
    %8 = vector.broadcast %cst_6 : f32 to vector<2x32xf32>
    %9 = arith.minimumf %5, %8 : vector<2x32xf32>
    %10 = math.exp %9 : vector<2x32xf32>
    %11 = math.log1p %10 : vector<2x32xf32>
    %12 = arith.select %7, %5, %11 : vector<2x32xi1>, vector<2x32xf32>
    %c0_7 = arith.constant 0 : index
    %c0_8 = arith.constant 0 : index
    %13 = vector.load %arg3[%c0_7, %c0_8] : memref<32x32xf32, #tpu.memory_space<vmem>>, vector<32x32xf32>
    %cst_9 = arith.constant dense<0.000000e+00> : vector<2x32xf32>
    %14 = tpu.matmul %12, %13, %cst_9 {dimension_numbers = #tpu.dot_dimension_numbers<[1], [0], [0], [1], [0, 0, 1, 1], [], []>} : vector<2x32xf32>, vector<32x32xf32>, vector<2x32xf32> -> vector<2x32xf32>
    %c0_10 = arith.constant 0 : index
    %c0_11 = arith.constant 0 : index
    %15 = vector.load %arg4[%c0_10, %c0_11] : memref<1x32xf32, #tpu.memory_space<vmem>>, vector<1x32xf32>
    %16 = vector.broadcast %15 : vector<1x32xf32> to vector<2x32xf32>
    %17 = arith.addf %14, %16 : vector<2x32xf32>
    %cst_12 = arith.constant 2.000000e+01 : f32
    %18 = vector.broadcast %cst_12 : f32 to vector<2x32xf32>
    %19 = arith.cmpf ogt, %17, %18 : vector<2x32xf32>
    %cst_13 = arith.constant 2.000000e+01 : f32
    %20 = vector.broadcast %cst_13 : f32 to vector<2x32xf32>
    %21 = arith.minimumf %17, %20 : vector<2x32xf32>
    %22 = math.exp %21 : vector<2x32xf32>
    %23 = math.log1p %22 : vector<2x32xf32>
    %24 = arith.select %19, %17, %23 : vector<2x32xi1>, vector<2x32xf32>
    %c0_14 = arith.constant 0 : index
    %c0_15 = arith.constant 0 : index
    %25 = vector.load %arg9[%c0_14, %c0_15] : memref<2x32xf32, #tpu.memory_space<vmem>>, vector<2x32xf32>
    %26 = arith.mulf %24, %25 : vector<2x32xf32>
    %c0_16 = arith.constant 0 : index
    %c0_17 = arith.constant 0 : index
    %27 = vector.load %arg5[%c0_16, %c0_17] : memref<32x8xf32, #tpu.memory_space<vmem>>, vector<32x8xf32>
    %cst_18 = arith.constant dense<0.000000e+00> : vector<2x8xf32>
    %28 = tpu.matmul %26, %27, %cst_18 {dimension_numbers = #tpu.dot_dimension_numbers<[1], [0], [0], [1], [0, 0, 1, 1], [], []>} : vector<2x32xf32>, vector<32x8xf32>, vector<2x8xf32> -> vector<2x8xf32>
    %c0_19 = arith.constant 0 : index
    %c0_20 = arith.constant 0 : index
    %29 = vector.load %arg6[%c0_19, %c0_20] : memref<1x8xf32, #tpu.memory_space<vmem>>, vector<1x8xf32>
    %30 = vector.broadcast %29 : vector<1x8xf32> to vector<2x8xf32>
    %31 = arith.addf %28, %30 : vector<2x8xf32>
    %cst_21 = arith.constant dense<0.000000e+00> : vector<8xf32>
    %32 = vector.multi_reduction <add>, %31, %cst_21 [0] : vector<2x8xf32> to vector<8xf32>
    %33 = vector.shape_cast %32 : vector<8xf32> to vector<1x8xf32>
    %cst_22 = arith.constant 2.000000e+00 : f32
    %34 = vector.broadcast %cst_22 : f32 to vector<1x8xf32>
    %35 = arith.divf %33, %34 : vector<1x8xf32>
    %36 = vector.broadcast %35 : vector<1x8xf32> to vector<2x8xf32>
    %37 = arith.subf %31, %36 : vector<2x8xf32>
    %38 = arith.mulf %37, %37 : vector<2x8xf32>
    %cst_23 = arith.constant dense<0.000000e+00> : vector<8xf32>
    %39 = vector.multi_reduction <add>, %38, %cst_23 [0] : vector<2x8xf32> to vector<8xf32>
    %40 = vector.shape_cast %39 : vector<8xf32> to vector<1x8xf32>
    %cst_24 = arith.constant 2.000000e+00 : f32
    %41 = vector.broadcast %cst_24 : f32 to vector<1x8xf32>
    %42 = arith.divf %40, %41 : vector<1x8xf32>
    %43 = vector.broadcast %35 : vector<1x8xf32> to vector<2x8xf32>
    %44 = arith.subf %31, %43 : vector<2x8xf32>
    %cst_25 = arith.constant 9.99999974E-6 : f32
    %45 = vector.broadcast %cst_25 : f32 to vector<1x8xf32>
    %46 = arith.addf %42, %45 : vector<1x8xf32>
    %47 = math.rsqrt %46 : vector<1x8xf32>
    %48 = vector.broadcast %47 : vector<1x8xf32> to vector<2x8xf32>
    %49 = arith.mulf %44, %48 : vector<2x8xf32>
    %c0_26 = arith.constant 0 : index
    %c0_27 = arith.constant 0 : index
    %50 = vector.load %arg7[%c0_26, %c0_27] : memref<32x8xf32, #tpu.memory_space<vmem>>, vector<32x8xf32>
    %cst_28 = arith.constant dense<0.000000e+00> : vector<2x8xf32>
    %51 = tpu.matmul %26, %50, %cst_28 {dimension_numbers = #tpu.dot_dimension_numbers<[1], [0], [0], [1], [0, 0, 1, 1], [], []>} : vector<2x32xf32>, vector<32x8xf32>, vector<2x8xf32> -> vector<2x8xf32>
    %c0_29 = arith.constant 0 : index
    %c0_30 = arith.constant 0 : index
    %52 = vector.load %arg8[%c0_29, %c0_30] : memref<1x8xf32, #tpu.memory_space<vmem>>, vector<1x8xf32>
    %53 = vector.broadcast %52 : vector<1x8xf32> to vector<2x8xf32>
    %54 = arith.addf %51, %53 : vector<2x8xf32>
    %cst_31 = arith.constant dense<0.000000e+00> : vector<8xf32>
    %55 = vector.multi_reduction <add>, %54, %cst_31 [0] : vector<2x8xf32> to vector<8xf32>
    %56 = vector.shape_cast %55 : vector<8xf32> to vector<1x8xf32>
    %cst_32 = arith.constant 2.000000e+00 : f32
    %57 = vector.broadcast %cst_32 : f32 to vector<1x8xf32>
    %58 = arith.divf %56, %57 : vector<1x8xf32>
    %59 = vector.broadcast %58 : vector<1x8xf32> to vector<2x8xf32>
    %60 = arith.subf %54, %59 : vector<2x8xf32>
    %61 = arith.mulf %60, %60 : vector<2x8xf32>
    %cst_33 = arith.constant dense<0.000000e+00> : vector<8xf32>
    %62 = vector.multi_reduction <add>, %61, %cst_33 [0] : vector<2x8xf32> to vector<8xf32>
    %63 = vector.shape_cast %62 : vector<8xf32> to vector<1x8xf32>
    %cst_34 = arith.constant 2.000000e+00 : f32
    %64 = vector.broadcast %cst_34 : f32 to vector<1x8xf32>
    %65 = arith.divf %63, %64 : vector<1x8xf32>
    %66 = vector.broadcast %58 : vector<1x8xf32> to vector<2x8xf32>
    %67 = arith.subf %54, %66 : vector<2x8xf32>
    %cst_35 = arith.constant 9.99999974E-6 : f32
    %68 = vector.broadcast %cst_35 : f32 to vector<1x8xf32>
    %69 = arith.addf %65, %68 : vector<1x8xf32>
    %70 = math.rsqrt %69 : vector<1x8xf32>
    %71 = vector.broadcast %70 : vector<1x8xf32> to vector<2x8xf32>
    %72 = arith.mulf %67, %71 : vector<2x8xf32>
    %c0_36 = arith.constant 0 : index
    %c0_37 = arith.constant 0 : index
    %73 = vector.load %arg10[%c0_36, %c0_37] : memref<2x8xf32, #tpu.memory_space<vmem>>, vector<2x8xf32>
    %cst_38 = arith.constant 5.000000e-01 : f32
    %74 = vector.broadcast %cst_38 : f32 to vector<2x8xf32>
    %75 = arith.mulf %74, %72 : vector<2x8xf32>
    %76 = math.exp %75 : vector<2x8xf32>
    %77 = arith.mulf %73, %76 : vector<2x8xf32>
    %78 = arith.addf %77, %49 : vector<2x8xf32>
    %cst_39 = arith.constant dense<0xFF800000> : vector<2xf32>
    %79 = vector.multi_reduction <maximumf>, %78, %cst_39 [1] : vector<2x8xf32> to vector<2xf32>
    %80 = vector.shape_cast %79 : vector<2xf32> to vector<2x1xf32>
    %81 = vector.broadcast %80 : vector<2x1xf32> to vector<2x8xf32>
    %82 = arith.subf %78, %81 : vector<2x8xf32>
    %83 = math.exp %82 : vector<2x8xf32>
    %cst_40 = arith.constant dense<0.000000e+00> : vector<2xf32>
    %84 = vector.multi_reduction <add>, %83, %cst_40 [1] : vector<2x8xf32> to vector<2xf32>
    %85 = vector.shape_cast %84 : vector<2xf32> to vector<2x1xf32>
    %86 = tpu.reciprocal %85 {approx = true} : vector<2x1xf32> -> vector<2x1xf32>
    %87 = vector.broadcast %86 : vector<2x1xf32> to vector<2x8xf32>
    %88 = arith.mulf %83, %87 : vector<2x8xf32>
    %c0_41 = arith.constant 0 : index
    %c0_42 = arith.constant 0 : index
    %89 = vector.load %arg11[%c0_41, %c0_42] : memref<2x8xf32, #tpu.memory_space<vmem>>, vector<2x8xf32>
    tpu.vector_store %arg11[%c0_41, %c0_42], %88 {strides = array<i32>} : memref<2x8xf32, #tpu.memory_space<vmem>>, vector<2x8xf32>,
    %c0_43 = arith.constant 0 : index
    %c0_44 = arith.constant 0 : index
    %90 = vector.load %arg12[%c0_43, %c0_44] : memref<2x8xf32, #tpu.memory_space<vmem>>, vector<2x8xf32>
    tpu.vector_store %arg12[%c0_43, %c0_44], %49 {strides = array<i32>} : memref<2x8xf32, #tpu.memory_space<vmem>>, vector<2x8xf32>,
    %c0_45 = arith.constant 0 : index
    %c0_46 = arith.constant 0 : index
    %91 = vector.load %arg13[%c0_45, %c0_46] : memref<2x8xf32, #tpu.memory_space<vmem>>, vector<2x8xf32>
    tpu.vector_store %arg13[%c0_45, %c0_46], %72 {strides = array<i32>} : memref<2x8xf32, #tpu.memory_space<vmem>>, vector<2x8xf32>,
    return
  }
}

module attributes {stable_mosaic.version = 11 : i64} {
  func.func @_doc_encoder_kernel(%arg0: memref<2x16xf32, #tpu.memory_space<vmem>>, %arg1: memref<16x32xf32, #tpu.memory_space<vmem>>, %arg2: memref<1x32xf32, #tpu.memory_space<vmem>>, %arg3: memref<32x32xf32, #tpu.memory_space<vmem>>, %arg4: memref<1x32xf32, #tpu.memory_space<vmem>>, %arg5: memref<32x8xf32, #tpu.memory_space<vmem>>, %arg6: memref<1x8xf32, #tpu.memory_space<vmem>>, %arg7: memref<32x8xf32, #tpu.memory_space<vmem>>, %arg8: memref<1x8xf32, #tpu.memory_space<vmem>>, %arg9: memref<2x32xf32, #tpu.memory_space<vmem>>, %arg10: memref<2x8xf32, #tpu.memory_space<vmem>>, %arg11: memref<2x8xf32, #tpu.memory_space<vmem>>, %arg12: memref<2x8xf32, #tpu.memory_space<vmem>>, %arg13: memref<2x8xf32, #tpu.memory_space<vmem>>) attributes {dimension_semantics = [], scalar_prefetch = 0 : i64, scratch_operands = 0 : i64, tpu.core_type = #tpu.core_type<tc>} {
    %c0 = arith.constant 0 : index
    %c0_0 = arith.constant 0 : index
    %0 = vector.load %arg0[%c0, %c0_0] : memref<2x16xf32, #tpu.memory_space<vmem>>, vector<2x16xf32>
    %c0_1 = arith.constant 0 : index
    %c0_2 = arith.constant 0 : index
    %1 = vector.load %arg1[%c0_1, %c0_2] : memref<16x32xf32, #tpu.memory_space<vmem>>, vector<16x32xf32>
    %cst = arith.constant dense<0.000000e+00> : vector<2x32xf32>
    %2 = tpu.matmul %0, %1, %cst {dimension_numbers = #tpu.dot_dimension_numbers<[1], [0], [0], [1], [0, 0, 1, 1], [], []>} : vector<2x16xf32>, vector<16x32xf32>, vector<2x32xf32> -> vector<2x32xf32>
    %c0_3 = arith.constant 0 : index
    %c0_4 = arith.constant 0 : index
    %3 = vector.load %arg2[%c0_3, %c0_4] : memref<1x32xf32, #tpu.memory_space<vmem>>, vector<1x32xf32>
    %4 = vector.broadcast %3 : vector<1x32xf32> to vector<2x32xf32>
    %5 = arith.addf %2, %4 : vector<2x32xf32>
    %cst_5 = arith.constant 2.000000e+01 : f32
    %6 = vector.broadcast %cst_5 : f32 to vector<2x32xf32>
    %7 = arith.cmpf ogt, %5, %6 : vector<2x32xf32>
    %cst_6 = arith.constant 2.000000e+01 : f32
    %8 = vector.broadcast %cst_6 : f32 to vector<2x32xf32>
    %9 = arith.minimumf %5, %8 : vector<2x32xf32>
    %10 = math.exp %9 : vector<2x32xf32>
    %11 = math.log1p %10 : vector<2x32xf32>
    %12 = arith.select %7, %5, %11 : vector<2x32xi1>, vector<2x32xf32>
    %c0_7 = arith.constant 0 : index
    %c0_8 = arith.constant 0 : index
    %13 = vector.load %arg3[%c0_7, %c0_8] : memref<32x32xf32, #tpu.memory_space<vmem>>, vector<32x32xf32>
    %cst_9 = arith.constant dense<0.000000e+00> : vector<2x32xf32>
    %14 = tpu.matmul %12, %13, %cst_9 {dimension_numbers = #tpu.dot_dimension_numbers<[1], [0], [0], [1], [0, 0, 1, 1], [], []>} : vector<2x32xf32>, vector<32x32xf32>, vector<2x32xf32> -> vector<2x32xf32>
    %c0_10 = arith.constant 0 : index
    %c0_11 = arith.constant 0 : index
    %15 = vector.load %arg4[%c0_10, %c0_11] : memref<1x32xf32, #tpu.memory_space<vmem>>, vector<1x32xf32>
    %16 = vector.broadcast %15 : vector<1x32xf32> to vector<2x32xf32>
    %17 = arith.addf %14, %16 : vector<2x32xf32>
    %cst_12 = arith.constant 2.000000e+01 : f32
    %18 = vector.broadcast %cst_12 : f32 to vector<2x32xf32>
    %19 = arith.cmpf ogt, %17, %18 : vector<2x32xf32>
    %cst_13 = arith.constant 2.000000e+01 : f32
    %20 = vector.broadcast %cst_13 : f32 to vector<2x32xf32>
    %21 = arith.minimumf %17, %20 : vector<2x32xf32>
    %22 = math.exp %21 : vector<2x32xf32>
    %23 = math.log1p %22 : vector<2x32xf32>
    %24 = arith.select %19, %17, %23 : vector<2x32xi1>, vector<2x32xf32>
    %c0_14 = arith.constant 0 : index
    %c0_15 = arith.constant 0 : index
    %25 = vector.load %arg9[%c0_14, %c0_15] : memref<2x32xf32, #tpu.memory_space<vmem>>, vector<2x32xf32>
    %26 = arith.mulf %24, %25 : vector<2x32xf32>
    %c0_16 = arith.constant 0 : index
    %c0_17 = arith.constant 0 : index
    %27 = vector.load %arg5[%c0_16, %c0_17] : memref<32x8xf32, #tpu.memory_space<vmem>>, vector<32x8xf32>
    %cst_18 = arith.constant dense<0.000000e+00> : vector<2x8xf32>
    %28 = tpu.matmul %26, %27, %cst_18 {dimension_numbers = #tpu.dot_dimension_numbers<[1], [0], [0], [1], [0, 0, 1, 1], [], []>} : vector<2x32xf32>, vector<32x8xf32>, vector<2x8xf32> -> vector<2x8xf32>
    %c0_19 = arith.constant 0 : index
    %c0_20 = arith.constant 0 : index
    %29 = vector.load %arg6[%c0_19, %c0_20] : memref<1x8xf32, #tpu.memory_space<vmem>>, vector<1x8xf32>
    %30 = vector.broadcast %29 : vector<1x8xf32> to vector<2x8xf32>
    %31 = arith.addf %28, %30 : vector<2x8xf32>
    %cst_21 = arith.constant dense<0.000000e+00> : vector<8xf32>
    %32 = vector.multi_reduction <add>, %31, %cst_21 [0] : vector<2x8xf32> to vector<8xf32>
    %33 = vector.shape_cast %32 : vector<8xf32> to vector<1x8xf32>
    %cst_22 = arith.constant 2.000000e+00 : f32
    %34 = vector.broadcast %cst_22 : f32 to vector<1x8xf32>
    %35 = arith.divf %33, %34 : vector<1x8xf32>
    %36 = vector.broadcast %35 : vector<1x8xf32> to vector<2x8xf32>
    %37 = arith.subf %31, %36 : vector<2x8xf32>
    %38 = arith.mulf %37, %37 : vector<2x8xf32>
    %cst_23 = arith.constant dense<0.000000e+00> : vector<8xf32>
    %39 = vector.multi_reduction <add>, %38, %cst_23 [0] : vector<2x8xf32> to vector<8xf32>
    %40 = vector.shape_cast %39 : vector<8xf32> to vector<1x8xf32>
    %cst_24 = arith.constant 2.000000e+00 : f32
    %41 = vector.broadcast %cst_24 : f32 to vector<1x8xf32>
    %42 = arith.divf %40, %41 : vector<1x8xf32>
    %43 = vector.broadcast %35 : vector<1x8xf32> to vector<2x8xf32>
    %44 = arith.subf %31, %43 : vector<2x8xf32>
    %cst_25 = arith.constant 9.99999974E-6 : f32
    %45 = vector.broadcast %cst_25 : f32 to vector<1x8xf32>
    %46 = arith.addf %42, %45 : vector<1x8xf32>
    %47 = math.rsqrt %46 : vector<1x8xf32>
    %48 = vector.broadcast %47 : vector<1x8xf32> to vector<2x8xf32>
    %49 = arith.mulf %44, %48 : vector<2x8xf32>
    %c0_26 = arith.constant 0 : index
    %c0_27 = arith.constant 0 : index
    %50 = vector.load %arg7[%c0_26, %c0_27] : memref<32x8xf32, #tpu.memory_space<vmem>>, vector<32x8xf32>
    %cst_28 = arith.constant dense<0.000000e+00> : vector<2x8xf32>
    %51 = tpu.matmul %26, %50, %cst_28 {dimension_numbers = #tpu.dot_dimension_numbers<[1], [0], [0], [1], [0, 0, 1, 1], [], []>} : vector<2x32xf32>, vector<32x8xf32>, vector<2x8xf32> -> vector<2x8xf32>
    %c0_29 = arith.constant 0 : index
    %c0_30 = arith.constant 0 : index
    %52 = vector.load %arg8[%c0_29, %c0_30] : memref<1x8xf32, #tpu.memory_space<vmem>>, vector<1x8xf32>
    %53 = vector.broadcast %52 : vector<1x8xf32> to vector<2x8xf32>
    %54 = arith.addf %51, %53 : vector<2x8xf32>
    %cst_31 = arith.constant dense<0.000000e+00> : vector<8xf32>
    %55 = vector.multi_reduction <add>, %54, %cst_31 [0] : vector<2x8xf32> to vector<8xf32>
    %56 = vector.shape_cast %55 : vector<8xf32> to vector<1x8xf32>
    %cst_32 = arith.constant 2.000000e+00 : f32
    %57 = vector.broadcast %cst_32 : f32 to vector<1x8xf32>
    %58 = arith.divf %56, %57 : vector<1x8xf32>
    %59 = vector.broadcast %58 : vector<1x8xf32> to vector<2x8xf32>
    %60 = arith.subf %54, %59 : vector<2x8xf32>
    %61 = arith.mulf %60, %60 : vector<2x8xf32>
    %cst_33 = arith.constant dense<0.000000e+00> : vector<8xf32>
    %62 = vector.multi_reduction <add>, %61, %cst_33 [0] : vector<2x8xf32> to vector<8xf32>
    %63 = vector.shape_cast %62 : vector<8xf32> to vector<1x8xf32>
    %cst_34 = arith.constant 2.000000e+00 : f32
    %64 = vector.broadcast %cst_34 : f32 to vector<1x8xf32>
    %65 = arith.divf %63, %64 : vector<1x8xf32>
    %66 = vector.broadcast %58 : vector<1x8xf32> to vector<2x8xf32>
    %67 = arith.subf %54, %66 : vector<2x8xf32>
    %cst_35 = arith.constant 9.99999974E-6 : f32
    %68 = vector.broadcast %cst_35 : f32 to vector<1x8xf32>
    %69 = arith.addf %65, %68 : vector<1x8xf32>
    %70 = math.rsqrt %69 : vector<1x8xf32>
    %71 = vector.broadcast %70 : vector<1x8xf32> to vector<2x8xf32>
    %72 = arith.mulf %67, %71 : vector<2x8xf32>
    %c0_36 = arith.constant 0 : index
    %c0_37 = arith.constant 0 : index
    %73 = vector.load %arg10[%c0_36, %c0_37] : memref<2x8xf32, #tpu.memory_space<vmem>>, vector<2x8xf32>
    %cst_38 = arith.constant 5.000000e-01 : f32
    %74 = vector.broadcast %cst_38 : f32 to vector<2x8xf32>
    %75 = arith.mulf %74, %72 : vector<2x8xf32>
    %76 = math.exp %75 : vector<2x8xf32>
    %77 = arith.mulf %73, %76 : vector<2x8xf32>
    %78 = arith.addf %77, %49 : vector<2x8xf32>
    %cst_39 = arith.constant dense<0xFF800000> : vector<2xf32>
    %79 = vector.multi_reduction <maximumf>, %78, %cst_39 [1] : vector<2x8xf32> to vector<2xf32>
    %80 = vector.shape_cast %79 : vector<2xf32> to vector<2x1xf32>
    %81 = vector.broadcast %80 : vector<2x1xf32> to vector<2x8xf32>
    %82 = arith.subf %78, %81 : vector<2x8xf32>
    %83 = math.exp %82 : vector<2x8xf32>
    %cst_40 = arith.constant dense<0.000000e+00> : vector<2xf32>
    %84 = vector.multi_reduction <add>, %83, %cst_40 [1] : vector<2x8xf32> to vector<2xf32>
    %85 = vector.shape_cast %84 : vector<2xf32> to vector<2x1xf32>
    %86 = tpu.reciprocal %85 {approx = true} : vector<2x1xf32> -> vector<2x1xf32>
    %87 = vector.broadcast %86 : vector<2x1xf32> to vector<2x8xf32>
    %88 = arith.mulf %83, %87 : vector<2x8xf32>
    %c0_41 = arith.constant 0 : index
    %c0_42 = arith.constant 0 : index
    %89 = vector.load %arg11[%c0_41, %c0_42] : memref<2x8xf32, #tpu.memory_space<vmem>>, vector<2x8xf32>
    tpu.vector_store %arg11[%c0_41, %c0_42], %88 {strides = array<i32>} : memref<2x8xf32, #tpu.memory_space<vmem>>, vector<2x8xf32>,
    %c0_43 = arith.constant 0 : index
    %c0_44 = arith.constant 0 : index
    %90 = vector.load %arg12[%c0_43, %c0_44] : memref<2x8xf32, #tpu.memory_space<vmem>>, vector<2x8xf32>
    tpu.vector_store %arg12[%c0_43, %c0_44], %49 {strides = array<i32>} : memref<2x8xf32, #tpu.memory_space<vmem>>, vector<2x8xf32>,
    %c0_45 = arith.constant 0 : index
    %c0_46 = arith.constant 0 : index
    %91 = vector.load %arg13[%c0_45, %c0_46] : memref<2x8xf32, #tpu.memory_space<vmem>>, vector<2x8xf32>
    tpu.vector_store %arg13[%c0_45, %c0_46], %72 {strides = array<i32>} : memref<2x8xf32, #tpu.memory_space<vmem>>, vector<2x8xf32>,
    return
  }
}

module attributes {stable_mosaic.version = 11 : i64} {
  func.func @_word_encoder_kernel(%arg0: memref<1x2x16xf32, #tpu.memory_space<vmem>>, %arg1: memref<16x32xf32, #tpu.memory_space<vmem>>, %arg2: memref<1x32xf32, #tpu.memory_space<vmem>>, %arg3: memref<32x32xf32, #tpu.memory_space<vmem>>, %arg4: memref<1x32xf32, #tpu.memory_space<vmem>>, %arg5: memref<32x8xf32, #tpu.memory_space<vmem>>, %arg6: memref<1x8xf32, #tpu.memory_space<vmem>>, %arg7: memref<1x2x32xf32, #tpu.memory_space<vmem>>, %arg8: memref<1x2x8xf32, #tpu.memory_space<vmem>>) attributes {dimension_semantics = [], scalar_prefetch = 0 : i64, scratch_operands = 0 : i64, tpu.core_type = #tpu.core_type<tc>} {
    %c0 = arith.constant 0 : index
    %c0_0 = arith.constant 0 : index
    %0 = vector.load %arg1[%c0, %c0_0] : memref<16x32xf32, #tpu.memory_space<vmem>>, vector<16x32xf32>
    %c0_1 = arith.constant 0 : index
    %c0_2 = arith.constant 0 : index
    %1 = vector.load %arg2[%c0_1, %c0_2] : memref<1x32xf32, #tpu.memory_space<vmem>>, vector<1x32xf32>
    %c0_3 = arith.constant 0 : index
    %c0_4 = arith.constant 0 : index
    %2 = vector.load %arg3[%c0_3, %c0_4] : memref<32x32xf32, #tpu.memory_space<vmem>>, vector<32x32xf32>
    %c0_5 = arith.constant 0 : index
    %c0_6 = arith.constant 0 : index
    %3 = vector.load %arg4[%c0_5, %c0_6] : memref<1x32xf32, #tpu.memory_space<vmem>>, vector<1x32xf32>
    %c0_7 = arith.constant 0 : index
    %c0_8 = arith.constant 0 : index
    %4 = vector.load %arg5[%c0_7, %c0_8] : memref<32x8xf32, #tpu.memory_space<vmem>>, vector<32x8xf32>
    %c0_9 = arith.constant 0 : index
    %c0_10 = arith.constant 0 : index
    %5 = vector.load %arg6[%c0_9, %c0_10] : memref<1x8xf32, #tpu.memory_space<vmem>>, vector<1x8xf32>
    %c0_11 = arith.constant 0 : index
    %c0_12 = arith.constant 0 : index
    %c0_13 = arith.constant 0 : index
    %6 = vector.load %arg0[%c0_11, %c0_12, %c0_13] : memref<1x2x16xf32, #tpu.memory_space<vmem>>, vector<1x2x16xf32>
    %7 = vector.shape_cast %6 : vector<1x2x16xf32> to vector<2x16xf32>
    %cst = arith.constant dense<0.000000e+00> : vector<2x32xf32>
    %8 = tpu.matmul %7, %0, %cst {dimension_numbers = #tpu.dot_dimension_numbers<[1], [0], [0], [1], [0, 0, 1, 1], [], []>} : vector<2x16xf32>, vector<16x32xf32>, vector<2x32xf32> -> vector<2x32xf32>
    %9 = vector.broadcast %1 : vector<1x32xf32> to vector<2x32xf32>
    %10 = arith.addf %8, %9 : vector<2x32xf32>
    %cst_14 = arith.constant 2.000000e+01 : f32
    %11 = vector.broadcast %cst_14 : f32 to vector<2x32xf32>
    %12 = arith.cmpf ogt, %10, %11 : vector<2x32xf32>
    %cst_15 = arith.constant 2.000000e+01 : f32
    %13 = vector.broadcast %cst_15 : f32 to vector<2x32xf32>
    %14 = arith.minimumf %10, %13 : vector<2x32xf32>
    %15 = math.exp %14 : vector<2x32xf32>
    %16 = math.log1p %15 : vector<2x32xf32>
    %17 = arith.select %12, %10, %16 : vector<2x32xi1>, vector<2x32xf32>
    %cst_16 = arith.constant dense<0.000000e+00> : vector<2x32xf32>
    %18 = tpu.matmul %17, %2, %cst_16 {dimension_numbers = #tpu.dot_dimension_numbers<[1], [0], [0], [1], [0, 0, 1, 1], [], []>} : vector<2x32xf32>, vector<32x32xf32>, vector<2x32xf32> -> vector<2x32xf32>
    %19 = vector.broadcast %3 : vector<1x32xf32> to vector<2x32xf32>
    %20 = arith.addf %18, %19 : vector<2x32xf32>
    %cst_17 = arith.constant 2.000000e+01 : f32
    %21 = vector.broadcast %cst_17 : f32 to vector<2x32xf32>
    %22 = arith.cmpf ogt, %20, %21 : vector<2x32xf32>
    %cst_18 = arith.constant 2.000000e+01 : f32
    %23 = vector.broadcast %cst_18 : f32 to vector<2x32xf32>
    %24 = arith.minimumf %20, %23 : vector<2x32xf32>
    %25 = math.exp %24 : vector<2x32xf32>
    %26 = math.log1p %25 : vector<2x32xf32>
    %27 = arith.select %22, %20, %26 : vector<2x32xi1>, vector<2x32xf32>
    %cst_19 = arith.constant dense<0.000000e+00> : vector<32xf32>
    %28 = vector.multi_reduction <add>, %27, %cst_19 [0] : vector<2x32xf32> to vector<32xf32>
    %29 = vector.shape_cast %28 : vector<32xf32> to vector<1x32xf32>
    %cst_20 = arith.constant 2.000000e+00 : f32
    %30 = vector.broadcast %cst_20 : f32 to vector<1x32xf32>
    %31 = arith.divf %29, %30 : vector<1x32xf32>
    %32 = vector.broadcast %31 : vector<1x32xf32> to vector<2x32xf32>
    %33 = arith.subf %27, %32 : vector<2x32xf32>
    %34 = arith.mulf %33, %33 : vector<2x32xf32>
    %cst_21 = arith.constant dense<0.000000e+00> : vector<32xf32>
    %35 = vector.multi_reduction <add>, %34, %cst_21 [0] : vector<2x32xf32> to vector<32xf32>
    %36 = vector.shape_cast %35 : vector<32xf32> to vector<1x32xf32>
    %cst_22 = arith.constant 2.000000e+00 : f32
    %37 = vector.broadcast %cst_22 : f32 to vector<1x32xf32>
    %38 = arith.divf %36, %37 : vector<1x32xf32>
    %39 = vector.broadcast %31 : vector<1x32xf32> to vector<2x32xf32>
    %40 = arith.subf %27, %39 : vector<2x32xf32>
    %cst_23 = arith.constant 9.99999974E-6 : f32
    %41 = vector.broadcast %cst_23 : f32 to vector<1x32xf32>
    %42 = arith.addf %38, %41 : vector<1x32xf32>
    %43 = math.rsqrt %42 : vector<1x32xf32>
    %44 = vector.broadcast %43 : vector<1x32xf32> to vector<2x32xf32>
    %45 = arith.mulf %40, %44 : vector<2x32xf32>
    %c0_24 = arith.constant 0 : index
    %c0_25 = arith.constant 0 : index
    %c0_26 = arith.constant 0 : index
    %46 = vector.load %arg7[%c0_24, %c0_25, %c0_26] : memref<1x2x32xf32, #tpu.memory_space<vmem>>, vector<1x2x32xf32>
    %47 = vector.shape_cast %46 : vector<1x2x32xf32> to vector<2x32xf32>
    %48 = arith.mulf %45, %47 : vector<2x32xf32>
    %cst_27 = arith.constant dense<0.000000e+00> : vector<2x8xf32>
    %49 = tpu.matmul %48, %4, %cst_27 {dimension_numbers = #tpu.dot_dimension_numbers<[1], [0], [0], [1], [0, 0, 1, 1], [], []>} : vector<2x32xf32>, vector<32x8xf32>, vector<2x8xf32> -> vector<2x8xf32>
    %50 = vector.broadcast %5 : vector<1x8xf32> to vector<2x8xf32>
    %51 = arith.addf %49, %50 : vector<2x8xf32>
    %cst_28 = arith.constant 2.000000e+01 : f32
    %52 = vector.broadcast %cst_28 : f32 to vector<2x8xf32>
    %53 = arith.cmpf ogt, %51, %52 : vector<2x8xf32>
    %cst_29 = arith.constant 2.000000e+01 : f32
    %54 = vector.broadcast %cst_29 : f32 to vector<2x8xf32>
    %55 = arith.minimumf %51, %54 : vector<2x8xf32>
    %56 = math.exp %55 : vector<2x8xf32>
    %57 = math.log1p %56 : vector<2x8xf32>
    %58 = arith.select %53, %51, %57 : vector<2x8xi1>, vector<2x8xf32>
    %cst_30 = arith.constant dense<0.000000e+00> : vector<8xf32>
    %59 = vector.multi_reduction <add>, %58, %cst_30 [0] : vector<2x8xf32> to vector<8xf32>
    %60 = vector.shape_cast %59 : vector<8xf32> to vector<1x8xf32>
    %cst_31 = arith.constant 2.000000e+00 : f32
    %61 = vector.broadcast %cst_31 : f32 to vector<1x8xf32>
    %62 = arith.divf %60, %61 : vector<1x8xf32>
    %63 = vector.broadcast %62 : vector<1x8xf32> to vector<2x8xf32>
    %64 = arith.subf %58, %63 : vector<2x8xf32>
    %65 = arith.mulf %64, %64 : vector<2x8xf32>
    %cst_32 = arith.constant dense<0.000000e+00> : vector<8xf32>
    %66 = vector.multi_reduction <add>, %65, %cst_32 [0] : vector<2x8xf32> to vector<8xf32>
    %67 = vector.shape_cast %66 : vector<8xf32> to vector<1x8xf32>
    %cst_33 = arith.constant 2.000000e+00 : f32
    %68 = vector.broadcast %cst_33 : f32 to vector<1x8xf32>
    %69 = arith.divf %67, %68 : vector<1x8xf32>
    %70 = vector.broadcast %62 : vector<1x8xf32> to vector<2x8xf32>
    %71 = arith.subf %58, %70 : vector<2x8xf32>
    %cst_34 = arith.constant 9.99999974E-6 : f32
    %72 = vector.broadcast %cst_34 : f32 to vector<1x8xf32>
    %73 = arith.addf %69, %72 : vector<1x8xf32>
    %74 = math.rsqrt %73 : vector<1x8xf32>
    %75 = vector.broadcast %74 : vector<1x8xf32> to vector<2x8xf32>
    %76 = arith.mulf %71, %75 : vector<2x8xf32>
    %cst_35 = arith.constant dense<0xFF800000> : vector<2xf32>
    %77 = vector.multi_reduction <maximumf>, %76, %cst_35 [1] : vector<2x8xf32> to vector<2xf32>
    %78 = vector.shape_cast %77 : vector<2xf32> to vector<2x1xf32>
    %79 = vector.broadcast %78 : vector<2x1xf32> to vector<2x8xf32>
    %80 = arith.subf %76, %79 : vector<2x8xf32>
    %81 = math.exp %80 : vector<2x8xf32>
    %cst_36 = arith.constant dense<0.000000e+00> : vector<2xf32>
    %82 = vector.multi_reduction <add>, %81, %cst_36 [1] : vector<2x8xf32> to vector<2xf32>
    %83 = vector.shape_cast %82 : vector<2xf32> to vector<2x1xf32>
    %84 = tpu.reciprocal %83 {approx = true} : vector<2x1xf32> -> vector<2x1xf32>
    %85 = vector.broadcast %84 : vector<2x1xf32> to vector<2x8xf32>
    %86 = arith.mulf %81, %85 : vector<2x8xf32>
    %c0_37 = arith.constant 0 : index
    %c0_38 = arith.constant 0 : index
    %c0_39 = arith.constant 0 : index
    %87 = vector.load %arg8[%c0_37, %c0_38, %c0_39] : memref<1x2x8xf32, #tpu.memory_space<vmem>>, vector<1x2x8xf32>
    %88 = vector.shape_cast %87 : vector<1x2x8xf32> to vector<2x8xf32>
    %89 = vector.shape_cast %86 : vector<2x8xf32> to vector<1x2x8xf32>
    tpu.vector_store %arg8[%c0_37, %c0_38, %c0_39], %89 {strides = array<i32>} : memref<1x2x8xf32, #tpu.memory_space<vmem>>, vector<1x2x8xf32>,
    return
  }
}

module attributes {stable_mosaic.version = 11 : i64} {
  func.func @_word_encoder_kernel(%arg0: memref<2x8x16xf32, #tpu.memory_space<vmem>>, %arg1: memref<16x32xf32, #tpu.memory_space<vmem>>, %arg2: memref<1x32xf32, #tpu.memory_space<vmem>>, %arg3: memref<32x32xf32, #tpu.memory_space<vmem>>, %arg4: memref<1x32xf32, #tpu.memory_space<vmem>>, %arg5: memref<32x8xf32, #tpu.memory_space<vmem>>, %arg6: memref<1x8xf32, #tpu.memory_space<vmem>>, %arg7: memref<2x8x32xf32, #tpu.memory_space<vmem>>, %arg8: memref<2x8x8xf32, #tpu.memory_space<vmem>>) attributes {dimension_semantics = [], scalar_prefetch = 0 : i64, scratch_operands = 0 : i64, tpu.core_type = #tpu.core_type<tc>} {
    %c0 = arith.constant 0 : index
    %c0_0 = arith.constant 0 : index
    %0 = vector.load %arg1[%c0, %c0_0] : memref<16x32xf32, #tpu.memory_space<vmem>>, vector<16x32xf32>
    %c0_1 = arith.constant 0 : index
    %c0_2 = arith.constant 0 : index
    %1 = vector.load %arg2[%c0_1, %c0_2] : memref<1x32xf32, #tpu.memory_space<vmem>>, vector<1x32xf32>
    %c0_3 = arith.constant 0 : index
    %c0_4 = arith.constant 0 : index
    %2 = vector.load %arg3[%c0_3, %c0_4] : memref<32x32xf32, #tpu.memory_space<vmem>>, vector<32x32xf32>
    %c0_5 = arith.constant 0 : index
    %c0_6 = arith.constant 0 : index
    %3 = vector.load %arg4[%c0_5, %c0_6] : memref<1x32xf32, #tpu.memory_space<vmem>>, vector<1x32xf32>
    %c0_7 = arith.constant 0 : index
    %c0_8 = arith.constant 0 : index
    %4 = vector.load %arg5[%c0_7, %c0_8] : memref<32x8xf32, #tpu.memory_space<vmem>>, vector<32x8xf32>
    %c0_9 = arith.constant 0 : index
    %c0_10 = arith.constant 0 : index
    %5 = vector.load %arg6[%c0_9, %c0_10] : memref<1x8xf32, #tpu.memory_space<vmem>>, vector<1x8xf32>
    %c0_11 = arith.constant 0 : index
    %c0_12 = arith.constant 0 : index
    %c0_13 = arith.constant 0 : index
    %6 = vector.load %arg0[%c0_11, %c0_12, %c0_13] : memref<2x8x16xf32, #tpu.memory_space<vmem>>, vector<1x8x16xf32>
    %7 = vector.shape_cast %6 : vector<1x8x16xf32> to vector<8x16xf32>
    %cst = arith.constant dense<0.000000e+00> : vector<8x32xf32>
    %8 = tpu.matmul %7, %0, %cst {dimension_numbers = #tpu.dot_dimension_numbers<[1], [0], [0], [1], [0, 0, 1, 1], [], []>} : vector<8x16xf32>, vector<16x32xf32>, vector<8x32xf32> -> vector<8x32xf32>
    %9 = vector.broadcast %1 : vector<1x32xf32> to vector<8x32xf32>
    %10 = arith.addf %8, %9 : vector<8x32xf32>
    %cst_14 = arith.constant 2.000000e+01 : f32
    %11 = vector.broadcast %cst_14 : f32 to vector<8x32xf32>
    %12 = arith.cmpf ogt, %10, %11 : vector<8x32xf32>
    %cst_15 = arith.constant 2.000000e+01 : f32
    %13 = vector.broadcast %cst_15 : f32 to vector<8x32xf32>
    %14 = arith.minimumf %10, %13 : vector<8x32xf32>
    %15 = math.exp %14 : vector<8x32xf32>
    %16 = math.log1p %15 : vector<8x32xf32>
    %17 = arith.select %12, %10, %16 : vector<8x32xi1>, vector<8x32xf32>
    %cst_16 = arith.constant dense<0.000000e+00> : vector<8x32xf32>
    %18 = tpu.matmul %17, %2, %cst_16 {dimension_numbers = #tpu.dot_dimension_numbers<[1], [0], [0], [1], [0, 0, 1, 1], [], []>} : vector<8x32xf32>, vector<32x32xf32>, vector<8x32xf32> -> vector<8x32xf32>
    %19 = vector.broadcast %3 : vector<1x32xf32> to vector<8x32xf32>
    %20 = arith.addf %18, %19 : vector<8x32xf32>
    %cst_17 = arith.constant 2.000000e+01 : f32
    %21 = vector.broadcast %cst_17 : f32 to vector<8x32xf32>
    %22 = arith.cmpf ogt, %20, %21 : vector<8x32xf32>
    %cst_18 = arith.constant 2.000000e+01 : f32
    %23 = vector.broadcast %cst_18 : f32 to vector<8x32xf32>
    %24 = arith.minimumf %20, %23 : vector<8x32xf32>
    %25 = math.exp %24 : vector<8x32xf32>
    %26 = math.log1p %25 : vector<8x32xf32>
    %27 = arith.select %22, %20, %26 : vector<8x32xi1>, vector<8x32xf32>
    %cst_19 = arith.constant dense<0.000000e+00> : vector<32xf32>
    %28 = vector.multi_reduction <add>, %27, %cst_19 [0] : vector<8x32xf32> to vector<32xf32>
    %29 = vector.shape_cast %28 : vector<32xf32> to vector<1x32xf32>
    %cst_20 = arith.constant 8.000000e+00 : f32
    %30 = vector.broadcast %cst_20 : f32 to vector<1x32xf32>
    %31 = arith.divf %29, %30 : vector<1x32xf32>
    %32 = vector.broadcast %31 : vector<1x32xf32> to vector<8x32xf32>
    %33 = arith.subf %27, %32 : vector<8x32xf32>
    %34 = arith.mulf %33, %33 : vector<8x32xf32>
    %cst_21 = arith.constant dense<0.000000e+00> : vector<32xf32>
    %35 = vector.multi_reduction <add>, %34, %cst_21 [0] : vector<8x32xf32> to vector<32xf32>
    %36 = vector.shape_cast %35 : vector<32xf32> to vector<1x32xf32>
    %cst_22 = arith.constant 8.000000e+00 : f32
    %37 = vector.broadcast %cst_22 : f32 to vector<1x32xf32>
    %38 = arith.divf %36, %37 : vector<1x32xf32>
    %39 = vector.broadcast %31 : vector<1x32xf32> to vector<8x32xf32>
    %40 = arith.subf %27, %39 : vector<8x32xf32>
    %cst_23 = arith.constant 9.99999974E-6 : f32
    %41 = vector.broadcast %cst_23 : f32 to vector<1x32xf32>
    %42 = arith.addf %38, %41 : vector<1x32xf32>
    %43 = math.rsqrt %42 : vector<1x32xf32>
    %44 = vector.broadcast %43 : vector<1x32xf32> to vector<8x32xf32>
    %45 = arith.mulf %40, %44 : vector<8x32xf32>
    %c0_24 = arith.constant 0 : index
    %c0_25 = arith.constant 0 : index
    %c0_26 = arith.constant 0 : index
    %46 = vector.load %arg7[%c0_24, %c0_25, %c0_26] : memref<2x8x32xf32, #tpu.memory_space<vmem>>, vector<1x8x32xf32>
    %47 = vector.shape_cast %46 : vector<1x8x32xf32> to vector<8x32xf32>
    %48 = arith.mulf %45, %47 : vector<8x32xf32>
    %cst_27 = arith.constant dense<0.000000e+00> : vector<8x8xf32>
    %49 = tpu.matmul %48, %4, %cst_27 {dimension_numbers = #tpu.dot_dimension_numbers<[1], [0], [0], [1], [0, 0, 1, 1], [], []>} : vector<8x32xf32>, vector<32x8xf32>, vector<8x8xf32> -> vector<8x8xf32>
    %50 = vector.broadcast %5 : vector<1x8xf32> to vector<8x8xf32>
    %51 = arith.addf %49, %50 : vector<8x8xf32>
    %cst_28 = arith.constant 2.000000e+01 : f32
    %52 = vector.broadcast %cst_28 : f32 to vector<8x8xf32>
    %53 = arith.cmpf ogt, %51, %52 : vector<8x8xf32>
    %cst_29 = arith.constant 2.000000e+01 : f32
    %54 = vector.broadcast %cst_29 : f32 to vector<8x8xf32>
    %55 = arith.minimumf %51, %54 : vector<8x8xf32>
    %56 = math.exp %55 : vector<8x8xf32>
    %57 = math.log1p %56 : vector<8x8xf32>
    %58 = arith.select %53, %51, %57 : vector<8x8xi1>, vector<8x8xf32>
    %cst_30 = arith.constant dense<0.000000e+00> : vector<8xf32>
    %59 = vector.multi_reduction <add>, %58, %cst_30 [0] : vector<8x8xf32> to vector<8xf32>
    %60 = vector.shape_cast %59 : vector<8xf32> to vector<1x8xf32>
    %cst_31 = arith.constant 8.000000e+00 : f32
    %61 = vector.broadcast %cst_31 : f32 to vector<1x8xf32>
    %62 = arith.divf %60, %61 : vector<1x8xf32>
    %63 = vector.broadcast %62 : vector<1x8xf32> to vector<8x8xf32>
    %64 = arith.subf %58, %63 : vector<8x8xf32>
    %65 = arith.mulf %64, %64 : vector<8x8xf32>
    %cst_32 = arith.constant dense<0.000000e+00> : vector<8xf32>
    %66 = vector.multi_reduction <add>, %65, %cst_32 [0] : vector<8x8xf32> to vector<8xf32>
    %67 = vector.shape_cast %66 : vector<8xf32> to vector<1x8xf32>
    %cst_33 = arith.constant 8.000000e+00 : f32
    %68 = vector.broadcast %cst_33 : f32 to vector<1x8xf32>
    %69 = arith.divf %67, %68 : vector<1x8xf32>
    %70 = vector.broadcast %62 : vector<1x8xf32> to vector<8x8xf32>
    %71 = arith.subf %58, %70 : vector<8x8xf32>
    %cst_34 = arith.constant 9.99999974E-6 : f32
    %72 = vector.broadcast %cst_34 : f32 to vector<1x8xf32>
    %73 = arith.addf %69, %72 : vector<1x8xf32>
    %74 = math.rsqrt %73 : vector<1x8xf32>
    %75 = vector.broadcast %74 : vector<1x8xf32> to vector<8x8xf32>
    %76 = arith.mulf %71, %75 : vector<8x8xf32>
    %cst_35 = arith.constant dense<0xFF800000> : vector<8xf32>
    %77 = vector.multi_reduction <maximumf>, %76, %cst_35 [1] : vector<8x8xf32> to vector<8xf32>
    %78 = vector.shape_cast %77 : vector<8xf32> to vector<8x1xf32>
    %79 = vector.broadcast %78 : vector<8x1xf32> to vector<8x8xf32>
    %80 = arith.subf %76, %79 : vector<8x8xf32>
    %81 = math.exp %80 : vector<8x8xf32>
    %cst_36 = arith.constant dense<0.000000e+00> : vector<8xf32>
    %82 = vector.multi_reduction <add>, %81, %cst_36 [1] : vector<8x8xf32> to vector<8xf32>
    %83 = vector.shape_cast %82 : vector<8xf32> to vector<8x1xf32>
    %84 = tpu.reciprocal %83 {approx = true} : vector<8x1xf32> -> vector<8x1xf32>
    %85 = vector.broadcast %84 : vector<8x1xf32> to vector<8x8xf32>
    %86 = arith.mulf %81, %85 : vector<8x8xf32>
    %c0_37 = arith.constant 0 : index
    %c0_38 = arith.constant 0 : index
    %c0_39 = arith.constant 0 : index
    %87 = vector.load %arg8[%c0_37, %c0_38, %c0_39] : memref<2x8x8xf32, #tpu.memory_space<vmem>>, vector<1x8x8xf32>
    %88 = vector.shape_cast %87 : vector<1x8x8xf32> to vector<8x8xf32>
    %89 = vector.shape_cast %86 : vector<8x8xf32> to vector<1x8x8xf32>
    tpu.vector_store %arg8[%c0_37, %c0_38, %c0_39], %89 {strides = array<i32>} : memref<2x8x8xf32, #tpu.memory_space<vmem>>, vector<1x8x8xf32>,
    %c1 = arith.constant 1 : index
    %c0_40 = arith.constant 0 : index
    %c0_41 = arith.constant 0 : index
    %90 = vector.load %arg0[%c1, %c0_40, %c0_41] : memref<2x8x16xf32, #tpu.memory_space<vmem>>, vector<1x8x16xf32>
    %91 = vector.shape_cast %90 : vector<1x8x16xf32> to vector<8x16xf32>
    %cst_42 = arith.constant dense<0.000000e+00> : vector<8x32xf32>
    %92 = tpu.matmul %91, %0, %cst_42 {dimension_numbers = #tpu.dot_dimension_numbers<[1], [0], [0], [1], [0, 0, 1, 1], [], []>} : vector<8x16xf32>, vector<16x32xf32>, vector<8x32xf32> -> vector<8x32xf32>
    %93 = vector.broadcast %1 : vector<1x32xf32> to vector<8x32xf32>
    %94 = arith.addf %92, %93 : vector<8x32xf32>
    %cst_43 = arith.constant 2.000000e+01 : f32
    %95 = vector.broadcast %cst_43 : f32 to vector<8x32xf32>
    %96 = arith.cmpf ogt, %94, %95 : vector<8x32xf32>
    %cst_44 = arith.constant 2.000000e+01 : f32
    %97 = vector.broadcast %cst_44 : f32 to vector<8x32xf32>
    %98 = arith.minimumf %94, %97 : vector<8x32xf32>
    %99 = math.exp %98 : vector<8x32xf32>
    %100 = math.log1p %99 : vector<8x32xf32>
    %101 = arith.select %96, %94, %100 : vector<8x32xi1>, vector<8x32xf32>
    %cst_45 = arith.constant dense<0.000000e+00> : vector<8x32xf32>
    %102 = tpu.matmul %101, %2, %cst_45 {dimension_numbers = #tpu.dot_dimension_numbers<[1], [0], [0], [1], [0, 0, 1, 1], [], []>} : vector<8x32xf32>, vector<32x32xf32>, vector<8x32xf32> -> vector<8x32xf32>
    %103 = vector.broadcast %3 : vector<1x32xf32> to vector<8x32xf32>
    %104 = arith.addf %102, %103 : vector<8x32xf32>
    %cst_46 = arith.constant 2.000000e+01 : f32
    %105 = vector.broadcast %cst_46 : f32 to vector<8x32xf32>
    %106 = arith.cmpf ogt, %104, %105 : vector<8x32xf32>
    %cst_47 = arith.constant 2.000000e+01 : f32
    %107 = vector.broadcast %cst_47 : f32 to vector<8x32xf32>
    %108 = arith.minimumf %104, %107 : vector<8x32xf32>
    %109 = math.exp %108 : vector<8x32xf32>
    %110 = math.log1p %109 : vector<8x32xf32>
    %111 = arith.select %106, %104, %110 : vector<8x32xi1>, vector<8x32xf32>
    %cst_48 = arith.constant dense<0.000000e+00> : vector<32xf32>
    %112 = vector.multi_reduction <add>, %111, %cst_48 [0] : vector<8x32xf32> to vector<32xf32>
    %113 = vector.shape_cast %112 : vector<32xf32> to vector<1x32xf32>
    %cst_49 = arith.constant 8.000000e+00 : f32
    %114 = vector.broadcast %cst_49 : f32 to vector<1x32xf32>
    %115 = arith.divf %113, %114 : vector<1x32xf32>
    %116 = vector.broadcast %115 : vector<1x32xf32> to vector<8x32xf32>
    %117 = arith.subf %111, %116 : vector<8x32xf32>
    %118 = arith.mulf %117, %117 : vector<8x32xf32>
    %cst_50 = arith.constant dense<0.000000e+00> : vector<32xf32>
    %119 = vector.multi_reduction <add>, %118, %cst_50 [0] : vector<8x32xf32> to vector<32xf32>
    %120 = vector.shape_cast %119 : vector<32xf32> to vector<1x32xf32>
    %cst_51 = arith.constant 8.000000e+00 : f32
    %121 = vector.broadcast %cst_51 : f32 to vector<1x32xf32>
    %122 = arith.divf %120, %121 : vector<1x32xf32>
    %123 = vector.broadcast %115 : vector<1x32xf32> to vector<8x32xf32>
    %124 = arith.subf %111, %123 : vector<8x32xf32>
    %cst_52 = arith.constant 9.99999974E-6 : f32
    %125 = vector.broadcast %cst_52 : f32 to vector<1x32xf32>
    %126 = arith.addf %122, %125 : vector<1x32xf32>
    %127 = math.rsqrt %126 : vector<1x32xf32>
    %128 = vector.broadcast %127 : vector<1x32xf32> to vector<8x32xf32>
    %129 = arith.mulf %124, %128 : vector<8x32xf32>
    %c1_53 = arith.constant 1 : index
    %c0_54 = arith.constant 0 : index
    %c0_55 = arith.constant 0 : index
    %130 = vector.load %arg7[%c1_53, %c0_54, %c0_55] : memref<2x8x32xf32, #tpu.memory_space<vmem>>, vector<1x8x32xf32>
    %131 = vector.shape_cast %130 : vector<1x8x32xf32> to vector<8x32xf32>
    %132 = arith.mulf %129, %131 : vector<8x32xf32>
    %cst_56 = arith.constant dense<0.000000e+00> : vector<8x8xf32>
    %133 = tpu.matmul %132, %4, %cst_56 {dimension_numbers = #tpu.dot_dimension_numbers<[1], [0], [0], [1], [0, 0, 1, 1], [], []>} : vector<8x32xf32>, vector<32x8xf32>, vector<8x8xf32> -> vector<8x8xf32>
    %134 = vector.broadcast %5 : vector<1x8xf32> to vector<8x8xf32>
    %135 = arith.addf %133, %134 : vector<8x8xf32>
    %cst_57 = arith.constant 2.000000e+01 : f32
    %136 = vector.broadcast %cst_57 : f32 to vector<8x8xf32>
    %137 = arith.cmpf ogt, %135, %136 : vector<8x8xf32>
    %cst_58 = arith.constant 2.000000e+01 : f32
    %138 = vector.broadcast %cst_58 : f32 to vector<8x8xf32>
    %139 = arith.minimumf %135, %138 : vector<8x8xf32>
    %140 = math.exp %139 : vector<8x8xf32>
    %141 = math.log1p %140 : vector<8x8xf32>
    %142 = arith.select %137, %135, %141 : vector<8x8xi1>, vector<8x8xf32>
    %cst_59 = arith.constant dense<0.000000e+00> : vector<8xf32>
    %143 = vector.multi_reduction <add>, %142, %cst_59 [0] : vector<8x8xf32> to vector<8xf32>
    %144 = vector.shape_cast %143 : vector<8xf32> to vector<1x8xf32>
    %cst_60 = arith.constant 8.000000e+00 : f32
    %145 = vector.broadcast %cst_60 : f32 to vector<1x8xf32>
    %146 = arith.divf %144, %145 : vector<1x8xf32>
    %147 = vector.broadcast %146 : vector<1x8xf32> to vector<8x8xf32>
    %148 = arith.subf %142, %147 : vector<8x8xf32>
    %149 = arith.mulf %148, %148 : vector<8x8xf32>
    %cst_61 = arith.constant dense<0.000000e+00> : vector<8xf32>
    %150 = vector.multi_reduction <add>, %149, %cst_61 [0] : vector<8x8xf32> to vector<8xf32>
    %151 = vector.shape_cast %150 : vector<8xf32> to vector<1x8xf32>
    %cst_62 = arith.constant 8.000000e+00 : f32
    %152 = vector.broadcast %cst_62 : f32 to vector<1x8xf32>
    %153 = arith.divf %151, %152 : vector<1x8xf32>
    %154 = vector.broadcast %146 : vector<1x8xf32> to vector<8x8xf32>
    %155 = arith.subf %142, %154 : vector<8x8xf32>
    %cst_63 = arith.constant 9.99999974E-6 : f32
    %156 = vector.broadcast %cst_63 : f32 to vector<1x8xf32>
    %157 = arith.addf %153, %156 : vector<1x8xf32>
    %158 = math.rsqrt %157 : vector<1x8xf32>
    %159 = vector.broadcast %158 : vector<1x8xf32> to vector<8x8xf32>
    %160 = arith.mulf %155, %159 : vector<8x8xf32>
    %cst_64 = arith.constant dense<0xFF800000> : vector<8xf32>
    %161 = vector.multi_reduction <maximumf>, %160, %cst_64 [1] : vector<8x8xf32> to vector<8xf32>
    %162 = vector.shape_cast %161 : vector<8xf32> to vector<8x1xf32>
    %163 = vector.broadcast %162 : vector<8x1xf32> to vector<8x8xf32>
    %164 = arith.subf %160, %163 : vector<8x8xf32>
    %165 = math.exp %164 : vector<8x8xf32>
    %cst_65 = arith.constant dense<0.000000e+00> : vector<8xf32>
    %166 = vector.multi_reduction <add>, %165, %cst_65 [1] : vector<8x8xf32> to vector<8xf32>
    %167 = vector.shape_cast %166 : vector<8xf32> to vector<8x1xf32>
    %168 = tpu.reciprocal %167 {approx = true} : vector<8x1xf32> -> vector<8x1xf32>
    %169 = vector.broadcast %168 : vector<8x1xf32> to vector<8x8xf32>
    %170 = arith.mulf %165, %169 : vector<8x8xf32>
    %c1_66 = arith.constant 1 : index
    %c0_67 = arith.constant 0 : index
    %c0_68 = arith.constant 0 : index
    %171 = vector.load %arg8[%c1_66, %c0_67, %c0_68] : memref<2x8x8xf32, #tpu.memory_space<vmem>>, vector<1x8x8xf32>
    %172 = vector.shape_cast %171 : vector<1x8x8xf32> to vector<8x8xf32>
    %173 = vector.shape_cast %170 : vector<8x8xf32> to vector<1x8x8xf32>
    tpu.vector_store %arg8[%c1_66, %c0_67, %c0_68], %173 {strides = array<i32>} : memref<2x8x8xf32, #tpu.memory_space<vmem>>, vector<1x8x8xf32>,
    return
  }
}

module attributes {stable_mosaic.version = 11 : i64} {
  func.func @_losses_kernel(%arg0: memref<2x8x8xf32, #tpu.memory_space<vmem>>, %arg1: memref<2x8x8xf32, #tpu.memory_space<vmem>>, %arg2: memref<2x8x8xf32, #tpu.memory_space<vmem>>, %arg3: memref<2x8xf32, #tpu.memory_space<vmem>>, %arg4: memref<2x8xf32, #tpu.memory_space<vmem>>, %arg5: memref<2x8xf32, #tpu.memory_space<vmem>>, %arg6: memref<2x8xf32, #tpu.memory_space<vmem>>, %arg7: memref<2x8xf32, #tpu.memory_space<vmem>>, %arg8: memref<2x8xf32, #tpu.memory_space<vmem>>, %arg9: memref<2x1xf32, #tpu.memory_space<vmem>>, %arg10: memref<2x1xf32, #tpu.memory_space<vmem>>, %arg11: memref<2x1xf32, #tpu.memory_space<vmem>>, %arg12: memref<2x1xf32, #tpu.memory_space<vmem>>, %arg13: memref<2x1xf32, #tpu.memory_space<vmem>>) attributes {dimension_semantics = [], scalar_prefetch = 0 : i64, scratch_operands = 0 : i64, tpu.core_type = #tpu.core_type<tc>} {
    %c0 = arith.constant 0 : index
    %c0_0 = arith.constant 0 : index
    %0 = vector.load %arg3[%c0, %c0_0] : memref<2x8xf32, #tpu.memory_space<vmem>>, vector<2x8xf32>
    %c0_1 = arith.constant 0 : index
    %c0_2 = arith.constant 0 : index
    %1 = vector.load %arg4[%c0_1, %c0_2] : memref<2x8xf32, #tpu.memory_space<vmem>>, vector<2x8xf32>
    %c0_3 = arith.constant 0 : index
    %c0_4 = arith.constant 0 : index
    %2 = vector.load %arg5[%c0_3, %c0_4] : memref<2x8xf32, #tpu.memory_space<vmem>>, vector<2x8xf32>
    %c0_5 = arith.constant 0 : index
    %c0_6 = arith.constant 0 : index
    %3 = vector.load %arg6[%c0_5, %c0_6] : memref<2x8xf32, #tpu.memory_space<vmem>>, vector<2x8xf32>
    %c0_7 = arith.constant 0 : index
    %c0_8 = arith.constant 0 : index
    %4 = vector.load %arg7[%c0_7, %c0_8] : memref<2x8xf32, #tpu.memory_space<vmem>>, vector<2x8xf32>
    %c0_9 = arith.constant 0 : index
    %c0_10 = arith.constant 0 : index
    %5 = vector.load %arg8[%c0_9, %c0_10] : memref<2x8xf32, #tpu.memory_space<vmem>>, vector<2x8xf32>
    %cst = arith.constant 0.000000e+00 : f32
    %6 = vector.broadcast %cst : f32 to vector<2x8xf32>
    %7 = arith.cmpf ogt, %0, %6 : vector<2x8xf32>
    %8 = arith.divf %0, %1 : vector<2x8xf32>
    %9 = math.log %8 : vector<2x8xf32>
    %10 = arith.mulf %0, %9 : vector<2x8xf32>
    %cst_11 = arith.constant 0.000000e+00 : f32
    %11 = vector.broadcast %cst_11 : f32 to vector<2x8xf32>
    %12 = arith.select %7, %10, %11 : vector<2x8xi1>, vector<2x8xf32>
    %cst_12 = arith.constant dense<0.000000e+00> : vector<2xf32>
    %13 = vector.multi_reduction <add>, %12, %cst_12 [1] : vector<2x8xf32> to vector<2xf32>
    %14 = vector.shape_cast %13 : vector<2xf32> to vector<2x1xf32>
    %cst_13 = arith.constant 1.000000e+00 : f32
    %15 = vector.broadcast %cst_13 : f32 to vector<2x1xf32>
    %16 = arith.mulf %15, %14 : vector<2x1xf32>
    %c0_14 = arith.constant 0 : index
    %c0_15 = arith.constant 0 : index
    %17 = vector.load %arg11[%c0_14, %c0_15] : memref<2x1xf32, #tpu.memory_space<vmem>>, vector<2x1xf32>
    tpu.vector_store %arg11[%c0_14, %c0_15], %16 {strides = array<i32>} : memref<2x1xf32, #tpu.memory_space<vmem>>, vector<2x1xf32>,
    %18 = math.exp %3 : vector<2x8xf32>
    %cst_16 = arith.constant 1.00502515 : f32
    %19 = vector.broadcast %cst_16 : f32 to vector<2x8xf32>
    %20 = arith.mulf %18, %19 : vector<2x8xf32>
    %21 = arith.mulf %2, %2 : vector<2x8xf32>
    %cst_17 = arith.constant 1.00502515 : f32
    %22 = vector.broadcast %cst_17 : f32 to vector<2x8xf32>
    %23 = arith.mulf %21, %22 : vector<2x8xf32>
    %cst_18 = arith.constant -0.00501254201 : f32
    %24 = vector.broadcast %cst_18 : f32 to vector<2x8xf32>
    %25 = arith.subf %24, %3 : vector<2x8xf32>
    %26 = arith.addf %20, %23 : vector<2x8xf32>
    %27 = arith.addf %26, %25 : vector<2x8xf32>
    %cst_19 = arith.constant dense<0.000000e+00> : vector<2xf32>
    %28 = vector.multi_reduction <add>, %27, %cst_19 [1] : vector<2x8xf32> to vector<2xf32>
    %29 = vector.shape_cast %28 : vector<2xf32> to vector<2x1xf32>
    %cst_20 = arith.constant 8.000000e+00 : f32
    %30 = vector.broadcast %cst_20 : f32 to vector<2x1xf32>
    %31 = arith.subf %29, %30 : vector<2x1xf32>
    %cst_21 = arith.constant 5.000000e-01 : f32
    %32 = vector.broadcast %cst_21 : f32 to vector<2x1xf32>
    %33 = arith.mulf %32, %31 : vector<2x1xf32>
    %cst_22 = arith.constant 0.000000e+00 : f32
    %34 = vector.broadcast %cst_22 : f32 to vector<2x8xf32>
    %35 = arith.cmpf ogt, %0, %34 : vector<2x8xf32>
    %36 = arith.divf %0, %4 : vector<2x8xf32>
    %37 = math.log %36 : vector<2x8xf32>
    %38 = arith.mulf %0, %37 : vector<2x8xf32>
    %cst_23 = arith.constant 0.000000e+00 : f32
    %39 = vector.broadcast %cst_23 : f32 to vector<2x8xf32>
    %40 = arith.select %35, %38, %39 : vector<2x8xi1>, vector<2x8xf32>
    %cst_24 = arith.constant 0.000000e+00 : f32
    %41 = vector.broadcast %cst_24 : f32 to vector<2x8xf32>
    %42 = arith.cmpf ogt, %4, %41 : vector<2x8xf32>
    %43 = arith.divf %4, %0 : vector<2x8xf32>
    %44 = math.log %43 : vector<2x8xf32>
    %45 = arith.mulf %4, %44 : vector<2x8xf32>
    %cst_25 = arith.constant 0.000000e+00 : f32
    %46 = vector.broadcast %cst_25 : f32 to vector<2x8xf32>
    %47 = arith.select %42, %45, %46 : vector<2x8xi1>, vector<2x8xf32>
    %48 = arith.addf %40, %47 : vector<2x8xf32>
    %cst_26 = arith.constant 0.000000e+00 : f32
    %49 = vector.broadcast %cst_26 : f32 to vector<2x8xf32>
    %50 = arith.cmpf ogt, %0, %49 : vector<2x8xf32>
    %51 = arith.divf %0, %5 : vector<2x8xf32>
    %52 = math.log %51 : vector<2x8xf32>
    %53 = arith.mulf %0, %52 : vector<2x8xf32>
    %cst_27 = arith.constant 0.000000e+00 : f32
    %54 = vector.broadcast %cst_27 : f32 to vector<2x8xf32>
    %55 = arith.select %50, %53, %54 : vector<2x8xi1>, vector<2x8xf32>
    %56 = arith.addf %48, %55 : vector<2x8xf32>
    %cst_28 = arith.constant 0.000000e+00 : f32
    %57 = vector.broadcast %cst_28 : f32 to vector<2x8xf32>
    %58 = arith.cmpf ogt, %5, %57 : vector<2x8xf32>
    %59 = arith.divf %5, %0 : vector<2x8xf32>
    %60 = math.log %59 : vector<2x8xf32>
    %61 = arith.mulf %5, %60 : vector<2x8xf32>
    %cst_29 = arith.constant 0.000000e+00 : f32
    %62 = vector.broadcast %cst_29 : f32 to vector<2x8xf32>
    %63 = arith.select %58, %61, %62 : vector<2x8xi1>, vector<2x8xf32>
    %64 = arith.addf %56, %63 : vector<2x8xf32>
    %cst_30 = arith.constant dense<0.000000e+00> : vector<2xf32>
    %65 = vector.multi_reduction <add>, %64, %cst_30 [1] : vector<2x8xf32> to vector<2xf32>
    %66 = vector.shape_cast %65 : vector<2xf32> to vector<2x1xf32>
    %cst_31 = arith.constant 1.000000e+00 : f32
    %67 = vector.broadcast %cst_31 : f32 to vector<2x1xf32>
    %68 = arith.mulf %67, %66 : vector<2x1xf32>
    %c0_32 = arith.constant 0 : index
    %c0_33 = arith.constant 0 : index
    %69 = vector.load %arg13[%c0_32, %c0_33] : memref<2x1xf32, #tpu.memory_space<vmem>>, vector<2x1xf32>
    tpu.vector_store %arg13[%c0_32, %c0_33], %68 {strides = array<i32>} : memref<2x1xf32, #tpu.memory_space<vmem>>, vector<2x1xf32>,
    %c0_34 = arith.constant 0 : index
    %c0_35 = arith.constant 0 : index
    %c0_36 = arith.constant 0 : index
    %70 = vector.load %arg0[%c0_34, %c0_35, %c0_36] : memref<2x8x8xf32, #tpu.memory_space<vmem>>, vector<1x8x8xf32>
    %71 = vector.shape_cast %70 : vector<1x8x8xf32> to vector<8x8xf32>
    %c0_37 = arith.constant 0 : index
    %c0_38 = arith.constant 0 : index
    %c0_39 = arith.constant 0 : index
    %72 = vector.load %arg1[%c0_37, %c0_38, %c0_39] : memref<2x8x8xf32, #tpu.memory_space<vmem>>, vector<1x8x8xf32>
    %73 = vector.shape_cast %72 : vector<1x8x8xf32> to vector<8x8xf32>
    %c0_40 = arith.constant 0 : index
    %c0_41 = arith.constant 0 : index
    %c0_42 = arith.constant 0 : index
    %74 = vector.load %arg2[%c0_40, %c0_41, %c0_42] : memref<2x8x8xf32, #tpu.memory_space<vmem>>, vector<1x8x8xf32>
    %75 = vector.shape_cast %74 : vector<1x8x8xf32> to vector<8x8xf32>
    %76 = vector.extract_strided_slice %0 {offsets = [0, 0], sizes = [1, 8], strides = [1, 1]} : vector<2x8xf32> to vector<1x8xf32>
    %77 = vector.broadcast %76 : vector<1x8xf32> to vector<8x8xf32>
    %78 = arith.mulf %71, %77 : vector<8x8xf32>
    %cst_43 = arith.constant dense<0.000000e+00> : vector<8xf32>
    %79 = vector.multi_reduction <add>, %78, %cst_43 [1] : vector<8x8xf32> to vector<8xf32>
    %80 = vector.shape_cast %79 : vector<8xf32> to vector<8x1xf32>
    %81 = tpu.reciprocal %80 {approx = true} : vector<8x1xf32> -> vector<8x1xf32>
    %82 = vector.broadcast %81 : vector<8x1xf32> to vector<8x8xf32>
    %83 = arith.mulf %78, %82 : vector<8x8xf32>
    %84 = arith.mulf %83, %73 : vector<8x8xf32>
    %cst_44 = arith.constant dense<0.000000e+00> : vector<8xf32>
    %85 = vector.multi_reduction <add>, %84, %cst_44 [1] : vector<8x8xf32> to vector<8xf32>
    %86 = vector.shape_cast %85 : vector<8xf32> to vector<8x1xf32>
    %cst_45 = arith.constant dense<0.000000e+00> : vector<1xf32>
    %87 = vector.multi_reduction <add>, %86, %cst_45 [0] : vector<8x1xf32> to vector<1xf32>
    %88 = vector.shape_cast %87 : vector<1xf32> to vector<1x1xf32>
    %cst_46 = arith.constant 0.000000e+00 : f32
    %89 = vector.broadcast %cst_46 : f32 to vector<1x1xf32>
    %90 = arith.subf %89, %88 : vector<1x1xf32>
    %cst_47 = arith.constant 0.000000e+00 : f32
    %91 = vector.broadcast %cst_47 : f32 to vector<8x8xf32>
    %92 = arith.cmpf ogt, %83, %91 : vector<8x8xf32>
    %93 = vector.broadcast %76 : vector<1x8xf32> to vector<8x8xf32>
    %94 = arith.divf %83, %93 : vector<8x8xf32>
    %95 = math.log %94 : vector<8x8xf32>
    %96 = arith.mulf %83, %95 : vector<8x8xf32>
    %cst_48 = arith.constant 0.000000e+00 : f32
    %97 = vector.broadcast %cst_48 : f32 to vector<8x8xf32>
    %98 = arith.select %92, %96, %97 : vector<8x8xi1>, vector<8x8xf32>
    %cst_49 = arith.constant dense<0.000000e+00> : vector<8xf32>
    %99 = vector.multi_reduction <add>, %98, %cst_49 [1] : vector<8x8xf32> to vector<8xf32>
    %100 = vector.shape_cast %99 : vector<8xf32> to vector<8x1xf32>
    %cst_50 = arith.constant dense<0.000000e+00> : vector<1xf32>
    %101 = vector.multi_reduction <add>, %100, %cst_50 [0] : vector<8x1xf32> to vector<1xf32>
    %102 = vector.shape_cast %101 : vector<1xf32> to vector<1x1xf32>
    %cst_51 = arith.constant 0.000000e+00 : f32
    %103 = vector.broadcast %cst_51 : f32 to vector<8x8xf32>
    %104 = arith.cmpf ogt, %75, %103 : vector<8x8xf32>
    %105 = arith.divf %75, %71 : vector<8x8xf32>
    %106 = math.log %105 : vector<8x8xf32>
    %107 = arith.mulf %75, %106 : vector<8x8xf32>
    %cst_52 = arith.constant 0.000000e+00 : f32
    %108 = vector.broadcast %cst_52 : f32 to vector<8x8xf32>
    %109 = arith.select %104, %107, %108 : vector<8x8xi1>, vector<8x8xf32>
    %cst_53 = arith.constant dense<0.000000e+00> : vector<8xf32>
    %110 = vector.multi_reduction <add>, %109, %cst_53 [1] : vector<8x8xf32> to vector<8xf32>
    %111 = vector.shape_cast %110 : vector<8xf32> to vector<8x1xf32>
    %cst_54 = arith.constant dense<0.000000e+00> : vector<1xf32>
    %112 = vector.multi_reduction <add>, %111, %cst_54 [0] : vector<8x1xf32> to vector<1xf32>
    %113 = vector.shape_cast %112 : vector<1xf32> to vector<1x1xf32>
    %114 = vector.extract_strided_slice %33 {offsets = [0, 0], sizes = [1, 1], strides = [1, 1]} : vector<2x1xf32> to vector<1x1xf32>
    %c0_55 = arith.constant 0 : index
    %c0_56 = arith.constant 0 : index
    %115 = vector.load %arg9[%c0_55, %c0_56] : memref<2x1xf32, #tpu.memory_space<vmem>>, vector<1x1xf32>
    tpu.vector_store %arg9[%c0_55, %c0_56], %90 {strides = array<i32>} : memref<2x1xf32, #tpu.memory_space<vmem>>, vector<1x1xf32>,
    %116 = arith.addf %102, %114 : vector<1x1xf32>
    %cst_57 = arith.constant 1.000000e+00 : f32
    %117 = vector.broadcast %cst_57 : f32 to vector<1x1xf32>
    %118 = arith.mulf %117, %116 : vector<1x1xf32>
    %c0_58 = arith.constant 0 : index
    %c0_59 = arith.constant 0 : index
    %119 = vector.load %arg10[%c0_58, %c0_59] : memref<2x1xf32, #tpu.memory_space<vmem>>, vector<1x1xf32>
    tpu.vector_store %arg10[%c0_58, %c0_59], %118 {strides = array<i32>} : memref<2x1xf32, #tpu.memory_space<vmem>>, vector<1x1xf32>,
    %cst_60 = arith.constant 1.000000e+00 : f32
    %120 = vector.broadcast %cst_60 : f32 to vector<1x1xf32>
    %121 = arith.mulf %120, %113 : vector<1x1xf32>
    %c0_61 = arith.constant 0 : index
    %c0_62 = arith.constant 0 : index
    %122 = vector.load %arg12[%c0_61, %c0_62] : memref<2x1xf32, #tpu.memory_space<vmem>>, vector<1x1xf32>
    tpu.vector_store %arg12[%c0_61, %c0_62], %121 {strides = array<i32>} : memref<2x1xf32, #tpu.memory_space<vmem>>, vector<1x1xf32>,
    %c1 = arith.constant 1 : index
    %c0_63 = arith.constant 0 : index
    %c0_64 = arith.constant 0 : index
    %123 = vector.load %arg0[%c1, %c0_63, %c0_64] : memref<2x8x8xf32, #tpu.memory_space<vmem>>, vector<1x8x8xf32>
    %124 = vector.shape_cast %123 : vector<1x8x8xf32> to vector<8x8xf32>
    %c1_65 = arith.constant 1 : index
    %c0_66 = arith.constant 0 : index
    %c0_67 = arith.constant 0 : index
    %125 = vector.load %arg1[%c1_65, %c0_66, %c0_67] : memref<2x8x8xf32, #tpu.memory_space<vmem>>, vector<1x8x8xf32>
    %126 = vector.shape_cast %125 : vector<1x8x8xf32> to vector<8x8xf32>
    %c1_68 = arith.constant 1 : index
    %c0_69 = arith.constant 0 : index
    %c0_70 = arith.constant 0 : index
    %127 = vector.load %arg2[%c1_68, %c0_69, %c0_70] : memref<2x8x8xf32, #tpu.memory_space<vmem>>, vector<1x8x8xf32>
    %128 = vector.shape_cast %127 : vector<1x8x8xf32> to vector<8x8xf32>
    %129 = vector.extract_strided_slice %0 {offsets = [1, 0], sizes = [1, 8], strides = [1, 1]} : vector<2x8xf32> to vector<1x8xf32>
    %130 = vector.broadcast %129 : vector<1x8xf32> to vector<8x8xf32>
    %131 = arith.mulf %124, %130 : vector<8x8xf32>
    %cst_71 = arith.constant dense<0.000000e+00> : vector<8xf32>
    %132 = vector.multi_reduction <add>, %131, %cst_71 [1] : vector<8x8xf32> to vector<8xf32>
    %133 = vector.shape_cast %132 : vector<8xf32> to vector<8x1xf32>
    %134 = tpu.reciprocal %133 {approx = true} : vector<8x1xf32> -> vector<8x1xf32>
    %135 = vector.broadcast %134 : vector<8x1xf32> to vector<8x8xf32>
    %136 = arith.mulf %131, %135 : vector<8x8xf32>
    %137 = arith.mulf %136, %126 : vector<8x8xf32>
    %cst_72 = arith.constant dense<0.000000e+00> : vector<8xf32>
    %138 = vector.multi_reduction <add>, %137, %cst_72 [1] : vector<8x8xf32> to vector<8xf32>
    %139 = vector.shape_cast %138 : vector<8xf32> to vector<8x1xf32>
    %cst_73 = arith.constant dense<0.000000e+00> : vector<1xf32>
    %140 = vector.multi_reduction <add>, %139, %cst_73 [0] : vector<8x1xf32> to vector<1xf32>
    %141 = vector.shape_cast %140 : vector<1xf32> to vector<1x1xf32>
    %cst_74 = arith.constant 0.000000e+00 : f32
    %142 = vector.broadcast %cst_74 : f32 to vector<1x1xf32>
    %143 = arith.subf %142, %141 : vector<1x1xf32>
    %cst_75 = arith.constant 0.000000e+00 : f32
    %144 = vector.broadcast %cst_75 : f32 to vector<8x8xf32>
    %145 = arith.cmpf ogt, %136, %144 : vector<8x8xf32>
    %146 = vector.broadcast %129 : vector<1x8xf32> to vector<8x8xf32>
    %147 = arith.divf %136, %146 : vector<8x8xf32>
    %148 = math.log %147 : vector<8x8xf32>
    %149 = arith.mulf %136, %148 : vector<8x8xf32>
    %cst_76 = arith.constant 0.000000e+00 : f32
    %150 = vector.broadcast %cst_76 : f32 to vector<8x8xf32>
    %151 = arith.select %145, %149, %150 : vector<8x8xi1>, vector<8x8xf32>
    %cst_77 = arith.constant dense<0.000000e+00> : vector<8xf32>
    %152 = vector.multi_reduction <add>, %151, %cst_77 [1] : vector<8x8xf32> to vector<8xf32>
    %153 = vector.shape_cast %152 : vector<8xf32> to vector<8x1xf32>
    %cst_78 = arith.constant dense<0.000000e+00> : vector<1xf32>
    %154 = vector.multi_reduction <add>, %153, %cst_78 [0] : vector<8x1xf32> to vector<1xf32>
    %155 = vector.shape_cast %154 : vector<1xf32> to vector<1x1xf32>
    %cst_79 = arith.constant 0.000000e+00 : f32
    %156 = vector.broadcast %cst_79 : f32 to vector<8x8xf32>
    %157 = arith.cmpf ogt, %128, %156 : vector<8x8xf32>
    %158 = arith.divf %128, %124 : vector<8x8xf32>
    %159 = math.log %158 : vector<8x8xf32>
    %160 = arith.mulf %128, %159 : vector<8x8xf32>
    %cst_80 = arith.constant 0.000000e+00 : f32
    %161 = vector.broadcast %cst_80 : f32 to vector<8x8xf32>
    %162 = arith.select %157, %160, %161 : vector<8x8xi1>, vector<8x8xf32>
    %cst_81 = arith.constant dense<0.000000e+00> : vector<8xf32>
    %163 = vector.multi_reduction <add>, %162, %cst_81 [1] : vector<8x8xf32> to vector<8xf32>
    %164 = vector.shape_cast %163 : vector<8xf32> to vector<8x1xf32>
    %cst_82 = arith.constant dense<0.000000e+00> : vector<1xf32>
    %165 = vector.multi_reduction <add>, %164, %cst_82 [0] : vector<8x1xf32> to vector<1xf32>
    %166 = vector.shape_cast %165 : vector<1xf32> to vector<1x1xf32>
    %167 = vector.extract_strided_slice %33 {offsets = [1, 0], sizes = [1, 1], strides = [1, 1]} : vector<2x1xf32> to vector<1x1xf32>
    %c1_83 = arith.constant 1 : index
    %c0_84 = arith.constant 0 : index
    %168 = vector.load %arg9[%c1_83, %c0_84] : memref<2x1xf32, #tpu.memory_space<vmem>>, vector<1x1xf32>
    tpu.vector_store %arg9[%c1_83, %c0_84], %143 {strides = array<i32>} : memref<2x1xf32, #tpu.memory_space<vmem>>, vector<1x1xf32>,
    %169 = arith.addf %155, %167 : vector<1x1xf32>
    %cst_85 = arith.constant 1.000000e+00 : f32
    %170 = vector.broadcast %cst_85 : f32 to vector<1x1xf32>
    %171 = arith.mulf %170, %169 : vector<1x1xf32>
    %c1_86 = arith.constant 1 : index
    %c0_87 = arith.constant 0 : index
    %172 = vector.load %arg10[%c1_86, %c0_87] : memref<2x1xf32, #tpu.memory_space<vmem>>, vector<1x1xf32>
    tpu.vector_store %arg10[%c1_86, %c0_87], %171 {strides = array<i32>} : memref<2x1xf32, #tpu.memory_space<vmem>>, vector<1x1xf32>,
    %cst_88 = arith.constant 1.000000e+00 : f32
    %173 = vector.broadcast %cst_88 : f32 to vector<1x1xf32>
    %174 = arith.mulf %173, %166 : vector<1x1xf32>
    %c1_89 = arith.constant 1 : index
    %c0_90 = arith.constant 0 : index
    %175 = vector.load %arg12[%c1_89, %c0_90] : memref<2x1xf32, #tpu.memory_space<vmem>>, vector<1x1xf32>
    tpu.vector_store %arg12[%c1_89, %c0_90], %174 {strides = array<i32>} : memref<2x1xf32, #tpu.memory_space<vmem>>, vector<1x1xf32>,
    return
  }
}

</mosaic_0001>

<bundles_post_ra>
// kernel: forward.9
= control target key start
LH: loop header
LB: loop body
LE: loop exit
PB: predicated region body
PF: predicated region fallthrough
CT: control target
= control target key end

     0   :  { %vm9_vm0 = vcmask 261120   ;;  %s51_s0 = inlined_call_operand.vmem [shape: f32[8,32], index: 0, kind: input, shape index: {}]   ;;  %s52_s1 = inlined_call_operand.vmem [shape: f32[8,32], index: 1, kind: output, shape index: {}]  }
   0x1   :  { %v8_v0 = vld [vmem:[%s51_s0] sm:$0xff] }
   0x2   :  { %v10_v1 = vsel %vm9_vm0, %v8_v0, -inf }
   0x3   :  { %11 = vmax.xlane.f32.xlu0 %v10_v1 }
  0x90   :  { %v12_v2 = vpop.xlane.xlu0 %11 }
  0x91   :  { %v13_v3 = vsub.f32 %v8_v0, %v12_v2 }
  0x93   :  { %v14_v4 = vmul.f32 1.442695, %v13_v3 }
  0x95   :  { %28 = vpow2.f32 %v14_v4 }
  0x9f   :  { %v29_v5 = vpop.eup %28 }
  0xa0   :  { %v16_v6 = vsel %vm9_vm0, %v29_v5, 0.0 }
  0xa1   :  { %17 = vadd.xlane.f32.xlu0 %v16_v6 }
 0x12e   :  { %v18_v7 = vpop.xlane.xlu0 %17 }
 0x12f   :  { %30 = vlog2.f32 %v18_v7 }
 0x139   :  { %v31_v8 = vpop.eup %30 }
 0x13a   :  { %v20_v9 = vmul.f32 0.6931472, %v31_v8 }
 0x13c   :  { %v21_v10 = vadd.f32 %v20_v9, %v12_v2 }
 0x13e   :  { %v22_v11 = vsub.f32 %v8_v0, %v21_v10 }
 0x140   :  { %23 = vst.msk [vmem:[%s52_s1] sm:$0xff] %vm9_vm0, %v22_v11 }

// kernel: forward.11
= control target key start
LH: loop header
LB: loop body
LE: loop exit
PB: predicated region body
PF: predicated region fallthrough
CT: control target
= control target key end

     0   :  { %19 = vsyncpa [#allocation3], 0  ;;  %v661_v2 = vmov 0.0|0.0   ;;  %vm662_vm0 = vmmov 0   ;;  %v663_v4 = vmov 0.0   ;;  %s842_s0 = inlined_call_operand.vmem [shape: f32[2,16], index: 0, kind: input, shape index: {}]   ;;  %s843_s1 = inlined_call_operand.vmem [shape: f32[16,32], index: 1, kind: input, shape index: {}]   ;;  %s844_s2 = inlined_call_operand.vmem [shape: f32[1,32], index: 2, kind: input, shape index: {}]   ;;  %s845_s3 = inlined_call_operand.vmem [shape: f32[32,32], index: 3, kind: input, shape index: {}]   ;;  %s846_s4 = inlined_call_operand.vmem [shape: f32[1,32], index: 4, kind: input, shape index: {}]   ;;  %s847_s5 = inlined_call_operand.vmem [shape: f32[32,8], index: 5, kind: input, shape index: {}]   ;;  %s848_s6 = inlined_call_operand.vmem [shape: f32[1,8], index: 6, kind: input, shape index: {}]   ;;  %s849_s7 = inlined_call_operand.vmem [shape: f32[32,8], index: 7, kind: input, shape index: {}]   ;;  %s850_s8 = inlined_call_operand.vmem [shape: f32[1,8], index: 8, kind: input, shape index: {}]   ;;  %s851_s9 = inlined_call_operand.vmem [shape: f32[2,32], index: 9, kind: input, shape index: {}]   ;;  %s852_s10 = inlined_call_operand.vmem [shape: f32[2,8], index: 10, kind: input, shape index: {}]   ;;  %s853_s11 = inlined_call_operand.vmem [shape: f32[2,8], index: 11, kind: output, shape index: {0}]   ;;  %s854_s12 = inlined_call_operand.hbm [shape: f32[2,8], index: 12, kind: output, shape index: {1}]   ;;  %s855_s13 = inlined_call_operand.hbm [shape: f32[2,8], index: 13, kind: output, shape index: {2}]  }
   0x1   :  { %v44_v0 = vld [vmem:[%s843_s1] sm:$0xff]  ;;  %v45_v1 = vld [vmem:[%s843_s1 + $0x8] sm:$0xff]  ;;  %569 = vmatprep.subr.bf16.mxu0 %v661_v2  ;;  %533 = vmatprep.mubr.msk.f32.mxu0 %vm662_vm0, %v663_v4 }
   0x2   :  { %v570_v3 = vpack.c.bf16 %v45_v1, %v44_v0 }
   0x3   :  { %20 = vsyncpa [#allocation5], 0  ;;  %572 = vmatprep.subr.bf16.mxu1 %v661_v2  ;;  %544 = vmatprep.mubr.msk.f32.mxu1 %vm662_vm0, %v663_v4  ;;  %v43_v5 = vld [vmem:[%s842_s0] sm:$0x3]  ;;  %vm53_vm1 = vcmask 130048   ;;  %v142_v7 = vld [vmem:[%s845_s3 + $0x8] sm:$0xff] }
   0x4   :  { %571 = vmatpush3.bf16.msra.mxu0 %v570_v3  ;;  %v141_v6 = vld [vmem:[%s845_s3] sm:$0xff]  ;;  %v143_v8 = vld [vmem:[%s845_s3 + $0x10] sm:$0xff]  ;;  %v144_v10 = vld [vmem:[%s845_s3 + $0x18] sm:$0xff]  ;;  %vm152_vm3 = vcmask 261120   ;;  %vm326_vm7 = vcmask 58368   ;;  %s665_s3 = smov [#allocation4]  }
   0x5   :  { %578 = vmatprep.subr.bf16.mxu0 %v661_v2  ;;  %v573_v9 = vpack.c.bf16 %v142_v7, %v141_v6  ;;  %v576_v11 = vpack.c.bf16 %v144_v10, %v143_v8  ;;  %v503_v12 = vld [vmem:[%s844_s2] ss:$0 sm:$0xff]  ;;  %v243_v29 = vld [vmem:[%s847_s5 + $0x8] sm:$0xff]  ;;  %v244_v34 = vld [vmem:[%s847_s5 + $0x10] sm:$0xff]  ;;  %s489_s22 = sshll.u32 %s665_s3, 4  ;;  %s490_s22 = int_to_ptr.vmem [resolvable:$true] %s489_s22 }
   0x6   :  { %v242_v28 = vld [vmem:[%s847_s5] sm:$0xff]  ;;  %v350_v32 = vld [vmem:[%s849_s7 + $0x8] sm:$0xff]  ;;  %v245_v35 = vld [vmem:[%s847_s5 + $0x18] sm:$0xff] }
   0x7   :  { %534 = vmatmul.mubr.msk.f32.vlgmr.msra.gmra.mrb[0].mxu0 %vm53_vm1, %v43_v5  ;;  %574 = vmatpush3.bf16.msra.mxu1 %v573_v9  ;;  %v349_v30 = vld [vmem:[%s849_s7] sm:$0xff]  ;;  %v579_v31 = vpack.c.bf16 %v243_v29, %v242_v28  ;;  %v351_v36 = vld [vmem:[%s849_s7 + $0x10] sm:$0xff]  ;;  %v582_v37 = vpack.c.bf16 %v245_v35, %v244_v34  ;;  %v352_v38 = vld [vmem:[%s849_s7 + $0x18] sm:$0xff] }
   0x8   :  { %555 = vmatprep.mubr.msk.f32.mxu0 %vm662_vm0, %v663_v4  ;;  %575 = vmatprep.subr.bf16.mxu1 %v661_v2  ;;  %v585_v33 = vpack.c.bf16 %v350_v32, %v349_v30  ;;  %v588_v39 = vpack.c.bf16 %v352_v38, %v351_v36  ;;  %v505_v40 = vld [vmem:[%s846_s4] ss:$0 sm:$0xff] }
   0x9   :  { %580 = vmatpush3.bf16.msra.mxu0 %v579_v31  ;;  %v240_v54 = vld [vmem:[%s851_s9] sm:$0x3]  ;;  %s664_s9 = smov [#allocation2]  }
   0xa   :  { %581 = vmatprep.subr.bf16.mxu0 %v661_v2  ;;  %v507_v58 = vld [vmem:[%s848_s6] ss:$0 sm:$0xff]  ;;  %s479_s2 = sshll.u32 %s664_s9, 4  ;;  %s480_s2 = int_to_ptr.vmem [resolvable:$true] %s479_s2 }
   0xb   :  { %577 = vmatpush3.bf16.msra.mxu1 %v576_v11  ;;  %v509_v59 = vld [vmem:[%s850_s8] ss:$0 sm:$0xff]  ;;  %p618_p1 = scmp.lt.s32.totalorder %s480_s2, %s480_s2 }
   0xc   :  { %584 = vmatprep.subr.bf16.mxu1 %v661_v2 }
   0xd   :  { %583 = vmatpush3.bf16.msra.mxu0 %v582_v37 }
  0xda   :  { %v123_v13 = vpop.f32.mrb[0].mxu0 }
  0xdb   :  { %v124_v14 = vadd.f32 %v503_v12, %v123_v13  ;;  %v535_v15 = vpop.f32.mrb[1].mxu0 }
  0xdd   :  { %v128_v16 = vmin.f32 %v124_v14, 20.0  ;;  %vm127_vm4 = vcmp.gt.f32.partialorder %v124_v14, 20.0 }
  0xdf   :  { %v129_v17 = vmul.f32 1.442695, %v128_v16 }
  0xe1   :  { %595 = vpow2.f32 %v129_v17 }
  0xeb   :  { %v596_v18 = vpop.eup %595 }
  0xec   :  { %v131_v19 = vadd.f32 1.0, %v596_v18  ;;  %v134_v20 = vmul.f32 -0.5, %v596_v18  ;;  %v137_v22 = vand.u32 2147483647, %v596_v18 }
  0xee   :  { %597 = vlog2.f32 %v131_v19  ;;  %v135_v21 = vadd.f32 1.0, %v134_v20  ;;  %vm138_vm2 = vcmp.lt.f32.partialorder %v137_v22, 0.0004427343 }
  0xf0   :  { %v136_v25 = vmul.f32 %v596_v18, %v135_v21 }
  0xf8   :  { %v598_v23 = vpop.eup %597 }
  0xf9   :  { %v133_v24 = vmul.f32 0.6931472, %v598_v23 }
  0xfb   :  { %v139_v26 = vsel %vm138_vm2, %v136_v25, %v133_v24 }
  0xfc   :  { %v140_v27 = vsel %vm127_vm4, %v124_v14, %v139_v26 }
  0xfd   :  { %545 = vmatmul.mubr.msk.f32.vlgmr.msra.gmra.mrb[0].mxu1 %vm152_vm3, %v140_v27 }
  0xfe   :  { %566 = vmatprep.mubr.msk.f32.mxu1 %vm662_vm0, %v663_v4  ;;  %586 = vmatpush3.bf16.msra.mxu1 %v585_v33 }
  0xff   :  { %587 = vmatprep.subr.bf16.mxu1 %v661_v2 }
 0x102   :  { %589 = vmatpush3.bf16.msra.mxu1 %v588_v39 }
 0x1d0   :  { %v222_v41 = vpop.f32.mrb[0].mxu1 }
 0x1d1   :  { %v223_v42 = vadd.f32 %v505_v40, %v222_v41  ;;  %v546_v43 = vpop.f32.mrb[1].mxu1 }
 0x1d3   :  { %v227_v44 = vmin.f32 %v223_v42, 20.0  ;;  %vm226_vm6 = vcmp.gt.f32.partialorder %v223_v42, 20.0 }
 0x1d5   :  { %v228_v45 = vmul.f32 1.442695, %v227_v44 }
 0x1d7   :  { %599 = vpow2.f32 %v228_v45 }
 0x1e1   :  { %v600_v46 = vpop.eup %599 }
 0x1e2   :  { %v230_v47 = vadd.f32 1.0, %v600_v46  ;;  %v233_v48 = vmul.f32 -0.5, %v600_v46  ;;  %v236_v50 = vand.u32 2147483647, %v600_v46 }
 0x1e4   :  { %601 = vlog2.f32 %v230_v47  ;;  %v234_v49 = vadd.f32 1.0, %v233_v48  ;;  %vm237_vm5 = vcmp.lt.f32.partialorder %v236_v50, 0.0004427343 }
 0x1e6   :  { %v235_v53 = vmul.f32 %v600_v46, %v234_v49  ;;  %v451_v46 = vld [vmem:[%s852_s10] sm:$0x3]  ;;  %s613_s10 = scalar_lea.vmem %s480_s2, 32 }
 0x1e7   :  { %p614_p0 = scmp.ne.s32.totalorder %s480_s2, %s613_s10  ;;  %p619_p2 = scmp.lt.s32.totalorder %s613_s10, %s613_s10 }
 0x1e9   :  { %p620_p3 = por %p619_p2, %p618_p1 }
 0x1eb   :  { %p621_p4 = pnand %p620_p3, %p614_p0 }
 0x1ee   :  { %v602_v51 = vpop.eup %601 }
 0x1ef   :  { %v232_v52 = vmul.f32 0.6931472, %v602_v51 }
 0x1f1   :  { %v238_v55 = vsel %vm237_vm5, %v235_v53, %v232_v52 }
 0x1f2   :  { %v239_v56 = vsel %vm226_vm6, %v223_v42, %v238_v55 }
 0x1f3   :  { %v241_v57 = vmul.f32 %v240_v54, %v239_v56 }
 0x1f5   :  { %556 = vmatmul.mubr.msk.f32.vlgmr.msra.gmra.mrb[2].mxu0 %vm152_vm3, %v241_v57  ;;  %567 = vmatmul.mubr.msk.f32.vlgmr.msra.gmra.mrb[2].mxu1 %vm152_vm3, %v241_v57 }
 0x2c8   :  { %v322_v60 = vpop.f32.mrb[2].mxu0  ;;  %v426_v61 = vpop.f32.mrb[2].mxu1 }
 0x2c9   :  { %v323_v62 = vadd.f32 %v507_v58, %v322_v60  ;;  %v427_v63 = vadd.f32 %v509_v59, %v426_v61  ;;  %v557_v0 = vpop.f32.mrb[3].mxu0  ;;  %v568_v1 = vpop.f32.mrb[3].mxu1 }
 0x2cb   :  { %v327_v2 = vsel %vm326_vm7, %v323_v62, 0.0  ;;  %v430_v3 = vsel %vm326_vm7, %v427_v63, 0.0 }
 0x2cc   :  { %v328_v4 = vrot.slane %v327_v2, 4  ;;  %v431_v5 = vrot.slane %v430_v3, 4 }
 0x2ce   :  { %v329_v6 = vadd.f32 %v328_v4, %v327_v2  ;;  %v432_v7 = vadd.f32 %v431_v5, %v430_v3 }
 0x2d0   :  { %v330_v8 = vrot.slane %v329_v6, 2  ;;  %v433_v9 = vrot.slane %v432_v7, 2 }
 0x2d2   :  { %v331_v10 = vadd.f32 %v330_v8, %v329_v6  ;;  %v434_v11 = vadd.f32 %v433_v9, %v432_v7 }
 0x2d4   :  { %v332_v12 = vrot.slane %v331_v10, 1  ;;  %v435_v13 = vrot.slane %v434_v11, 1 }
 0x2d6   :  { %v333_v14 = vadd.f32 %v332_v12, %v331_v10  ;;  %v436_v15 = vadd.f32 %v435_v13, %v434_v11 }
 0x2d8   :  { %v335_v16 = vmul.f32 0.5, %v333_v14  ;;  %v437_v17 = vmul.f32 0.5, %v436_v15 }
 0x2da   :  { %v336_v18 = vsub.f32 %v323_v62, %v335_v16  ;;  %v438_v19 = vsub.f32 %v427_v63, %v437_v17 }
 0x2dc   :  { %v337_v20 = vmul.f32 %v336_v18, %v336_v18  ;;  %v439_v21 = vmul.f32 %v438_v19, %v438_v19 }
 0x2de   :  { %v338_v22 = vsel %vm326_vm7, %v337_v20, 0.0  ;;  %v440_v23 = vsel %vm326_vm7, %v439_v21, 0.0 }
 0x2df   :  { %v339_v24 = vrot.slane %v338_v22, 4  ;;  %v441_v25 = vrot.slane %v440_v23, 4 }
 0x2e1   :  { %v340_v26 = vadd.f32 %v339_v24, %v338_v22  ;;  %v442_v27 = vadd.f32 %v441_v25, %v440_v23 }
 0x2e3   :  { %v341_v28 = vrot.slane %v340_v26, 2  ;;  %v443_v29 = vrot.slane %v442_v27, 2 }
 0x2e5   :  { %v342_v30 = vadd.f32 %v341_v28, %v340_v26  ;;  %v444_v31 = vadd.f32 %v443_v29, %v442_v27 }
 0x2e7   :  { %v343_v32 = vrot.slane %v342_v30, 1  ;;  %v445_v33 = vrot.slane %v444_v31, 1 }
 0x2e9   :  { %v344_v34 = vadd.f32 %v343_v32, %v342_v30  ;;  %v446_v35 = vadd.f32 %v445_v33, %v444_v31 }
 0x2eb   :  { %v345_v36 = vmul.f32 0.5, %v344_v34  ;;  %v447_v37 = vmul.f32 0.5, %v446_v35 }
 0x2ed   :  { %v346_v38 = vadd.f32 1e-05, %v345_v36  ;;  %v448_v39 = vadd.f32 1e-05, %v447_v37 }
 0x2ef   :  { %603 = vrsqrt.f32 %v346_v38 }
 0x2f0   :  { %605 = vrsqrt.f32 %v448_v39 }
 0x2f9   :  { %v604_v40 = vpop.eup %603 }
 0x2fa   :  { %v606_v41 = vpop.eup %605  ;;  %v348_v42 = vmul.f32 %v604_v40, %v336_v18 }
 0x2fb   :  { %v450_v43 = vmul.f32 %v606_v41, %v438_v19 }
 0x2fc   :  { %469 = vst.msk [vmem:[#allocation2] sm:$0x3] %vm326_vm7, %v348_v42 }
 0x2fd   :  { %v452_v44 = vmul.f32 0.5, %v450_v43  ;;  %470 = vst.msk [vmem:[#allocation4] sm:$0x3] %vm326_vm7, %v450_v43 }
 0x2ff   :  { %v453_v45 = vmul.f32 1.442695, %v452_v44 }
 0x301   :  { %607 = vpow2.f32 %v453_v45 }
 0x30b   :  { %v608_v47 = vpop.eup %607 }
 0x30c   :  { %v455_v48 = vmul.f32 %v608_v47, %v451_v46 }
 0x30e   :  { %v456_v49 = vadd.f32 %v455_v48, %v348_v42 }
 0x310   :  { %v457_v50 = vsel %vm326_vm7, %v456_v49, -inf }
 0x311   :  { %458 = vmax.xlane.f32.xlu0 %v457_v50 }
 0x39e   :  { %v459_v51 = vpop.xlane.xlu0 %458 }
 0x39f   :  { %v460_v52 = vsub.f32 %v456_v49, %v459_v51 }
 0x3a1   :  { %v461_v53 = vmul.f32 1.442695, %v460_v52 }
 0x3a3   :  { %609 = vpow2.f32 %v461_v53 }
 0x3ad   :  { %v610_v54 = vpop.eup %609 }
 0x3ae   :  { %v463_v55 = vsel %vm326_vm7, %v610_v54, 0.0 }
 0x3af   :  { %464 = vadd.xlane.f32.xlu0 %v463_v55 }
 0x3b0   :  { %624 = shalt.err (!%p621_p4)
}
 0x3b1   :  { %s625_s25 = scalar_lea.hbm %s854_s12, 32 }
 0x3b2   :  { %p626_p5 = scmp.ne.s32.totalorder %s854_s12, %s625_s25  ;;  %p629_p6 = scmp.lt.u32.totalorder %s625_s25, %s854_s12 }
 0x3b4   :  { %p631_p7 = pnand %p629_p6, %p626_p5 }
 0x3b6   :  { %634 = shalt.err (!%p631_p7)
}
 0x3b7   :  { %482 = dma.vmem_to_hbm [thread:$0]  %s480_s2, 32, %s854_s12, [#allocation3]  }
 0x3b8   :  { %s635_s14 = scalar_lea.vmem %s490_s22, 32  ;;  %p640_p9 = scmp.lt.s32.totalorder %s490_s22, %s490_s22 }
 0x3b9   :  { %p636_p8 = scmp.ne.s32.totalorder %s490_s22, %s635_s14  ;;  %p641_p10 = scmp.lt.s32.totalorder %s635_s14, %s635_s14 }
 0x3bb   :  { %p642_p11 = por %p641_p10, %p640_p9 }
 0x3bd   :  { %p643_p12 = pnand %p642_p11, %p636_p8 }
 0x3bf   :  { %646 = shalt.err (!%p643_p12)
}
 0x3c0   :  { %s647_s17 = scalar_lea.hbm %s855_s13, 32 }
 0x3c1   :  { %p648_p13 = scmp.ne.s32.totalorder %s855_s13, %s647_s17  ;;  %p651_p0 = scmp.lt.u32.totalorder %s647_s17, %s855_s13 }
 0x3c3   :  { %p653_p1 = pnand %p651_p0, %p648_p13 }
 0x3c5   :  { %656 = shalt.err (!%p653_p1)
}
 0x3c6   :  { %492 = dma.vmem_to_hbm [thread:$0]  %s490_s22, 32, %s855_s13, [#allocation5]  }
 0x43c   :  { %v465_v56 = vpop.xlane.xlu0 %464 }
 0x43d   :  { %611 = vrcp.f32 %v465_v56 }
 0x447   :  { %v612_v57 = vpop.eup %611 }
 0x448   :  { %v467_v58 = vmul.f32 %v612_v57, %v610_v54 }
 0x44a   :  { %468 = vst.msk [vmem:[%s853_s11] sm:$0x3] %vm326_vm7, %v467_v58 }
 0x44b   :  { %657 = dma.done.wait [#allocation3], 32  }
 0x44c   :  { %658 = vsyncadd [#allocation3], 4294967264 }
 0x44d   :  { %659 = dma.done.wait [#allocation5], 32  }
 0x44e   :  { %660 = vsyncadd [#allocation5], 4294967264 }
 0x44f   :  { %501 = vsyncpa [#allocation3], 1 }
 0x450   :  { %502 = vsyncpa [#allocation5], 1 }

// kernel: forward.12
= control target key start
LH: loop header
LB: loop body
LE: loop exit
PB: predicated region body
PF: predicated region fallthrough
CT: control target
= control target key end

     0   :  { %v473_v0 = vmov 0.0|0.0   ;;  %vm474_vm0 = vmmov 0   ;;  %v475_v3 = vmov 0.0   ;;  %vm49_vm1 = vcmask 130048   ;;  %s576_s1 = inlined_call_operand.vmem [shape: f32[16,32], index: 1, kind: input, shape index: {}]   ;;  %s577_s0 = inlined_call_operand.vmem [shape: f32[1,2,16], index: 0, kind: input, shape index: {}]   ;;  %s578_s3 = inlined_call_operand.vmem [shape: f32[32,32], index: 3, kind: input, shape index: {}]   ;;  %s579_s2 = inlined_call_operand.vmem [shape: f32[1,32], index: 2, kind: input, shape index: {}]   ;;  %s580_s5 = inlined_call_operand.vmem [shape: f32[32,8], index: 5, kind: input, shape index: {}]   ;;  %s581_s4 = inlined_call_operand.vmem [shape: f32[1,32], index: 4, kind: input, shape index: {}]   ;;  %s582_s7 = inlined_call_operand.vmem [shape: f32[1,2,32], index: 7, kind: input, shape index: {}]   ;;  %s583_s6 = inlined_call_operand.vmem [shape: f32[1,8], index: 6, kind: input, shape index: {}]   ;;  %s584_s8 = inlined_call_operand.vmem [shape: f32[1,2,8], index: 8, kind: output, shape index: {}]  }
   0x1   :  { %435 = vmatprep.subr.bf16.mxu0 %v473_v0  ;;  %v29_v1 = vld [vmem:[%s576_s1] sm:$0xff]  ;;  %v30_v2 = vld [vmem:[%s576_s1 + $0x8] sm:$0xff]  ;;  %410 = vmatprep.mubr.msk.f32.mxu0 %vm474_vm0, %v475_v3  ;;  %v34_v8 = vld [vmem:[%s578_s3 + $0x10] sm:$0xff]  ;;  %vm143_vm3 = vcmask 261120   ;;  %vm231_vm6 = vcmask 254976   ;;  %vm349_vm9 = vcmask 58368  }
   0x2   :  { %v436_v4 = vpack.c.bf16 %v30_v2, %v29_v1  ;;  %438 = vmatprep.subr.bf16.mxu1 %v473_v0  ;;  %421 = vmatprep.mubr.msk.f32.mxu1 %vm474_vm0, %v475_v3  ;;  %v42_v5 = vld [vmem:[%s577_s0] sm:$0x3]  ;;  %v33_v7 = vld [vmem:[%s578_s3 + $0x8] sm:$0xff]  ;;  %v35_v10 = vld [vmem:[%s578_s3 + $0x18] sm:$0xff] }
   0x3   :  { %v32_v6 = vld [vmem:[%s578_s3] sm:$0xff]  ;;  %v442_v11 = vpack.c.bf16 %v35_v10, %v34_v8  ;;  %v38_v29 = vld [vmem:[%s580_s5 + $0x8] sm:$0xff]  ;;  %v39_v31 = vld [vmem:[%s580_s5 + $0x10] sm:$0xff] }
   0x4   :  { %437 = vmatpush3.bf16.msra.mxu0 %v436_v4  ;;  %v439_v9 = vpack.c.bf16 %v33_v7, %v32_v6  ;;  %v387_v12 = vld [vmem:[%s579_s2] ss:$0 sm:$0xff]  ;;  %v40_v32 = vld [vmem:[%s580_s5 + $0x18] sm:$0xff] }
   0x5   :  { %444 = vmatprep.subr.bf16.mxu0 %v473_v0  ;;  %v37_v28 = vld [vmem:[%s580_s5] sm:$0xff]  ;;  %v448_v33 = vpack.c.bf16 %v40_v32, %v39_v31 }
   0x6   :  { %440 = vmatpush3.bf16.msra.mxu1 %v439_v9  ;;  %v445_v30 = vpack.c.bf16 %v38_v29, %v37_v28  ;;  %v389_v34 = vld [vmem:[%s581_s4] ss:$0 sm:$0xff] }
   0x7   :  { %411 = vmatmul.mubr.msk.f32.vlgmr.msra.gmra.mrb[0].mxu0 %vm49_vm1, %v42_v5  ;;  %441 = vmatprep.subr.bf16.mxu1 %v473_v0  ;;  %v254_v6 = vld [vmem:[%s582_s7] sm:$0x3] }
   0x8   :  { %432 = vmatprep.mubr.msk.f32.mxu0 %vm474_vm0, %v475_v3  ;;  %446 = vmatpush3.bf16.msra.mxu0 %v445_v30  ;;  %v391_v9 = vld [vmem:[%s583_s6] ss:$0 sm:$0xff] }
   0x9   :  { %447 = vmatprep.subr.bf16.mxu0 %v473_v0 }
   0xa   :  { %443 = vmatpush3.bf16.msra.mxu1 %v442_v11 }
   0xc   :  { %449 = vmatpush3.bf16.msra.mxu0 %v448_v33 }
  0xda   :  { %v119_v13 = vpop.f32.mrb[0].mxu0 }
  0xdb   :  { %v120_v14 = vadd.f32 %v387_v12, %v119_v13  ;;  %v412_v15 = vpop.f32.mrb[1].mxu0 }
  0xdd   :  { %v124_v16 = vmin.f32 %v120_v14, 20.0  ;;  %vm123_vm4 = vcmp.gt.f32.partialorder %v120_v14, 20.0 }
  0xdf   :  { %v125_v17 = vmul.f32 1.442695, %v124_v16 }
  0xe1   :  { %453 = vpow2.f32 %v125_v17 }
  0xeb   :  { %v454_v18 = vpop.eup %453 }
  0xec   :  { %v127_v19 = vadd.f32 1.0, %v454_v18  ;;  %v130_v20 = vmul.f32 -0.5, %v454_v18  ;;  %v133_v22 = vand.u32 2147483647, %v454_v18 }
  0xee   :  { %455 = vlog2.f32 %v127_v19  ;;  %v131_v21 = vadd.f32 1.0, %v130_v20  ;;  %vm134_vm2 = vcmp.lt.f32.partialorder %v133_v22, 0.0004427343 }
  0xf0   :  { %v132_v25 = vmul.f32 %v454_v18, %v131_v21 }
  0xf8   :  { %v456_v23 = vpop.eup %455 }
  0xf9   :  { %v129_v24 = vmul.f32 0.6931472, %v456_v23 }
  0xfb   :  { %v135_v26 = vsel %vm134_vm2, %v132_v25, %v129_v24 }
  0xfc   :  { %v136_v27 = vsel %vm123_vm4, %v120_v14, %v135_v26 }
  0xfd   :  { %422 = vmatmul.mubr.msk.f32.vlgmr.msra.gmra.mrb[0].mxu1 %vm143_vm3, %v136_v27 }
 0x1d0   :  { %v213_v35 = vpop.f32.mrb[0].mxu1 }
 0x1d1   :  { %v214_v36 = vadd.f32 %v389_v34, %v213_v35  ;;  %v423_v37 = vpop.f32.mrb[1].mxu1 }
 0x1d3   :  { %v218_v38 = vmin.f32 %v214_v36, 20.0  ;;  %vm217_vm7 = vcmp.gt.f32.partialorder %v214_v36, 20.0 }
 0x1d5   :  { %v219_v39 = vmul.f32 1.442695, %v218_v38 }
 0x1d7   :  { %457 = vpow2.f32 %v219_v39 }
 0x1e1   :  { %v458_v40 = vpop.eup %457 }
 0x1e2   :  { %v221_v41 = vadd.f32 1.0, %v458_v40  ;;  %v224_v42 = vmul.f32 -0.5, %v458_v40  ;;  %v227_v44 = vand.u32 2147483647, %v458_v40 }
 0x1e4   :  { %459 = vlog2.f32 %v221_v41  ;;  %v225_v43 = vadd.f32 1.0, %v224_v42  ;;  %vm228_vm5 = vcmp.lt.f32.partialorder %v227_v44, 0.0004427343 }
 0x1e6   :  { %v226_v47 = vmul.f32 %v458_v40, %v225_v43 }
 0x1ee   :  { %v460_v45 = vpop.eup %459 }
 0x1ef   :  { %v223_v46 = vmul.f32 0.6931472, %v460_v45 }
 0x1f1   :  { %v229_v48 = vsel %vm228_vm5, %v226_v47, %v223_v46 }
 0x1f2   :  { %v230_v49 = vsel %vm217_vm7, %v214_v36, %v229_v48 }
 0x1f3   :  { %v232_v50 = vsel %vm231_vm6, %v230_v49, 0.0 }
 0x1f4   :  { %v233_v51 = vrot.slane %v232_v50, 4 }
 0x1f6   :  { %v234_v52 = vadd.f32 %v233_v51, %v232_v50 }
 0x1f8   :  { %v235_v53 = vrot.slane %v234_v52, 2 }
 0x1fa   :  { %v236_v54 = vadd.f32 %v235_v53, %v234_v52 }
 0x1fc   :  { %v237_v55 = vrot.slane %v236_v54, 1 }
 0x1fe   :  { %v238_v56 = vadd.f32 %v237_v55, %v236_v54 }
 0x200   :  { %v240_v57 = vmul.f32 0.5, %v238_v56 }
 0x202   :  { %v241_v58 = vsub.f32 %v230_v49, %v240_v57 }
 0x204   :  { %v242_v59 = vmul.f32 %v241_v58, %v241_v58 }
 0x206   :  { %v243_v60 = vsel %vm231_vm6, %v242_v59, 0.0 }
 0x207   :  { %v244_v61 = vrot.slane %v243_v60, 4 }
 0x209   :  { %v245_v62 = vadd.f32 %v244_v61, %v243_v60 }
 0x20b   :  { %v246_v63 = vrot.slane %v245_v62, 2 }
 0x20d   :  { %v247_v0 = vadd.f32 %v246_v63, %v245_v62 }
 0x20f   :  { %v248_v1 = vrot.slane %v247_v0, 1 }
 0x211   :  { %v249_v2 = vadd.f32 %v248_v1, %v247_v0 }
 0x213   :  { %v250_v3 = vmul.f32 0.5, %v249_v2 }
 0x215   :  { %v251_v4 = vadd.f32 1e-05, %v250_v3 }
 0x217   :  { %461 = vrsqrt.f32 %v251_v4 }
 0x221   :  { %v462_v5 = vpop.eup %461 }
 0x222   :  { %v253_v7 = vmul.f32 %v462_v5, %v241_v58 }
 0x224   :  { %v255_v8 = vmul.f32 %v254_v6, %v253_v7 }
 0x226   :  { %433 = vmatmul.mubr.msk.f32.vlgmr.msra.gmra.mrb[2].mxu0 %vm143_vm3, %v255_v8 }
 0x2f9   :  { %v331_v10 = vpop.f32.mrb[2].mxu0 }
 0x2fa   :  { %v332_v11 = vadd.f32 %v391_v9, %v331_v10  ;;  %v434_v12 = vpop.f32.mrb[3].mxu0 }
 0x2fc   :  { %v336_v13 = vmin.f32 %v332_v11, 20.0  ;;  %vm335_vm10 = vcmp.gt.f32.partialorder %v332_v11, 20.0 }
 0x2fe   :  { %v337_v14 = vmul.f32 1.442695, %v336_v13 }
 0x300   :  { %463 = vpow2.f32 %v337_v14 }
 0x30a   :  { %v464_v15 = vpop.eup %463 }
 0x30b   :  { %v339_v16 = vadd.f32 1.0, %v464_v15  ;;  %v342_v17 = vmul.f32 -0.5, %v464_v15  ;;  %v345_v19 = vand.u32 2147483647, %v464_v15 }
 0x30d   :  { %465 = vlog2.f32 %v339_v16  ;;  %v343_v18 = vadd.f32 1.0, %v342_v17  ;;  %vm346_vm8 = vcmp.lt.f32.partialorder %v345_v19, 0.0004427343 }
 0x30f   :  { %v344_v22 = vmul.f32 %v464_v15, %v343_v18 }
 0x317   :  { %v466_v20 = vpop.eup %465 }
 0x318   :  { %v341_v21 = vmul.f32 0.6931472, %v466_v20 }
 0x31a   :  { %v347_v23 = vsel %vm346_vm8, %v344_v22, %v341_v21 }
 0x31b   :  { %v348_v24 = vsel %vm335_vm10, %v332_v11, %v347_v23 }
 0x31c   :  { %v350_v25 = vsel %vm349_vm9, %v348_v24, 0.0 }
 0x31d   :  { %v351_v26 = vrot.slane %v350_v25, 4 }
 0x31f   :  { %v352_v27 = vadd.f32 %v351_v26, %v350_v25 }
 0x321   :  { %v353_v28 = vrot.slane %v352_v27, 2 }
 0x323   :  { %v354_v29 = vadd.f32 %v353_v28, %v352_v27 }
 0x325   :  { %v355_v30 = vrot.slane %v354_v29, 1 }
 0x327   :  { %v356_v31 = vadd.f32 %v355_v30, %v354_v29 }
 0x329   :  { %v357_v32 = vmul.f32 0.5, %v356_v31 }
 0x32b   :  { %v358_v33 = vsub.f32 %v348_v24, %v357_v32 }
 0x32d   :  { %v359_v34 = vmul.f32 %v358_v33, %v358_v33 }
 0x32f   :  { %v360_v35 = vsel %vm349_vm9, %v359_v34, 0.0 }
 0x330   :  { %v361_v36 = vrot.slane %v360_v35, 4 }
 0x332   :  { %v362_v37 = vadd.f32 %v361_v36, %v360_v35 }
 0x334   :  { %v363_v38 = vrot.slane %v362_v37, 2 }
 0x336   :  { %v364_v39 = vadd.f32 %v363_v38, %v362_v37 }
 0x338   :  { %v365_v40 = vrot.slane %v364_v39, 1 }
 0x33a   :  { %v366_v41 = vadd.f32 %v365_v40, %v364_v39 }
 0x33c   :  { %v367_v42 = vmul.f32 0.5, %v366_v41 }
 0x33e   :  { %v368_v43 = vadd.f32 1e-05, %v367_v42 }
 0x340   :  { %467 = vrsqrt.f32 %v368_v43 }
 0x34a   :  { %v468_v44 = vpop.eup %467 }
 0x34b   :  { %v370_v45 = vmul.f32 %v468_v44, %v358_v33 }
 0x34d   :  { %v371_v46 = vsel %vm349_vm9, %v370_v45, -inf }
 0x34e   :  { %372 = vmax.xlane.f32.xlu0 %v371_v46 }
 0x3db   :  { %v373_v47 = vpop.xlane.xlu0 %372 }
 0x3dc   :  { %v374_v48 = vsub.f32 %v370_v45, %v373_v47 }
 0x3de   :  { %v375_v49 = vmul.f32 1.442695, %v374_v48 }
 0x3e0   :  { %469 = vpow2.f32 %v375_v49 }
 0x3ea   :  { %v470_v50 = vpop.eup %469 }
 0x3eb   :  { %v377_v51 = vsel %vm349_vm9, %v470_v50, 0.0 }
 0x3ec   :  { %378 = vadd.xlane.f32.xlu0 %v377_v51 }
 0x479   :  { %v379_v52 = vpop.xlane.xlu0 %378 }
 0x47a   :  { %471 = vrcp.f32 %v379_v52 }
 0x484   :  { %v472_v53 = vpop.eup %471 }
 0x485   :  { %v381_v54 = vmul.f32 %v472_v53, %v470_v50 }
 0x487   :  { %382 = vst.msk [vmem:[%s584_s8] sm:$0x3] %vm349_vm9, %v381_v54 }

// kernel: forward.10
= control target key start
LH: loop header
LB: loop body
LE: loop exit
PB: predicated region body
PF: predicated region fallthrough
CT: control target
= control target key end

     0   :  { %v589_v0 = vmov 0.0|0.0   ;;  %vm590_vm0 = vmmov 0   ;;  %v591_v3 = vmov 0.0   ;;  %vm51_vm1 = vcmask 130048   ;;  %s757_s1 = inlined_call_operand.vmem [shape: f32[16,32], index: 1, kind: input, shape index: {}]   ;;  %s758_s0 = inlined_call_operand.vmem [shape: f32[2,16], index: 0, kind: input, shape index: {}]   ;;  %s759_s3 = inlined_call_operand.vmem [shape: f32[32,32], index: 3, kind: input, shape index: {}]   ;;  %s760_s2 = inlined_call_operand.vmem [shape: f32[1,32], index: 2, kind: input, shape index: {}]   ;;  %s761_s5 = inlined_call_operand.vmem [shape: f32[32,8], index: 5, kind: input, shape index: {}]   ;;  %s762_s7 = inlined_call_operand.vmem [shape: f32[32,8], index: 7, kind: input, shape index: {}]   ;;  %s763_s4 = inlined_call_operand.vmem [shape: f32[1,32], index: 4, kind: input, shape index: {}]   ;;  %s764_s9 = inlined_call_operand.vmem [shape: f32[2,32], index: 9, kind: input, shape index: {}]   ;;  %s765_s6 = inlined_call_operand.vmem [shape: f32[1,8], index: 6, kind: input, shape index: {}]   ;;  %s766_s8 = inlined_call_operand.vmem [shape: f32[1,8], index: 8, kind: input, shape index: {}]   ;;  %s767_s12 = inlined_call_operand.vmem [shape: f32[2,8], index: 12, kind: output, shape index: {1}]   ;;  %s768_s13 = inlined_call_operand.vmem [shape: f32[2,8], index: 13, kind: output, shape index: {2}]   ;;  %s769_s10 = inlined_call_operand.vmem [shape: f32[2,8], index: 10, kind: input, shape index: {}]   ;;  %s770_s11 = inlined_call_operand.vmem [shape: f32[2,8], index: 11, kind: output, shape index: {0}]  }
   0x1   :  { %547 = vmatprep.subr.bf16.mxu0 %v589_v0  ;;  %v42_v1 = vld [vmem:[%s757_s1] sm:$0xff]  ;;  %v43_v2 = vld [vmem:[%s757_s1 + $0x8] sm:$0xff]  ;;  %511 = vmatprep.mubr.msk.f32.mxu0 %vm590_vm0, %v591_v3  ;;  %v141_v8 = vld [vmem:[%s759_s3 + $0x10] sm:$0xff]  ;;  %vm150_vm3 = vcmask 261120   ;;  %vm324_vm7 = vcmask 58368  }
   0x2   :  { %v548_v4 = vpack.c.bf16 %v43_v2, %v42_v1  ;;  %550 = vmatprep.subr.bf16.mxu1 %v589_v0  ;;  %522 = vmatprep.mubr.msk.f32.mxu1 %vm590_vm0, %v591_v3  ;;  %v41_v5 = vld [vmem:[%s758_s0] sm:$0x3]  ;;  %v140_v7 = vld [vmem:[%s759_s3 + $0x8] sm:$0xff]  ;;  %v142_v10 = vld [vmem:[%s759_s3 + $0x18] sm:$0xff] }
   0x3   :  { %v139_v6 = vld [vmem:[%s759_s3] sm:$0xff]  ;;  %v554_v11 = vpack.c.bf16 %v142_v10, %v141_v8  ;;  %v241_v29 = vld [vmem:[%s761_s5 + $0x8] sm:$0xff]  ;;  %v242_v34 = vld [vmem:[%s761_s5 + $0x10] sm:$0xff] }
   0x4   :  { %549 = vmatpush3.bf16.msra.mxu0 %v548_v4  ;;  %v551_v9 = vpack.c.bf16 %v140_v7, %v139_v6  ;;  %v481_v12 = vld [vmem:[%s760_s2] ss:$0 sm:$0xff]  ;;  %v348_v32 = vld [vmem:[%s762_s7 + $0x8] sm:$0xff]  ;;  %v243_v35 = vld [vmem:[%s761_s5 + $0x18] sm:$0xff] }
   0x5   :  { %556 = vmatprep.subr.bf16.mxu0 %v589_v0  ;;  %v240_v28 = vld [vmem:[%s761_s5] sm:$0xff]  ;;  %v349_v36 = vld [vmem:[%s762_s7 + $0x10] sm:$0xff]  ;;  %v560_v37 = vpack.c.bf16 %v243_v35, %v242_v34  ;;  %v350_v38 = vld [vmem:[%s762_s7 + $0x18] sm:$0xff] }
   0x6   :  { %552 = vmatpush3.bf16.msra.mxu1 %v551_v9  ;;  %v347_v30 = vld [vmem:[%s762_s7] sm:$0xff]  ;;  %v557_v31 = vpack.c.bf16 %v241_v29, %v240_v28  ;;  %v566_v39 = vpack.c.bf16 %v350_v38, %v349_v36 }
   0x7   :  { %512 = vmatmul.mubr.msk.f32.vlgmr.msra.gmra.mrb[0].mxu0 %vm51_vm1, %v41_v5  ;;  %553 = vmatprep.subr.bf16.mxu1 %v589_v0  ;;  %v563_v33 = vpack.c.bf16 %v348_v32, %v347_v30  ;;  %v483_v40 = vld [vmem:[%s763_s4] ss:$0 sm:$0xff] }
   0x8   :  { %533 = vmatprep.mubr.msk.f32.mxu0 %vm590_vm0, %v591_v3  ;;  %558 = vmatpush3.bf16.msra.mxu0 %v557_v31  ;;  %v238_v54 = vld [vmem:[%s764_s9] sm:$0x3] }
   0x9   :  { %559 = vmatprep.subr.bf16.mxu0 %v589_v0  ;;  %v485_v58 = vld [vmem:[%s765_s6] ss:$0 sm:$0xff] }
   0xa   :  { %555 = vmatpush3.bf16.msra.mxu1 %v554_v11  ;;  %v487_v59 = vld [vmem:[%s766_s8] ss:$0 sm:$0xff] }
   0xb   :  { %562 = vmatprep.subr.bf16.mxu1 %v589_v0 }
   0xc   :  { %561 = vmatpush3.bf16.msra.mxu0 %v560_v37 }
  0xda   :  { %v121_v13 = vpop.f32.mrb[0].mxu0 }
  0xdb   :  { %v122_v14 = vadd.f32 %v481_v12, %v121_v13  ;;  %v513_v15 = vpop.f32.mrb[1].mxu0 }
  0xdd   :  { %v126_v16 = vmin.f32 %v122_v14, 20.0  ;;  %vm125_vm4 = vcmp.gt.f32.partialorder %v122_v14, 20.0 }
  0xdf   :  { %v127_v17 = vmul.f32 1.442695, %v126_v16 }
  0xe1   :  { %571 = vpow2.f32 %v127_v17 }
  0xeb   :  { %v572_v18 = vpop.eup %571 }
  0xec   :  { %v129_v19 = vadd.f32 1.0, %v572_v18  ;;  %v132_v20 = vmul.f32 -0.5, %v572_v18  ;;  %v135_v22 = vand.u32 2147483647, %v572_v18 }
  0xee   :  { %573 = vlog2.f32 %v129_v19  ;;  %v133_v21 = vadd.f32 1.0, %v132_v20  ;;  %vm136_vm2 = vcmp.lt.f32.partialorder %v135_v22, 0.0004427343 }
  0xf0   :  { %v134_v25 = vmul.f32 %v572_v18, %v133_v21 }
  0xf8   :  { %v574_v23 = vpop.eup %573 }
  0xf9   :  { %v131_v24 = vmul.f32 0.6931472, %v574_v23 }
  0xfb   :  { %v137_v26 = vsel %vm136_vm2, %v134_v25, %v131_v24 }
  0xfc   :  { %v138_v27 = vsel %vm125_vm4, %v122_v14, %v137_v26 }
  0xfd   :  { %523 = vmatmul.mubr.msk.f32.vlgmr.msra.gmra.mrb[0].mxu1 %vm150_vm3, %v138_v27 }
  0xfe   :  { %544 = vmatprep.mubr.msk.f32.mxu1 %vm590_vm0, %v591_v3  ;;  %564 = vmatpush3.bf16.msra.mxu1 %v563_v33 }
  0xff   :  { %565 = vmatprep.subr.bf16.mxu1 %v589_v0 }
 0x102   :  { %567 = vmatpush3.bf16.msra.mxu1 %v566_v39 }
 0x1d0   :  { %v220_v41 = vpop.f32.mrb[0].mxu1 }
 0x1d1   :  { %v221_v42 = vadd.f32 %v483_v40, %v220_v41  ;;  %v524_v43 = vpop.f32.mrb[1].mxu1 }
 0x1d3   :  { %v225_v44 = vmin.f32 %v221_v42, 20.0  ;;  %vm224_vm6 = vcmp.gt.f32.partialorder %v221_v42, 20.0 }
 0x1d5   :  { %v226_v45 = vmul.f32 1.442695, %v225_v44 }
 0x1d7   :  { %575 = vpow2.f32 %v226_v45 }
 0x1e1   :  { %v576_v46 = vpop.eup %575 }
 0x1e2   :  { %v228_v47 = vadd.f32 1.0, %v576_v46  ;;  %v231_v48 = vmul.f32 -0.5, %v576_v46  ;;  %v234_v50 = vand.u32 2147483647, %v576_v46 }
 0x1e4   :  { %577 = vlog2.f32 %v228_v47  ;;  %v232_v49 = vadd.f32 1.0, %v231_v48  ;;  %vm235_vm5 = vcmp.lt.f32.partialorder %v234_v50, 0.0004427343 }
 0x1e6   :  { %v233_v53 = vmul.f32 %v576_v46, %v232_v49  ;;  %v449_v46 = vld [vmem:[%s769_s10] sm:$0x3] }
 0x1ee   :  { %v578_v51 = vpop.eup %577 }
 0x1ef   :  { %v230_v52 = vmul.f32 0.6931472, %v578_v51 }
 0x1f1   :  { %v236_v55 = vsel %vm235_vm5, %v233_v53, %v230_v52 }
 0x1f2   :  { %v237_v56 = vsel %vm224_vm6, %v221_v42, %v236_v55 }
 0x1f3   :  { %v239_v57 = vmul.f32 %v238_v54, %v237_v56 }
 0x1f5   :  { %534 = vmatmul.mubr.msk.f32.vlgmr.msra.gmra.mrb[2].mxu0 %vm150_vm3, %v239_v57  ;;  %545 = vmatmul.mubr.msk.f32.vlgmr.msra.gmra.mrb[2].mxu1 %vm150_vm3, %v239_v57 }
 0x2c8   :  { %v320_v60 = vpop.f32.mrb[2].mxu0  ;;  %v424_v61 = vpop.f32.mrb[2].mxu1 }
 0x2c9   :  { %v321_v62 = vadd.f32 %v485_v58, %v320_v60  ;;  %v425_v63 = vadd.f32 %v487_v59, %v424_v61  ;;  %v535_v0 = vpop.f32.mrb[3].mxu0  ;;  %v546_v1 = vpop.f32.mrb[3].mxu1 }
 0x2cb   :  { %v325_v2 = vsel %vm324_vm7, %v321_v62, 0.0  ;;  %v428_v3 = vsel %vm324_vm7, %v425_v63, 0.0 }
 0x2cc   :  { %v326_v4 = vrot.slane %v325_v2, 4  ;;  %v429_v5 = vrot.slane %v428_v3, 4 }
 0x2ce   :  { %v327_v6 = vadd.f32 %v326_v4, %v325_v2  ;;  %v430_v7 = vadd.f32 %v429_v5, %v428_v3 }
 0x2d0   :  { %v328_v8 = vrot.slane %v327_v6, 2  ;;  %v431_v9 = vrot.slane %v430_v7, 2 }
 0x2d2   :  { %v329_v10 = vadd.f32 %v328_v8, %v327_v6  ;;  %v432_v11 = vadd.f32 %v431_v9, %v430_v7 }
 0x2d4   :  { %v330_v12 = vrot.slane %v329_v10, 1  ;;  %v433_v13 = vrot.slane %v432_v11, 1 }
 0x2d6   :  { %v331_v14 = vadd.f32 %v330_v12, %v329_v10  ;;  %v434_v15 = vadd.f32 %v433_v13, %v432_v11 }
 0x2d8   :  { %v333_v16 = vmul.f32 0.5, %v331_v14  ;;  %v435_v17 = vmul.f32 0.5, %v434_v15 }
 0x2da   :  { %v334_v18 = vsub.f32 %v321_v62, %v333_v16  ;;  %v436_v19 = vsub.f32 %v425_v63, %v435_v17 }
 0x2dc   :  { %v335_v20 = vmul.f32 %v334_v18, %v334_v18  ;;  %v437_v21 = vmul.f32 %v436_v19, %v436_v19 }
 0x2de   :  { %v336_v22 = vsel %vm324_vm7, %v335_v20, 0.0  ;;  %v438_v23 = vsel %vm324_vm7, %v437_v21, 0.0 }
 0x2df   :  { %v337_v24 = vrot.slane %v336_v22, 4  ;;  %v439_v25 = vrot.slane %v438_v23, 4 }
 0x2e1   :  { %v338_v26 = vadd.f32 %v337_v24, %v336_v22  ;;  %v440_v27 = vadd.f32 %v439_v25, %v438_v23 }
 0x2e3   :  { %v339_v28 = vrot.slane %v338_v26, 2  ;;  %v441_v29 = vrot.slane %v440_v27, 2 }
 0x2e5   :  { %v340_v30 = vadd.f32 %v339_v28, %v338_v26  ;;  %v442_v31 = vadd.f32 %v441_v29, %v440_v27 }
 0x2e7   :  { %v341_v32 = vrot.slane %v340_v30, 1  ;;  %v443_v33 = vrot.slane %v442_v31, 1 }
 0x2e9   :  { %v342_v34 = vadd.f32 %v341_v32, %v340_v30  ;;  %v444_v35 = vadd.f32 %v443_v33, %v442_v31 }
 0x2eb   :  { %v343_v36 = vmul.f32 0.5, %v342_v34  ;;  %v445_v37 = vmul.f32 0.5, %v444_v35 }
 0x2ed   :  { %v344_v38 = vadd.f32 1e-05, %v343_v36  ;;  %v446_v39 = vadd.f32 1e-05, %v445_v37 }
 0x2ef   :  { %579 = vrsqrt.f32 %v344_v38 }
 0x2f0   :  { %581 = vrsqrt.f32 %v446_v39 }
 0x2f9   :  { %v580_v40 = vpop.eup %579 }
 0x2fa   :  { %v582_v41 = vpop.eup %581  ;;  %v346_v42 = vmul.f32 %v580_v40, %v334_v18 }
 0x2fb   :  { %v448_v43 = vmul.f32 %v582_v41, %v436_v19 }
 0x2fc   :  { %467 = vst.msk [vmem:[%s767_s12] sm:$0x3] %vm324_vm7, %v346_v42 }
 0x2fd   :  { %v450_v44 = vmul.f32 0.5, %v448_v43  ;;  %468 = vst.msk [vmem:[%s768_s13] sm:$0x3] %vm324_vm7, %v448_v43 }
 0x2ff   :  { %v451_v45 = vmul.f32 1.442695, %v450_v44 }
 0x301   :  { %583 = vpow2.f32 %v451_v45 }
 0x30b   :  { %v584_v47 = vpop.eup %583 }
 0x30c   :  { %v453_v48 = vmul.f32 %v584_v47, %v449_v46 }
 0x30e   :  { %v454_v49 = vadd.f32 %v453_v48, %v346_v42 }
 0x310   :  { %v455_v50 = vsel %vm324_vm7, %v454_v49, -inf }
 0x311   :  { %456 = vmax.xlane.f32.xlu0 %v455_v50 }
 0x39e   :  { %v457_v51 = vpop.xlane.xlu0 %456 }
 0x39f   :  { %v458_v52 = vsub.f32 %v454_v49, %v457_v51 }
 0x3a1   :  { %v459_v53 = vmul.f32 1.442695, %v458_v52 }
 0x3a3   :  { %585 = vpow2.f32 %v459_v53 }
 0x3ad   :  { %v586_v54 = vpop.eup %585 }
 0x3ae   :  { %v461_v55 = vsel %vm324_vm7, %v586_v54, 0.0 }
 0x3af   :  { %462 = vadd.xlane.f32.xlu0 %v461_v55 }
 0x43c   :  { %v463_v56 = vpop.xlane.xlu0 %462 }
 0x43d   :  { %587 = vrcp.f32 %v463_v56 }
 0x447   :  { %v588_v57 = vpop.eup %587 }
 0x448   :  { %v465_v58 = vmul.f32 %v588_v57, %v586_v54 }
 0x44a   :  { %466 = vst.msk [vmem:[%s770_s11] sm:$0x3] %vm324_vm7, %v465_v58 }

// kernel: forward.8
= control target key start
LH: loop header
LB: loop body
LE: loop exit
PB: predicated region body
PF: predicated region fallthrough
CT: control target
= control target key end

     0   :  { %v876_v0 = vmov 0.0|0.0   ;;  %vm877_vm0 = vmmov 0   ;;  %v878_v3 = vmov 0.0   ;;  %vm49_vm1 = vcmask 130048   ;;  %s1043_s1 = inlined_call_operand.vmem [shape: f32[16,32], index: 1, kind: input, shape index: {}]   ;;  %s1044_s0 = inlined_call_operand.vmem [shape: f32[2,8,16], index: 0, kind: input, shape index: {}]   ;;  %s1045_s3 = inlined_call_operand.vmem [shape: f32[32,32], index: 3, kind: input, shape index: {}]   ;;  %s1046_s2 = inlined_call_operand.vmem [shape: f32[1,32], index: 2, kind: input, shape index: {}]   ;;  %s1047_s5 = inlined_call_operand.vmem [shape: f32[32,8], index: 5, kind: input, shape index: {}]   ;;  %s1048_s4 = inlined_call_operand.vmem [shape: f32[1,32], index: 4, kind: input, shape index: {}]   ;;  %s1049_s7 = inlined_call_operand.vmem [shape: f32[2,8,32], index: 7, kind: input, shape index: {}]   ;;  %s1050_s6 = inlined_call_operand.vmem [shape: f32[1,8], index: 6, kind: input, shape index: {}]   ;;  %s1051_s8 = inlined_call_operand.vmem [shape: f32[2,8,8], index: 8, kind: output, shape index: {}]  }
   0x1   :  { %803 = vmatprep.subr.bf16.mxu0 %v876_v0  ;;  %v29_v1 = vld [vmem:[%s1043_s1] sm:$0xff]  ;;  %v30_v2 = vld [vmem:[%s1043_s1 + $0x8] sm:$0xff]  ;;  %749 = vmatprep.mubr.msk.f32.mxu0 %vm877_vm0, %v878_v3  ;;  %v34_v8 = vld [vmem:[%s1045_s3 + $0x10] sm:$0xff]  ;;  %vm143_vm3 = vcmask 261120   ;;  %vm348_vm10 = vcmask 64512  }
   0x2   :  { %v804_v4 = vpack.c.bf16 %v30_v2, %v29_v1  ;;  %806 = vmatprep.subr.bf16.mxu1 %v876_v0  ;;  %760 = vmatprep.mubr.msk.f32.mxu1 %vm877_vm0, %v878_v3  ;;  %v42_v5 = vld [vmem:[%s1044_s0] sm:$0xff]  ;;  %v33_v7 = vld [vmem:[%s1045_s3 + $0x8] sm:$0xff]  ;;  %v35_v10 = vld [vmem:[%s1045_s3 + $0x18] sm:$0xff] }
   0x3   :  { %v32_v6 = vld [vmem:[%s1045_s3] sm:$0xff]  ;;  %v958_v11 = vpack.c.bf16 %v35_v10, %v34_v8  ;;  %v713_v28 = vld [vmem:[%s1044_s0 + $0x8] sm:$0xff]  ;;  %v39_v32 = vld [vmem:[%s1047_s5 + $0x10] sm:$0xff] }
   0x4   :  { %805 = vmatpush3.bf16.msra.mxu0 %v804_v4  ;;  %v952_v9 = vpack.c.bf16 %v33_v7, %v32_v6  ;;  %v966_v12 = vld [vmem:[%s1046_s2] ss:$0 sm:$0xff]  ;;  %v38_v30 = vld [vmem:[%s1047_s5 + $0x8] sm:$0xff]  ;;  %v40_v33 = vld [vmem:[%s1047_s5 + $0x18] sm:$0xff] }
   0x5   :  { %812 = vmatprep.subr.bf16.mxu0 %v876_v0  ;;  %v37_v29 = vld [vmem:[%s1047_s5] sm:$0xff]  ;;  %v816_v34 = vpack.c.bf16 %v40_v33, %v39_v32 }
   0x6   :  { %808 = vmatpush3.bf16.msra.mxu1 %v952_v9  ;;  %v813_v31 = vpack.c.bf16 %v38_v30, %v37_v29  ;;  %v997_v35 = vld [vmem:[%s1048_s4] ss:$0 sm:$0xff] }
   0x7   :  { %750 = vmatmul.mubr.msk.f32.vlgmr.msra.gmra.mrb[0].mxu0 %vm49_vm1, %v42_v5  ;;  %809 = vmatprep.subr.bf16.mxu1 %v876_v0  ;;  %v1016_v29 = vld [vmem:[%s1050_s6] ss:$0 sm:$0xff] }
   0x8   :  { %771 = vmatprep.mubr.msk.f32.mxu0 %vm877_vm0, %v878_v3  ;;  %814 = vmatpush3.bf16.msra.mxu0 %v813_v31 }
   0x9   :  { %815 = vmatprep.subr.bf16.mxu0 %v876_v0 }
   0xa   :  { %811 = vmatpush3.bf16.msra.mxu1 %v958_v11 }
   0xb   :  { %818 = vmatprep.subr.bf16.mxu1 %v876_v0 }
   0xc   :  { %817 = vmatpush3.bf16.msra.mxu0 %v816_v34 }
   0xd   :  { %821 = vmatprep.subr.bf16.mxu0 %v876_v0 }
  0xda   :  { %v119_v13 = vpop.f32.mrb[0].mxu0 }
  0xdb   :  { %v120_v14 = vadd.f32 %v966_v12, %v119_v13  ;;  %v751_v15 = vpop.f32.mrb[1].mxu0 }
  0xdd   :  { %v124_v16 = vmin.f32 %v120_v14, 20.0  ;;  %vm123_vm4 = vcmp.gt.f32.partialorder %v120_v14, 20.0 }
  0xdf   :  { %v125_v17 = vmul.f32 1.442695, %v124_v16 }
  0xe1   :  { %836 = vpow2.f32 %v125_v17 }
  0xeb   :  { %v837_v18 = vpop.eup %836 }
  0xec   :  { %v127_v19 = vadd.f32 1.0, %v837_v18  ;;  %v130_v20 = vmul.f32 -0.5, %v837_v18  ;;  %v133_v22 = vand.u32 2147483647, %v837_v18 }
  0xee   :  { %838 = vlog2.f32 %v127_v19  ;;  %v131_v21 = vadd.f32 1.0, %v130_v20  ;;  %vm134_vm2 = vcmp.lt.f32.partialorder %v133_v22, 0.0004427343  ;;  %v253_v19 = vld [vmem:[%s1049_s7] sm:$0xff] }
  0xf0   :  { %v132_v25 = vmul.f32 %v837_v18, %v131_v21 }
  0xf8   :  { %v839_v23 = vpop.eup %838 }
  0xf9   :  { %v129_v24 = vmul.f32 0.6931472, %v839_v23 }
  0xfb   :  { %v135_v26 = vsel %vm134_vm2, %v132_v25, %v129_v24 }
  0xfc   :  { %v136_v27 = vsel %vm123_vm4, %v120_v14, %v135_v26 }
  0xfd   :  { %761 = vmatmul.mubr.msk.f32.vlgmr.msra.gmra.mrb[0].mxu1 %vm143_vm3, %v136_v27 }
  0xfe   :  { %820 = vmatpush3.bf16.msra.mxu1 %v804_v4  ;;  %778 = vmatprep.mubr.msk.f32.mxu1 %vm877_vm0, %v878_v3 }
  0xff   :  { %827 = vmatprep.subr.bf16.mxu1 %v876_v0 }
 0x101   :  { %779 = vmatmul.mubr.msk.f32.vlgmr.msra.gmra.mrb[2].mxu1 %vm49_vm1, %v713_v28 }
 0x102   :  { %800 = vmatprep.mubr.msk.f32.mxu1 %vm877_vm0, %v878_v3  ;;  %829 = vmatpush3.bf16.msra.mxu1 %v813_v31 }
 0x103   :  { %830 = vmatprep.subr.bf16.mxu1 %v876_v0 }
 0x106   :  { %832 = vmatpush3.bf16.msra.mxu1 %v816_v34 }
 0x1d0   :  { %v213_v36 = vpop.f32.mrb[0].mxu1 }
 0x1d1   :  { %v214_v37 = vadd.f32 %v997_v35, %v213_v36  ;;  %v762_v38 = vpop.f32.mrb[1].mxu1 }
 0x1d3   :  { %v218_v39 = vmin.f32 %v214_v37, 20.0  ;;  %vm217_vm6 = vcmp.gt.f32.partialorder %v214_v37, 20.0 }
 0x1d4   :  { %v453_v40 = vpop.f32.mrb[2].mxu1 }
 0x1d5   :  { %v219_v41 = vmul.f32 1.442695, %v218_v39  ;;  %v780_v42 = vpop.f32.mrb[3].mxu1  ;;  %v454_v59 = vadd.f32 %v966_v12, %v453_v40 }
 0x1d7   :  { %840 = vpow2.f32 %v219_v41  ;;  %v458_v62 = vmin.f32 %v454_v59, 20.0  ;;  %vm457_vm8 = vcmp.gt.f32.partialorder %v454_v59, 20.0 }
 0x1d9   :  { %v459_v2 = vmul.f32 1.442695, %v458_v62 }
 0x1e1   :  { %v841_v43 = vpop.eup %840 }
 0x1e2   :  { %v221_v44 = vadd.f32 1.0, %v841_v43  ;;  %v224_v45 = vmul.f32 -0.5, %v841_v43  ;;  %v227_v47 = vand.u32 2147483647, %v841_v43 }
 0x1e4   :  { %842 = vlog2.f32 %v221_v44  ;;  %v225_v46 = vadd.f32 1.0, %v224_v45  ;;  %vm228_vm5 = vcmp.lt.f32.partialorder %v227_v47, 0.0004427343 }
 0x1e5   :  { %844 = vpow2.f32 %v459_v2 }
 0x1e6   :  { %v226_v50 = vmul.f32 %v841_v43, %v225_v46 }
 0x1ee   :  { %v843_v48 = vpop.eup %842 }
 0x1ef   :  { %v223_v49 = vmul.f32 0.6931472, %v843_v48  ;;  %v845_v14 = vpop.eup %844 }
 0x1f0   :  { %v461_v17 = vadd.f32 1.0, %v845_v14  ;;  %v464_v12 = vmul.f32 -0.5, %v845_v14  ;;  %v467_v23 = vand.u32 2147483647, %v845_v14 }
 0x1f1   :  { %v229_v51 = vsel %vm228_vm5, %v226_v50, %v223_v49 }
 0x1f2   :  { %v230_v52 = vsel %vm217_vm6, %v214_v37, %v229_v51  ;;  %v465_v21 = vadd.f32 1.0, %v464_v12  ;;  %vm468_vm7 = vcmp.lt.f32.partialorder %v467_v23, 0.0004427343 }
 0x1f3   :  { %v231_v53 = vsel %vm143_vm3, %v230_v52, 0.0 }
 0x1f4   :  { %v232_v54 = vrot.slane %v231_v53, 4  ;;  %v466_v26 = vmul.f32 %v845_v14, %v465_v21 }
 0x1f6   :  { %v233_v55 = vadd.f32 %v232_v54, %v231_v53 }
 0x1f8   :  { %v234_v56 = vrot.slane %v233_v55, 2 }
 0x1fa   :  { %v235_v57 = vadd.f32 %v234_v56, %v233_v55 }
 0x1fc   :  { %v236_v58 = vrot.slane %v235_v57, 1 }
 0x1fe   :  { %v237_v60 = vadd.f32 %v236_v58, %v235_v57 }
 0x200   :  { %v239_v61 = vmul.f32 0.125, %v237_v60 }
 0x202   :  { %v240_v63 = vsub.f32 %v230_v52, %v239_v61 }
 0x204   :  { %v241_v1 = vmul.f32 %v240_v63, %v240_v63 }
 0x206   :  { %v242_v4 = vsel %vm143_vm3, %v241_v1, 0.0 }
 0x207   :  { %v243_v5 = vrot.slane %v242_v4, 4 }
 0x209   :  { %v244_v6 = vadd.f32 %v243_v5, %v242_v4 }
 0x20b   :  { %v245_v7 = vrot.slane %v244_v6, 2 }
 0x20d   :  { %v246_v8 = vadd.f32 %v245_v7, %v244_v6 }
 0x20f   :  { %v247_v10 = vrot.slane %v246_v8, 1 }
 0x211   :  { %v248_v13 = vadd.f32 %v247_v10, %v246_v8 }
 0x213   :  { %v249_v15 = vmul.f32 0.125, %v248_v13 }
 0x215   :  { %v250_v16 = vadd.f32 1e-05, %v249_v15 }
 0x217   :  { %846 = vrsqrt.f32 %v250_v16 }
 0x218   :  { %848 = vlog2.f32 %v461_v17 }
 0x221   :  { %v847_v18 = vpop.eup %846 }
 0x222   :  { %v252_v20 = vmul.f32 %v847_v18, %v240_v63  ;;  %v849_v22 = vpop.eup %848 }
 0x223   :  { %v463_v25 = vmul.f32 0.6931472, %v849_v22 }
 0x224   :  { %v254_v24 = vmul.f32 %v253_v19, %v252_v20 }
 0x225   :  { %v469_v27 = vsel %vm468_vm7, %v466_v26, %v463_v25 }
 0x226   :  { %772 = vmatmul.mubr.msk.f32.vlgmr.msra.gmra.mrb[2].mxu0 %vm143_vm3, %v254_v24  ;;  %v470_v28 = vsel %vm457_vm8, %v454_v59, %v469_v27 }
 0x227   :  { %823 = vmatpush3.bf16.msra.mxu0 %v952_v9  ;;  %789 = vmatprep.mubr.msk.f32.mxu0 %vm877_vm0, %v878_v3 }
 0x228   :  { %824 = vmatprep.subr.bf16.mxu0 %v876_v0 }
 0x22b   :  { %826 = vmatpush3.bf16.msra.mxu0 %v958_v11 }
 0x22e   :  { %790 = vmatmul.mubr.msk.f32.vlgmr.msra.gmra.mrb[4].mxu0 %vm143_vm3, %v470_v28 }
 0x2f9   :  { %v330_v30 = vpop.f32.mrb[2].mxu0 }
 0x2fa   :  { %v331_v9 = vadd.f32 %v1016_v29, %v330_v30  ;;  %v773_v31 = vpop.f32.mrb[3].mxu0 }
 0x2fc   :  { %v335_v32 = vmin.f32 %v331_v9, 20.0  ;;  %vm334_vm11 = vcmp.gt.f32.partialorder %v331_v9, 20.0 }
 0x2fe   :  { %v336_v3 = vmul.f32 1.442695, %v335_v32 }
 0x300   :  { %850 = vpow2.f32 %v336_v3 }
 0x301   :  { %v540_v0 = vpop.f32.mrb[4].mxu0 }
 0x302   :  { %v541_v33 = vadd.f32 %v997_v35, %v540_v0  ;;  %v791_v34 = vpop.f32.mrb[5].mxu0 }
 0x304   :  { %v545_v11 = vmin.f32 %v541_v33, 20.0  ;;  %vm544_vm13 = vcmp.gt.f32.partialorder %v541_v33, 20.0 }
 0x306   :  { %v546_v36 = vmul.f32 1.442695, %v545_v11 }
 0x308   :  { %852 = vpow2.f32 %v546_v36  ;;  %v716_v36 = vld [vmem:[%s1049_s7 + $0x8] sm:$0xff] }
 0x30a   :  { %v851_v37 = vpop.eup %850 }
 0x30b   :  { %v338_v38 = vadd.f32 1.0, %v851_v37  ;;  %v341_v39 = vmul.f32 -0.5, %v851_v37  ;;  %v344_v43 = vand.u32 2147483647, %v851_v37 }
 0x30d   :  { %854 = vlog2.f32 %v338_v38  ;;  %v342_v42 = vadd.f32 1.0, %v341_v39  ;;  %vm345_vm9 = vcmp.lt.f32.partialorder %v344_v43, 0.0004427343 }
 0x30f   :  { %v343_v47 = vmul.f32 %v851_v37, %v342_v42 }
 0x312   :  { %v853_v40 = vpop.eup %852 }
 0x313   :  { %v548_v41 = vadd.f32 1.0, %v853_v40  ;;  %v551_v45 = vmul.f32 -0.5, %v853_v40  ;;  %v554_v51 = vand.u32 2147483647, %v853_v40 }
 0x315   :  { %856 = vlog2.f32 %v548_v41  ;;  %v552_v49 = vadd.f32 1.0, %v551_v45  ;;  %vm555_vm12 = vcmp.lt.f32.partialorder %v554_v51, 0.0004427343 }
 0x317   :  { %v855_v44 = vpop.eup %854  ;;  %v553_v56 = vmul.f32 %v853_v40, %v552_v49 }
 0x318   :  { %v340_v46 = vmul.f32 0.6931472, %v855_v44 }
 0x31a   :  { %v346_v35 = vsel %vm345_vm9, %v343_v47, %v340_v46 }
 0x31b   :  { %v347_v48 = vsel %vm334_vm11, %v331_v9, %v346_v35 }
 0x31c   :  { %v349_v50 = vsel %vm348_vm10, %v347_v48, 0.0 }
 0x31d   :  { %v350_v52 = vrot.slane %v349_v50, 4 }
 0x31f   :  { %v857_v53 = vpop.eup %856  ;;  %v351_v54 = vadd.f32 %v350_v52, %v349_v50 }
 0x320   :  { %v550_v55 = vmul.f32 0.6931472, %v857_v53 }
 0x321   :  { %v352_v57 = vrot.slane %v351_v54, 2 }
 0x322   :  { %v556_v58 = vsel %vm555_vm12, %v553_v56, %v550_v55 }
 0x323   :  { %v557_v59 = vsel %vm544_vm13, %v541_v33, %v556_v58  ;;  %v353_v60 = vadd.f32 %v352_v57, %v351_v54 }
 0x324   :  { %v558_v61 = vsel %vm143_vm3, %v557_v59, 0.0 }
 0x325   :  { %v559_v62 = vrot.slane %v558_v61, 4  ;;  %v354_v63 = vrot.slane %v353_v60, 1 }
 0x327   :  { %v560_v1 = vadd.f32 %v559_v62, %v558_v61  ;;  %v355_v2 = vadd.f32 %v354_v63, %v353_v60 }
 0x329   :  { %v561_v4 = vrot.slane %v560_v1, 2  ;;  %v356_v5 = vmul.f32 0.125, %v355_v2 }
 0x32b   :  { %v562_v6 = vadd.f32 %v561_v4, %v560_v1  ;;  %v357_v7 = vsub.f32 %v347_v48, %v356_v5 }
 0x32d   :  { %v563_v8 = vrot.slane %v562_v6, 1  ;;  %v358_v10 = vmul.f32 %v357_v7, %v357_v7 }
 0x32f   :  { %v564_v13 = vadd.f32 %v563_v8, %v562_v6  ;;  %v359_v14 = vsel %vm348_vm10, %v358_v10, 0.0 }
 0x330   :  { %v360_v15 = vrot.slane %v359_v14, 4 }
 0x331   :  { %v565_v16 = vmul.f32 0.125, %v564_v13 }
 0x332   :  { %v361_v17 = vadd.f32 %v360_v15, %v359_v14 }
 0x333   :  { %v566_v12 = vsub.f32 %v557_v59, %v565_v16 }
 0x334   :  { %v362_v18 = vrot.slane %v361_v17, 2 }
 0x335   :  { %v567_v19 = vmul.f32 %v566_v12, %v566_v12 }
 0x336   :  { %v363_v20 = vadd.f32 %v362_v18, %v361_v17 }
 0x337   :  { %v568_v21 = vsel %vm143_vm3, %v567_v19, 0.0 }
 0x338   :  { %v569_v22 = vrot.slane %v568_v21, 4  ;;  %v364_v23 = vrot.slane %v363_v20, 1 }
 0x33a   :  { %v570_v24 = vadd.f32 %v569_v22, %v568_v21  ;;  %v365_v25 = vadd.f32 %v364_v23, %v363_v20 }
 0x33c   :  { %v571_v26 = vrot.slane %v570_v24, 2  ;;  %v366_v27 = vmul.f32 0.125, %v365_v25 }
 0x33e   :  { %v572_v28 = vadd.f32 %v571_v26, %v570_v24  ;;  %v367_v30 = vadd.f32 1e-05, %v366_v27 }
 0x340   :  { %v573_v9 = vrot.slane %v572_v28, 1  ;;  %858 = vrsqrt.f32 %v367_v30 }
 0x342   :  { %v574_v31 = vadd.f32 %v573_v9, %v572_v28 }
 0x344   :  { %v575_v32 = vmul.f32 0.125, %v574_v31 }
 0x346   :  { %v576_v3 = vadd.f32 1e-05, %v575_v32 }
 0x348   :  { %860 = vrsqrt.f32 %v576_v3 }
 0x34a   :  { %v859_v0 = vpop.eup %858 }
 0x34b   :  { %v369_v33 = vmul.f32 %v859_v0, %v357_v7 }
 0x34d   :  { %v370_v34 = vsel %vm348_vm10, %v369_v33, -inf }
 0x34e   :  { %371 = vmax.xlane.f32.xlu0 %v370_v34 }
 0x352   :  { %v861_v11 = vpop.eup %860 }
 0x353   :  { %v578_v37 = vmul.f32 %v861_v11, %v566_v12 }
 0x355   :  { %v581_v38 = vmul.f32 %v716_v36, %v578_v37 }
 0x357   :  { %801 = vmatmul.mubr.msk.f32.vlgmr.msra.gmra.mrb[4].mxu1 %vm143_vm3, %v581_v38 }
 0x3db   :  { %v372_v39 = vpop.xlane.xlu0 %371 }
 0x3dc   :  { %v373_v40 = vsub.f32 %v369_v33, %v372_v39 }
 0x3de   :  { %v374_v41 = vmul.f32 1.442695, %v373_v40 }
 0x3e0   :  { %862 = vpow2.f32 %v374_v41 }
 0x3ea   :  { %v863_v42 = vpop.eup %862 }
 0x3eb   :  { %v376_v43 = vsel %vm348_vm10, %v863_v42, 0.0 }
 0x3ec   :  { %377 = vadd.xlane.f32.xlu1 %v376_v43 }
 0x42a   :  { %v651_v44 = vpop.f32.mrb[4].mxu1 }
 0x42b   :  { %v652_v45 = vadd.f32 %v1016_v29, %v651_v44  ;;  %v802_v46 = vpop.f32.mrb[5].mxu1 }
 0x42d   :  { %v656_v47 = vmin.f32 %v652_v45, 20.0  ;;  %vm655_vm15 = vcmp.gt.f32.partialorder %v652_v45, 20.0 }
 0x42f   :  { %v657_v35 = vmul.f32 1.442695, %v656_v47 }
 0x431   :  { %864 = vpow2.f32 %v657_v35 }
 0x43b   :  { %v865_v48 = vpop.eup %864 }
 0x43c   :  { %v659_v49 = vadd.f32 1.0, %v865_v48  ;;  %v662_v50 = vmul.f32 -0.5, %v865_v48  ;;  %v665_v52 = vand.u32 2147483647, %v865_v48 }
 0x43e   :  { %866 = vlog2.f32 %v659_v49  ;;  %v663_v51 = vadd.f32 1.0, %v662_v50  ;;  %vm666_vm14 = vcmp.lt.f32.partialorder %v665_v52, 0.0004427343 }
 0x440   :  { %v664_v55 = vmul.f32 %v865_v48, %v663_v51 }
 0x448   :  { %v867_v53 = vpop.eup %866 }
 0x449   :  { %v661_v54 = vmul.f32 0.6931472, %v867_v53 }
 0x44b   :  { %v667_v56 = vsel %vm666_vm14, %v664_v55, %v661_v54 }
 0x44c   :  { %v668_v57 = vsel %vm655_vm15, %v652_v45, %v667_v56 }
 0x44d   :  { %v669_v58 = vsel %vm348_vm10, %v668_v57, 0.0 }
 0x44e   :  { %v670_v29 = vrot.slane %v669_v58, 4 }
 0x450   :  { %v671_v59 = vadd.f32 %v670_v29, %v669_v58 }
 0x452   :  { %v672_v60 = vrot.slane %v671_v59, 2 }
 0x454   :  { %v673_v61 = vadd.f32 %v672_v60, %v671_v59 }
 0x456   :  { %v674_v62 = vrot.slane %v673_v61, 1 }
 0x458   :  { %v675_v63 = vadd.f32 %v674_v62, %v673_v61 }
 0x45a   :  { %v676_v1 = vmul.f32 0.125, %v675_v63 }
 0x45c   :  { %v677_v2 = vsub.f32 %v668_v57, %v676_v1 }
 0x45e   :  { %v678_v4 = vmul.f32 %v677_v2, %v677_v2 }
 0x460   :  { %v679_v5 = vsel %vm348_vm10, %v678_v4, 0.0 }
 0x461   :  { %v680_v6 = vrot.slane %v679_v5, 4 }
 0x463   :  { %v681_v7 = vadd.f32 %v680_v6, %v679_v5 }
 0x465   :  { %v682_v8 = vrot.slane %v681_v7, 2 }
 0x467   :  { %v683_v10 = vadd.f32 %v682_v8, %v681_v7 }
 0x469   :  { %v684_v13 = vrot.slane %v683_v10, 1 }
 0x46b   :  { %v685_v14 = vadd.f32 %v684_v13, %v683_v10 }
 0x46d   :  { %v686_v15 = vmul.f32 0.125, %v685_v14 }
 0x46f   :  { %v687_v16 = vadd.f32 1e-05, %v686_v15 }
 0x471   :  { %868 = vrsqrt.f32 %v687_v16 }
 0x479   :  { %v378_v17 = vpop.xlane.xlu1 %377 }
 0x47a   :  { %870 = vrcp.f32 %v378_v17 }
 0x47b   :  { %v869_v12 = vpop.eup %868 }
 0x47c   :  { %v689_v18 = vmul.f32 %v869_v12, %v677_v2 }
 0x47e   :  { %v690_v19 = vsel %vm348_vm10, %v689_v18, -inf }
 0x47f   :  { %691 = vmax.xlane.f32.xlu0 %v690_v19 }
 0x484   :  { %v871_v20 = vpop.eup %870 }
 0x485   :  { %v380_v21 = vmul.f32 %v871_v20, %v863_v42 }
 0x487   :  { %381 = vst.msk [vmem:[%s1051_s8] sm:$0xff] %vm348_vm10, %v380_v21 }
 0x50c   :  { %v692_v22 = vpop.xlane.xlu0 %691 }
 0x50d   :  { %v693_v23 = vsub.f32 %v689_v18, %v692_v22 }
 0x50f   :  { %v694_v24 = vmul.f32 1.442695, %v693_v23 }
 0x511   :  { %872 = vpow2.f32 %v694_v24 }
 0x51b   :  { %v873_v25 = vpop.eup %872 }
 0x51c   :  { %v696_v26 = vsel %vm348_vm10, %v873_v25, 0.0 }
 0x51d   :  { %697 = vadd.xlane.f32.xlu1 %v696_v26 }
 0x5aa   :  { %v698_v27 = vpop.xlane.xlu1 %697 }
 0x5ab   :  { %874 = vrcp.f32 %v698_v27 }
 0x5b5   :  { %v875_v28 = vpop.eup %874 }
 0x5b6   :  { %v700_v30 = vmul.f32 %v875_v28, %v873_v25 }
 0x5b8   :  { %718 = vst.msk [vmem:[%s1051_s8 + $0x8] sm:$0xff] %vm348_vm10, %v700_v30 }

// kernel: forward.13
= control target key start
LH: loop header
LB: loop body
LE: loop exit
PB: predicated region body
PF: predicated region fallthrough
CT: control target
= control target key end

     0   :  { %v104_v0 = vlaneseq  ;;  %vm109_vm0 = vcmask 64512   ;;  %vm50_vm5 = vcmask 58368   ;;  %vm158_vm9 = vcmask 0   ;;  %s491_s3 = inlined_call_operand.vmem [shape: f32[2,8], index: 3, kind: input, shape index: {}]   ;;  %s492_s0 = inlined_call_operand.vmem [shape: f32[2,8,8], index: 0, kind: input, shape index: {}]   ;;  %s493_s7 = inlined_call_operand.vmem [shape: f32[2,8], index: 7, kind: input, shape index: {}]   ;;  %s494_s8 = inlined_call_operand.vmem [shape: f32[2,8], index: 8, kind: input, shape index: {}]   ;;  %s495_s2 = inlined_call_operand.vmem [shape: f32[2,8,8], index: 2, kind: input, shape index: {}]   ;;  %s496_s6 = inlined_call_operand.vmem [shape: f32[2,8], index: 6, kind: input, shape index: {}]   ;;  %s497_s4 = inlined_call_operand.vmem [shape: f32[2,8], index: 4, kind: input, shape index: {}]   ;;  %s498_s5 = inlined_call_operand.vmem [shape: f32[2,8], index: 5, kind: input, shape index: {}]   ;;  %s499_s1 = inlined_call_operand.vmem [shape: f32[2,8,8], index: 1, kind: input, shape index: {}]   ;;  %s500_s9 = inlined_call_operand.vmem [shape: f32[2,1], index: 9, kind: output, shape index: {0}]   ;;  %s501_s13 = inlined_call_operand.vmem [shape: f32[2,1], index: 13, kind: output, shape index: {4}]   ;;  %s502_s12 = inlined_call_operand.vmem [shape: f32[2,1], index: 12, kind: output, shape index: {3}]   ;;  %s503_s11 = inlined_call_operand.vmem [shape: f32[2,1], index: 11, kind: output, shape index: {2}]   ;;  %s504_s10 = inlined_call_operand.vmem [shape: f32[2,1], index: 10, kind: output, shape index: {1}]  }
   0x1   :  { %v364_v2 = vld [vmem:[%s491_s3] sm:$0x3]  ;;  %v248_v6 = vld [vmem:[%s492_s0 + $0x8] sm:$0xff]  ;;  %vm54_vm10 = vcmask 1024   ;;  %vm224_vm11 = vcmask 1025  }
   0x2   :  { %v105_v1 = vshrl.u32 %v104_v0, 7  ;;  %v101_v5 = vld [vmem:[%s492_s0] sm:$0xff]  ;;  %v417_v34 = vld [vmem:[%s495_s2 + $0x8] sm:$0xff]  ;;  %vm43_vm1 = vcmp.gt.f32.partialorder %v364_v2, 0.0 }
   0x3   :  { %v385_v13 = vld [vmem:[%s493_s7] sm:$0x3]  ;;  %v249_v60 = vld [vmem:[%s499_s1 + $0x8] sm:$0xff]  ;;  %vm206_vm7 = vcmp.gt.f32.partialorder %v417_v34, 0.0 }
   0x4   :  { %v106_v3 = vsub.s32 0, %v105_v1  ;;  %v171_v4 = vsub.s32 1, %v105_v1  ;;  %251 = vrcp.f32 %v385_v13  ;;  %v392_v14 = vld [vmem:[%s494_s8] sm:$0x3]  ;;  %vm75_vm2 = vcmp.gt.f32.partialorder %v385_v13, 0.0 }
   0x5   :  { %253 = vrcp.f32 %v364_v2  ;;  %v399_v19 = vld [vmem:[%s495_s2] sm:$0xff]  ;;  %vm90_vm4 = vcmp.gt.f32.partialorder %v392_v14, 0.0 }
   0x6   :  { %v107_v7 = vrot.slane %v364_v2, %v106_v3  ;;  %v172_v8 = vrot.slane %v364_v2, %v171_v4  ;;  %255 = vrcp.f32 %v101_v5  ;;  %v405_v22 = vld [vmem:[%s496_s6] sm:$0x3]  ;;  %vm142_vm3 = vcmp.gt.f32.partialorder %v399_v19, 0.0 }
   0x7   :  { %257 = vrcp.f32 %v392_v14  ;;  %v56_v25 = vmul.f32 1.442695, %v405_v22  ;;  %v38_v26 = vld [vmem:[%s497_s4] sm:$0x3]  ;;  %v61_v4 = vsub.f32 -0.005012542, %v405_v22 }
   0x8   :  { %v374_v9 = vmul.f32 %v107_v7, %v101_v5  ;;  %v376_v10 = vmul.f32 %v248_v6, %v172_v8  ;;  %v39_v35 = vld [vmem:[%s498_s5] sm:$0x3] }
   0x9   :  { %v59_v42 = vmul.f32 %v39_v35, %v39_v35  ;;  %v102_v46 = vld [vmem:[%s499_s1] sm:$0xff] }
   0xa   :  { %v110_v11 = vsel %vm109_vm0, %v374_v9, 0.0  ;;  %v174_v12 = vsel %vm109_vm0, %v376_v10, 0.0 }
   0xb   :  { %111 = vadd.xlane.f32.xlu0 %v110_v11  ;;  %v60_v53 = vmul.f32 1.0050251, %v59_v42 }
   0xe   :  { %v252_v15 = vpop.eup %251 }
   0xf   :  { %175 = vadd.xlane.f32.xlu0 %v174_v12  ;;  %v254_v16 = vpop.eup %253  ;;  %v70_v17 = vmul.f32 %v252_v15, %v364_v2 }
  0x10   :  { %v256_v18 = vpop.eup %255  ;;  %v77_v20 = vmul.f32 %v254_v16, %v385_v13  ;;  %v91_v27 = vmul.f32 %v254_v16, %v392_v14 }
  0x11   :  { %v258_v21 = vpop.eup %257  ;;  %v144_v23 = vmul.f32 %v256_v18, %v399_v19  ;;  %259 = vlog2.f32 %v70_v17 }
  0x12   :  { %261 = vlog2.f32 %v77_v20  ;;  %v84_v24 = vmul.f32 %v258_v21, %v364_v2 }
  0x13   :  { %263 = vrcp.f32 %v248_v6 }
  0x14   :  { %265 = vrcp.f32 %v107_v7 }
  0x15   :  { %267 = vlog2.f32 %v144_v23 }
  0x16   :  { %269 = vlog2.f32 %v84_v24 }
  0x17   :  { %271 = vpow2.f32 %v56_v25 }
  0x18   :  { %273 = vrcp.f32 %v38_v26 }
  0x1b   :  { %v260_v29 = vpop.eup %259 }
  0x1c   :  { %v262_v30 = vpop.eup %261  ;;  %v72_v37 = vmul.f32 0.6931472, %v260_v29 }
  0x1d   :  { %v264_v32 = vpop.eup %263  ;;  %v79_v38 = vmul.f32 0.6931472, %v262_v30 }
  0x1e   :  { %v266_v33 = vpop.eup %265  ;;  %v208_v41 = vmul.f32 %v264_v32, %v417_v34  ;;  %v73_v47 = vmul.f32 %v72_v37, %v364_v2 }
  0x1f   :  { %v268_v36 = vpop.eup %267  ;;  %v80_v48 = vmul.f32 %v79_v38, %v385_v13 }
  0x20   :  { %v270_v39 = vpop.eup %269  ;;  %v146_v44 = vmul.f32 0.6931472, %v268_v36  ;;  %v74_v61 = vsel %vm43_vm1, %v73_v47, 0.0 }
  0x21   :  { %v272_v40 = vpop.eup %271  ;;  %v86_v49 = vmul.f32 0.6931472, %v270_v39  ;;  %v81_v62 = vsel %vm75_vm2, %v80_v48, 0.0 }
  0x22   :  { %v274_v43 = vpop.eup %273  ;;  %v58_v52 = vmul.f32 1.0050251, %v272_v40  ;;  %v147_v57 = vmul.f32 %v146_v44, %v399_v19 }
  0x23   :  { %v45_v58 = vmul.f32 %v274_v43, %v364_v2  ;;  %v87_v63 = vmul.f32 %v86_v49, %v364_v2 }
  0x24   :  { %v62_v5 = vadd.f32 %v60_v53, %v58_v52 }
  0x25   :  { %v88_v11 = vsel %vm43_vm1, %v87_v63, 0.0 }
  0x26   :  { %v63_v15 = vadd.f32 %v62_v5, %v61_v4 }
  0x28   :  { %v64_v20 = vsel %vm50_vm5, %v63_v15, 0.0 }
  0x98   :  { %v112_v28 = vpop.xlane.xlu0 %111 }
  0x99   :  { %275 = vrcp.f32 %v112_v28 }
  0x9a   :  { %277 = vlog2.f32 %v91_v27 }
  0x9b   :  { %279 = vrcp.f32 %v172_v8  ;;  %v82_v8 = vadd.f32 %v81_v62, %v74_v61 }
  0x9c   :  { %v176_v31 = vpop.xlane.xlu0 %175 }
  0x9d   :  { %281 = vrcp.f32 %v176_v31  ;;  %v89_v16 = vadd.f32 %v88_v11, %v82_v8 }
  0x9e   :  { %283 = vlog2.f32 %v208_v41 }
  0xa3   :  { %v276_v45 = vpop.eup %275 }
  0xa4   :  { %v278_v50 = vpop.eup %277  ;;  %v114_v51 = vmul.f32 %v276_v45, %v374_v9  ;;  %v148_v9 = vsel %vm142_vm3, %v147_v57, 0.0 }
  0xa5   :  { %v280_v54 = vpop.eup %279  ;;  %v93_v0 = vmul.f32 0.6931472, %v278_v50 }
  0xa6   :  { %v115_v55 = vmul.f32 %v114_v51, %v102_v46  ;;  %v128_v56 = vmul.f32 %v266_v33, %v114_v51  ;;  %vm126_vm6 = vcmp.gt.f32.partialorder %v114_v51, 0.0 }
  0xa7   :  { %v282_v59 = vpop.eup %281  ;;  %v94_v12 = vmul.f32 %v93_v0, %v392_v14 }
  0xa8   :  { %v116_v1 = vsel %vm109_vm0, %v115_v55, 0.0  ;;  %v178_v3 = vmul.f32 %v282_v59, %v376_v10  ;;  %285 = vlog2.f32 %v128_v56  ;;  %v149_v10 = vsel %vm109_vm0, %v148_v9, 0.0  ;;  %v284_v17 = vpop.eup %283 }
  0xa9   :  { %117 = vadd.xlane.f32.xlu1 %v116_v1  ;;  %287 = vlog2.f32 %v45_v58  ;;  %v95_v18 = vsel %vm90_vm4, %v94_v12, 0.0  ;;  %v210_v23 = vmul.f32 0.6931472, %v284_v17 }
  0xaa   :  { %v179_v6 = vmul.f32 %v249_v60, %v178_v3  ;;  %v192_v7 = vmul.f32 %v280_v54, %v178_v3  ;;  %v96_v21 = vadd.f32 %v95_v18, %v89_v16  ;;  %vm190_vm8 = vcmp.gt.f32.partialorder %v178_v3, 0.0 }
  0xab   :  { %v211_v29 = vmul.f32 %v417_v34, %v210_v23 }
  0xac   :  { %v180_v13 = vsel %vm109_vm0, %v179_v6, 0.0  ;;  %289 = vlog2.f32 %v192_v7  ;;  %v97_v14 = vsel %vm50_vm5, %v96_v21, 0.0 }
  0xad   :  { %181 = vadd.xlane.f32.xlu0 %v180_v13  ;;  %v212_v35 = vsel %vm206_vm7, %v211_v29, 0.0 }
  0xae   :  { %v213_v38 = vsel %vm109_vm0, %v212_v35, 0.0 }
  0xb1   :  { %150 = vadd.xlane.f32.xlu0 %v149_v10 }
  0xb2   :  { %v286_v19 = vpop.eup %285 }
  0xb3   :  { %v130_v22 = vmul.f32 0.6931472, %v286_v19  ;;  %v288_v24 = vpop.eup %287 }
  0xb4   :  { %v47_v30 = vmul.f32 0.6931472, %v288_v24 }
  0xb5   :  { %v131_v25 = vmul.f32 %v130_v22, %v114_v51  ;;  %65 = vadd.xlane.f32.xlu0 %v64_v20 }
  0xb6   :  { %v290_v26 = vpop.eup %289  ;;  %v48_v36 = vmul.f32 %v47_v30, %v364_v2 }
  0xb7   :  { %v132_v27 = vsel %vm126_vm6, %v131_v25, 0.0  ;;  %v194_v28 = vmul.f32 0.6931472, %v290_v26 }
  0xb8   :  { %v133_v31 = vsel %vm109_vm0, %v132_v27, 0.0  ;;  %v49_v39 = vsel %vm43_vm1, %v48_v36, 0.0 }
  0xb9   :  { %134 = vadd.xlane.f32.xlu1 %v133_v31  ;;  %v195_v32 = vmul.f32 %v194_v28, %v178_v3  ;;  %98 = vadd.xlane.f32.xlu0 %v97_v14  ;;  %v51_v40 = vsel %vm50_vm5, %v49_v39, 0.0 }
  0xbb   :  { %v196_v33 = vsel %vm190_vm8, %v195_v32, 0.0 }
  0xbc   :  { %v197_v37 = vsel %vm109_vm0, %v196_v33, 0.0 }
  0xbd   :  { %198 = vadd.xlane.f32.xlu1 %v197_v37 }
  0xc1   :  { %214 = vadd.xlane.f32.xlu1 %v213_v38 }
  0xc5   :  { %52 = vadd.xlane.f32.xlu1 %v51_v40 }
 0x136   :  { %v118_v34 = vpop.xlane.xlu1 %117 }
 0x137   :  { %v119_v41 = vrot.slane %v118_v34, 4 }
 0x139   :  { %v120_v42 = vadd.f32 %v119_v41, %v118_v34 }
 0x13a   :  { %v182_v43 = vpop.xlane.xlu0 %181 }
 0x13b   :  { %v121_v44 = vrot.slane %v120_v42, 2  ;;  %v183_v45 = vrot.slane %v182_v43, 4 }
 0x13d   :  { %v122_v46 = vadd.f32 %v121_v44, %v120_v42  ;;  %v184_v47 = vadd.f32 %v183_v45, %v182_v43 }
 0x13e   :  { %v151_v48 = vpop.xlane.xlu0 %150 }
 0x13f   :  { %v123_v49 = vrot.slane %v122_v46, 1  ;;  %v185_v50 = vrot.slane %v184_v47, 2  ;;  %v152_v51 = vrot.slane %v151_v48, 4 }
 0x141   :  { %v124_v52 = vadd.f32 %v123_v49, %v122_v46  ;;  %v186_v53 = vadd.f32 %v185_v50, %v184_v47  ;;  %v153_v2 = vadd.f32 %v152_v51, %v151_v48 }
 0x142   :  { %v66_v54 = vpop.xlane.xlu0 %65 }
 0x143   :  { %v125_v55 = vsub.f32 0.0, %v124_v52  ;;  %v187_v56 = vrot.slane %v186_v53, 1  ;;  %v154_v57 = vrot.slane %v153_v2, 2  ;;  %v247_v7 = vadd.f32 -8.0, %v66_v54 }
 0x145   :  { %159 = vst.msk [vmem:[%s500_s9] sm:$0x1] %vm158_vm9, %v125_v55  ;;  %v188_v58 = vadd.f32 %v187_v56, %v186_v53  ;;  %v155_v59 = vadd.f32 %v154_v57, %v153_v2  ;;  %v68_v15 = vmul.f32 0.5, %v247_v7 }
 0x146   :  { %v135_v60 = vpop.xlane.xlu1 %134  ;;  %v99_v61 = vpop.xlane.xlu0 %98 }
 0x147   :  { %v189_v62 = vsub.f32 0.0, %v188_v58  ;;  %v136_v63 = vrot.slane %v135_v60, 4  ;;  %v156_v0 = vrot.slane %v155_v59, 1  ;;  %100 = vst.msk [vmem:[%s501_s13] sm:$0x3] %vm54_vm10, %v99_v61 }
 0x149   :  { %222 = vst.msk [vmem:[%s500_s9 + $0x1] sm:$0x1] %vm158_vm9, %v189_v62  ;;  %v137_v1 = vadd.f32 %v136_v63, %v135_v60  ;;  %v157_v3 = vadd.f32 %v156_v0, %v155_v59 }
 0x14a   :  { %v199_v4 = vpop.xlane.xlu1 %198 }
 0x14b   :  { %v138_v5 = vrot.slane %v137_v1, 2  ;;  %162 = vst.msk [vmem:[%s502_s12] sm:$0x1] %vm158_vm9, %v157_v3  ;;  %v200_v6 = vrot.slane %v199_v4, 4 }
 0x14d   :  { %v139_v8 = vadd.f32 %v138_v5, %v137_v1  ;;  %v201_v9 = vadd.f32 %v200_v6, %v199_v4 }
 0x14e   :  { %v215_v11 = vpop.xlane.xlu1 %214 }
 0x14f   :  { %v140_v12 = vrot.slane %v139_v8, 1  ;;  %v202_v13 = vrot.slane %v201_v9, 2  ;;  %v216_v10 = vrot.slane %v215_v11, 4 }
 0x151   :  { %v203_v16 = vadd.f32 %v202_v13, %v201_v9  ;;  %v217_v17 = vadd.f32 %v216_v10, %v215_v11  ;;  %v141_v18 = vadd.f32 %v140_v12, %v139_v8 }
 0x152   :  { %v53_v19 = vpop.xlane.xlu1 %52 }
 0x153   :  { %v204_v20 = vrot.slane %v203_v16, 1  ;;  %v218_v21 = vrot.slane %v217_v17, 2  ;;  %v160_v22 = vadd.f32 %v141_v18, %v68_v15  ;;  %55 = vst.msk [vmem:[%s503_s11] sm:$0x3] %vm54_vm10, %v53_v19 }
 0x155   :  { %v219_v23 = vadd.f32 %v218_v21, %v217_v17  ;;  %v205_v24 = vadd.f32 %v204_v20, %v203_v16  ;;  %161 = vst.msk [vmem:[%s504_s10] sm:$0x1] %vm158_vm9, %v160_v22 }
 0x157   :  { %v220_v25 = vrot.slane %v219_v23, 1  ;;  %v223_v26 = vadd.f32 %v205_v24, %v68_v15 }
 0x159   :  { %v221_v14 = vadd.f32 %v220_v25, %v219_v23  ;;  %225 = vst.msk [vmem:[%s504_s10] sm:$0x2] %vm224_vm11, %v223_v26 }
 0x15b   :  { %226 = vst.msk [vmem:[%s502_s12 + $0x1] sm:$0x1] %vm158_vm9, %v221_v14 }

</bundles_post_ra>
